<compile_context>
chip_gen: v5e
topology: v5e:2x2
jax: 0.10.0
libtpu: 0.0.40
codegen_flags: <defaults>
</compile_context>

<pallas_src>
import jax
import jax.numpy as jnp
from jax.experimental import pallas as pl
from jax.experimental.pallas import tpu as pltpu


# ----------------------------------------------------------------------------
# Exact translation of the reference module.
# ----------------------------------------------------------------------------
class BERT:
    """JAX mirror of the (empty) PyTorch BERT module."""

    def __init__(self):
        # Reference __init__ defines no parameters.
        pass

    def forward(self):
        # Reference forward: `pass` -> returns None.
        return None

    __call__ = forward


# ----------------------------------------------------------------------------
# Fused tiled matmul + bias + GELU Pallas kernel (the BERT building block).
#
#   out = gelu(a @ b + bias)     a: (M, K) bf16, b: (K, N) bf16, bias: (N,)
#
# Output BlockSpec returns the same (i, j) block for every k, so the f32 VMEM
# scratch is a resident accumulator across the K axis.  The bias is folded
# into the accumulator init (k == 0); the epilogue on the last K step is just
# GELU + cast + the single lane-dense output store.
# ----------------------------------------------------------------------------
_SQRT_2_OVER_PI = 0.7978845608028654


def _gelu_f32(x):
    # tanh-approximation GELU in f32 (tanh rides the EUP slot on all
    # generations, incl. v5e which has no bf16 VPU/EUP).
    # TODO(synk): PyTorch nn.GELU defaults to the exact erf form; the empty
    #             reference module specifies neither, so the tanh approx is kept.
    return 0.5 * x * (1.0 + jnp.tanh(_SQRT_2_OVER_PI * (x + 0.044715 * x * x * x)))


def _matmul_bias_gelu_kernel(a_ref, b_ref, bias_ref, o_ref, acc_ref):
    k = pl.program_id(2)

    @pl.when(k == 0)
    def _():
        # Fold the (f32) bias into the accumulator init — the epilogue is then
        # gelu + cast only (no extra broadcast-add on the final-step tail).
        acc_ref[...] = jnp.broadcast_to(bias_ref[...], acc_ref.shape)

    # MXU: bf16 x bf16 -> f32 accumulation.
    acc_ref[...] += jnp.dot(
        a_ref[...], b_ref[...], preferred_element_type=jnp.float32
    )

    @pl.when(k == pl.num_programs(2) - 1)
    def _():
        o_ref[...] = _gelu_f32(acc_ref[...]).astype(o_ref.dtype)


def _round_up(x, m):
    return ((x + m - 1) // m) * m


def _choose_tiles(M, N, K, tm, tn, tk):
    """Pick (tm, tn, tk) per the review's cross-generation baseline.

    Baseline tm=tn=512, tk=1024 (~6 MiB VMEM with double buffering: safe on
    v5e's 16 MiB / v6e's 32 MiB / v7x's 32 MiB scoped defaults).  For larger
    sustained GEMMs on v6e you can pass tm=tn=1024, tk=2048 explicitly (raise
    vmem_limit_bytes if needed); on v7x cap around 512-768 / 1024-2048.
    """
    if tm is None:
        tm = min(512, _round_up(M, 128))
    if tn is None:
        tn = min(512, _round_up(N, 128))
    if tk is None:
        # Collapse the K grid axis for small problems: single step, no
        # accumulator carry, no multi-step pipeline overhead.
        tk = _round_up(K, 128) if K <= 2048 else 1024
    # Guarantee >=2 parallel blocks for v7x megacore when possible: if both
    # M and N collapse to a single block, split N (neutral on v5e/v6e).
    if pl.cdiv(M, tm) == 1 and pl.cdiv(N, tn) == 1 and tn > 128:
        tn = max(128, _round_up(tn // 2, 128))
    return tm, tn, tk


def fused_matmul_bias_gelu(a, b, bias, *, tm=None, tn=None, tk=None):
    """out = gelu(a @ b + bias) via a tiled Pallas TPU kernel.

    Handles arbitrary M/N/K by zero-padding up to the tile grid (zero padding
    along K is exact for the matmul; padded M/N rows/cols are sliced off).
    """
    M, K = a.shape
    K2, N = b.shape
    assert K == K2, (K, K2)
    assert bias.shape == (N,), bias.shape

    tm, tn, tk = _choose_tiles(M, N, K, tm, tn, tk)

    # Pad to tile multiples so every block is full (keeps the (8,128) layout
    # rules trivially satisfied and all output stores unmasked / lane-dense).
    Mp, Np, Kp = _round_up(M, tm), _round_up(N, tn), _round_up(K, tk)
    if (Mp, Kp) != (M, K):
        a = jnp.pad(a, ((0, Mp - M), (0, Kp - K)))
    if (Kp, Np) != (K, N):
        b = jnp.pad(b, ((0, Kp - K), (0, Np - N)))
    bias_f32 = bias.astype(jnp.float32)
    if Np != N:
        bias_f32 = jnp.pad(bias_f32, (0, Np - N))
    bias2d = bias_f32.reshape(1, Np)  # lane-dense 2-D view for a (1, tn) block

    grid = (Mp // tm, Np // tn, Kp // tk)  # reduction axis (K) last

    out = pl.pallas_call(
        _matmul_bias_gelu_kernel,
        out_shape=jax.ShapeDtypeStruct((Mp, Np), a.dtype),
        grid_spec=pltpu.PrefetchScalarGridSpec(
            num_scalar_prefetch=0,
            grid=grid,
            in_specs=[
                pl.BlockSpec((tm, tk), lambda i, j, k: (i, k)),   # A tile
                pl.BlockSpec((tk, tn), lambda i, j, k: (k, j)),   # B tile
                pl.BlockSpec((1, tn), lambda i, j, k: (0, j)),    # bias tile (f32)
            ],
            out_specs=pl.BlockSpec((tm, tn), lambda i, j, k: (i, j)),
            scratch_shapes=[pltpu.VMEM((tm, tn), jnp.float32)],   # f32 accumulator
        ),
        compiler_params=pltpu.CompilerParams(
            dimension_semantics=("parallel", "parallel", "arbitrary")
        ),
        cost_estimate=pl.CostEstimate(
            flops=2 * M * N * K,
            transcendentals=M * N,
            bytes_accessed=2 * (M * K + K * N) + 2 * M * N,
        ),
    )(a, b, bias2d)

    if (Mp, Np) != (M, N):
        out = out[:M, :N]
    return out


if __name__ == "__main__":
    # 1) Exact reference semantics: forward() takes no args, returns None.
    model = BERT()
    assert model.forward() is None

    # 2) Deterministic small BERT-ish problem: batch*seq = 200 rows (exercises
    #    the non-tile-multiple path), hidden K = 768 (BERT-base), 512 output
    #    features.  K <= 2048 so the K grid axis collapses to a single step.
    key = jax.random.PRNGKey(0)
    ka, kb, kc = jax.random.split(key, 3)
    M, K, N = 200, 768, 512
    a = jax.random.normal(ka, (M, K), dtype=jnp.float32).astype(jnp.bfloat16)
    b = jax.random.normal(kb, (K, N), dtype=jnp.float32).astype(jnp.bfloat16)
    bias = jax.random.normal(kc, (N,), dtype=jnp.float32)

    y = fused_matmul_bias_gelu(a, b, bias)
    jax.block_until_ready(y)

    # Pure-JAX reference (f32 math on the same bf16-valued inputs).
    ref = jnp.dot(a.astype(jnp.float32), b.astype(jnp.float32))
    ref = ref + bias[None, :]
    ref = _gelu_f32(ref).astype(jnp.bfloat16)

    assert y.shape == (M, N) and y.dtype == jnp.bfloat16
    assert jnp.allclose(
        y.astype(jnp.float32), ref.astype(jnp.float32), rtol=2e-2, atol=2e-2
    ), "fused matmul+bias+gelu mismatch vs reference"

    print("KERNEL_OK")
</pallas_src>

<mosaic_0001>
module attributes {stable_mosaic.version = 11 : i64} {
  func.func @_matmul_bias_gelu_kernel(%arg0: i32, %arg1: i32, %arg2: i32, %arg3: memref<256x768xbf16, #tpu.memory_space<vmem>>, %arg4: memref<768x256xbf16, #tpu.memory_space<vmem>>, %arg5: memref<1x256xf32, #tpu.memory_space<vmem>>, %arg6: memref<256x256xbf16, #tpu.memory_space<vmem>>, %arg7: memref<256x256xf32, #tpu.memory_space<vmem>>) attributes {dimension_semantics = [#tpu.dimension_semantics<parallel>, #tpu.dimension_semantics<parallel>, #tpu.dimension_semantics<arbitrary>], iteration_bounds = array<i64: 1, 2, 1>, scalar_prefetch = 0 : i64, scratch_operands = 1 : i64, tpu.core_type = #tpu.core_type<tc>, window_params = [{transform_indices = @transform_0, window_bounds = array<i64: 256, 768>}, {transform_indices = @transform_1, window_bounds = array<i64: 768, 256>}, {transform_indices = @transform_2, window_bounds = array<i64: 1, 256>}, {transform_indices = @transform_3, window_bounds = array<i64: 256, 256>}]} {
    %c0_i32 = arith.constant 0 : i32
    %0 = arith.cmpi eq, %arg2, %c0_i32 : i32
    %1 = arith.extui %0 : i1 to i32
    %c0_i32_0 = arith.constant 0 : i32
    %2 = arith.cmpi ne, %1, %c0_i32_0 : i32
    scf.if %2 {
      %c0_10 = arith.constant 0 : index
      %c0_11 = arith.constant 0 : index
      %12 = vector.load %arg5[%c0_10, %c0_11] : memref<1x256xf32, #tpu.memory_space<vmem>>, vector<1x256xf32>
      %13 = vector.shape_cast %12 : vector<1x256xf32> to vector<1x256xf32>
      %14 = vector.broadcast %13 : vector<1x256xf32> to vector<256x256xf32>
      %c0_12 = arith.constant 0 : index
      %c0_13 = arith.constant 0 : index
      %15 = vector.load %arg7[%c0_12, %c0_13] : memref<256x256xf32, #tpu.memory_space<vmem>>, vector<256x256xf32>
      tpu.vector_store %arg7[%c0_12, %c0_13], %14 {strides = array<i32>} : memref<256x256xf32, #tpu.memory_space<vmem>>, vector<256x256xf32>,
    } else {
    }
    %c0 = arith.constant 0 : index
    %c0_1 = arith.constant 0 : index
    %3 = vector.load %arg7[%c0, %c0_1] : memref<256x256xf32, #tpu.memory_space<vmem>>, vector<256x256xf32>
    %c0_2 = arith.constant 0 : index
    %c0_3 = arith.constant 0 : index
    %4 = vector.load %arg3[%c0_2, %c0_3] : memref<256x768xbf16, #tpu.memory_space<vmem>>, vector<256x768xbf16>
    %c0_4 = arith.constant 0 : index
    %c0_5 = arith.constant 0 : index
    %5 = vector.load %arg4[%c0_4, %c0_5] : memref<768x256xbf16, #tpu.memory_space<vmem>>, vector<768x256xbf16>
    %cst = arith.constant dense<0.000000e+00> : vector<256x256xf32>
    %6 = tpu.matmul %4, %5, %cst {dimension_numbers = #tpu.dot_dimension_numbers<[1], [0], [0], [1], [0, 0, 1, 1], [], []>} : vector<256x768xbf16>, vector<768x256xbf16>, vector<256x256xf32> -> vector<256x256xf32>
    %7 = arith.addf %3, %6 : vector<256x256xf32>
    %c0_6 = arith.constant 0 : index
    %c0_7 = arith.constant 0 : index
    %8 = vector.load %arg7[%c0_6, %c0_7] : memref<256x256xf32, #tpu.memory_space<vmem>>, vector<256x256xf32>
    tpu.vector_store %arg7[%c0_6, %c0_7], %7 {strides = array<i32>} : memref<256x256xf32, #tpu.memory_space<vmem>>, vector<256x256xf32>,
    %c0_i32_8 = arith.constant 0 : i32
    %9 = arith.cmpi eq, %arg2, %c0_i32_8 : i32
    %10 = arith.extui %9 : i1 to i32
    %c0_i32_9 = arith.constant 0 : i32
    %11 = arith.cmpi ne, %10, %c0_i32_9 : i32
    scf.if %11 {
      %c0_10 = arith.constant 0 : index
      %c0_11 = arith.constant 0 : index
      %12 = vector.load %arg7[%c0_10, %c0_11] : memref<256x256xf32, #tpu.memory_space<vmem>>, vector<256x256xf32>
      %cst_12 = arith.constant 5.000000e-01 : f32
      %13 = vector.broadcast %cst_12 : f32 to vector<256x256xf32>
      %14 = arith.mulf %13, %12 : vector<256x256xf32>
      %cst_13 = arith.constant 4.471500e-02 : f32
      %15 = vector.broadcast %cst_13 : f32 to vector<256x256xf32>
      %16 = arith.mulf %15, %12 : vector<256x256xf32>
      %17 = arith.mulf %16, %12 : vector<256x256xf32>
      %18 = arith.mulf %17, %12 : vector<256x256xf32>
      %19 = arith.addf %12, %18 : vector<256x256xf32>
      %cst_14 = arith.constant 0.797884583 : f32
      %20 = vector.broadcast %cst_14 : f32 to vector<256x256xf32>
      %21 = arith.mulf %20, %19 : vector<256x256xf32>
      %22 = math.tanh %21 : vector<256x256xf32>
      %cst_15 = arith.constant 1.000000e+00 : f32
      %23 = vector.broadcast %cst_15 : f32 to vector<256x256xf32>
      %24 = arith.addf %23, %22 : vector<256x256xf32>
      %25 = arith.mulf %14, %24 : vector<256x256xf32>
      %26 = arith.truncf %25 : vector<256x256xf32> to vector<256x256xbf16>
      %c0_16 = arith.constant 0 : index
      %c0_17 = arith.constant 0 : index
      %27 = vector.load %arg6[%c0_16, %c0_17] : memref<256x256xbf16, #tpu.memory_space<vmem>>, vector<256x256xbf16>
      tpu.vector_store %arg6[%c0_16, %c0_17], %26 {strides = array<i32>} : memref<256x256xbf16, #tpu.memory_space<vmem>>, vector<256x256xbf16>,
    } else {
    }
    return
  }
  func.func @transform_0(%arg0: i32, %arg1: i32, %arg2: i32) -> (i32, i32) {
    %c0_i32 = arith.constant 0 : i32
    return %arg0, %arg2 : i32, i32
  }
  func.func @transform_1(%arg0: i32, %arg1: i32, %arg2: i32) -> (i32, i32) {
    %c0_i32 = arith.constant 0 : i32
    return %arg2, %arg1 : i32, i32
  }
  func.func @transform_2(%arg0: i32, %arg1: i32, %arg2: i32) -> (i32, i32) {
    %c0_i32 = arith.constant 0 : i32
    %c0_i32_0 = arith.constant 0 : i32
    return %c0_i32, %arg1 : i32, i32
  }
  func.func @transform_3(%arg0: i32, %arg1: i32, %arg2: i32) -> (i32, i32) {
    %c0_i32 = arith.constant 0 : i32
    return %arg0, %arg1 : i32, i32
  }
}

</mosaic_0001>

<bundles_post_ra>
// kernel: tpu_custom_call.1
= control target key start
LH: loop header
LB: loop body
LE: loop exit
PB: predicated region body
PF: predicated region fallthrough
CT: control target
= control target key end

     0   :  { %s6594_s0 = inlined_call_operand.hbm [shape: bf16[256,768], index: 0, kind: input, shape index: {}]   ;;  %s6595_s1 = inlined_call_operand.hbm [shape: bf16[768,512], index: 1, kind: input, shape index: {}]   ;;  %s6596_s2 = inlined_call_operand.hbm [shape: f32[1,512], index: 2, kind: input, shape index: {}]   ;;  %s6597_s3 = inlined_call_operand.hbm [shape: bf16[256,512], index: 3, kind: output, shape index: {}]  }
   0x1   :  { %6653 = sst [smem:[#allocation78_spill]] %s6594_s0 }
   0x2   :  { %6654 = sst [smem:[#allocation79_spill]] %s6595_s1 }
   0x3   :  { %8 = vsyncpa [#allocation4], 0 }
   0x4   :  { %9 = vsyncpa [#allocation7], 0 }
   0x5   :  { %11 = vsyncpa [#allocation7 + $0x1], 0 }
   0x6   :  { %12 = vsyncpa [#allocation5], 0 }
   0x7   :  { %14 = vsyncpa [#allocation5 + $0x1], 0  ;;  %s5032_s12 = smov 0   ;;  %s5034_s13 = smov 0  }
   0x8   :  { %s5036_s14 = smov 0   ;;  %s5038_s15 = smov 0  }
   0x9   :  { %s5040_s16 = smov 0   ;;  %s5042_s17 = smov 0  }
   0xa LB: > { %s35_s18 = sadd.s32 1, %s4997_s16  ;;  %s76_s19 = sadd.s32 1, %s4989_s14  ;;  %s5001_s17 = sphi %s5042_s17, %s20_s17   ;;  %s4997_s16 = sphi %s5040_s16, %s6848_s16   ;;  %s4993_s15 = sphi %s5038_s15, %s6847_s15   ;;  %s4989_s14 = sphi %s5036_s14, %s6846_s14   ;;  %s4985_s13 = sphi %s5034_s13, %s6845_s13   ;;  %s4981_s12 = sphi %s5032_s12, %s6844_s12  }
   0xb   : > { %p37_p0 = scmp.ge.s32.totalorder %s35_s18, 2  ;;  %p83_p1 = scmp.ne.s32.totalorder %s4989_s14, %s4985_s13 }
   0xc   : > { %p84_p2 = scmp.eq.s32.totalorder %s5001_s17, 0  ;;  %p3633_p3 = scmp.ge.s32.totalorder %s5001_s17, 2 }
   0xd   : > { %s6850_s18 = smov (%p37_p0, %s35_s18), 0  ;;  %p4637_p5 = scmp.lt.s32.totalorder %s5001_s17, 2 }
   0xe   : > { %p85_p4 = por %p84_p2, %p83_p1  ;;  %s72_s20 = ssub.s32 %s4997_s16, %s6850_s18 }
   0xf   : > { %s187_s21 = sand.u32 1, %s5001_s17   ;;  %p74_p6 = scmp.eq.s32.totalorder %s72_s20, 0 }
  0x10   : > { %s189_s22 = sand.u32 1, %s4989_s14   ;;  %s4415_s23 = sshll.u32 %s4997_s16, 3 }
  0x11   : > { %s5080_s24 = scalar_select %p74_p6, %s4989_s14, %s76_s19  }
  0x12   : > { %s4609_s25 = smul.u32 768, %s189_s22  ;;  %s6655_s1 = sld [smem:[#allocation79_spill]] }
  0x13   : > { %p5087_p7 = pnand %p4637_p5, %p85_p4  ;;  %s5091_s6 = scalar_lea.sflag [#allocation7], %s187_s21 }
  0x14   : > { %s191_s4 = scalar_lea.vmem [#allocation6], %s4609_s25  ;;  %s5003_s7 = smov 256  }
  0x15   : > { %s202_s5 = sshll.u32 %s191_s4, 4  ;;  %s5004_s8 = smov 128   ;;  %s203_s5 = int_to_ptr.vmem [resolvable:$true] %s202_s5 }
  0x16   : > { %s5005_s9 = smov 8   ;;  %s5097_s10 = sadd.s32 4294967295, %s5001_s17  }
  0x17   : > { %s3630_s11 = sadd.s32 4294967294, %s5001_s17   ;;  %p89_p8 = scmp.ne.s32.totalorder %s4985_s13, %s4981_s12 }
  0x18   : > { %s199_s28 = scalar_lea.hbm %s6655_s1, %s4415_s23  ;;  %p90_p9 = scmp.eq.s32.totalorder %s5097_s10, 0 }
  0x19   : > { %s200_s29 = sshll.u32 %s199_s28, 4  ;;  %p141_p10 = scmp.eq.s32.totalorder %s5097_s10, 1  ;;  %s201_s29 = int_to_ptr.hbm [resolvable:$true] %s200_s29 }
  0x1a   : > { %4628 = dma.hbm_to_vmem [thread:$0]  (!%p5087_p7), %s201_s29, 12288, %s203_s5, %s5091_s6, %s5003_s7, %s5004_s8, %s5005_s9  }
  0x1b   : > { %p147_p11 = scmp.eq.s32.totalorder %s3630_s11, 1  ;;  %p5106_p12 = por %p90_p9, %p89_p8 }
  0x1c   : > { %p3631_p13 = scmp.ge.s32.totalorder %s5001_s17, 1  ;;  %p5114_p0 = por %p141_p10, %p83_p1 }
  0x1d   : > { %p5118_p2 = por %p147_p11, %p89_p8  ;;  %p154_p4 = scmp.lt.s32.totalorder %s5001_s17, 3 }
  0x1e   : > { %s6660_s0 = sld [smem:[#allocation78_spill]]  ;;  %s5006_s28 = smov [#allocation3]  }
  0x1f   : > { %p5126_p5 = pnand %p3631_p13, %p154_p4  ;;  %s173_s29 = sshll.u32 %s5006_s28, 4  ;;  %s174_s29 = int_to_ptr.vmem [resolvable:$true] %s173_s29 }
  0x20   : > { %s3636_s4 = sshll.u32 %s189_s22, 1  ;;  %s3637_s5 = sshll.u32 %s4997_s16, 1 }
  0x21   : > { %p4621_p1 = pneg %p5126_p5  ;;  %s216_s7 = scalar_lea.vmem [#allocation8], %s3636_s4 }
  0x22   : > { %s224_s8 = sshll.u32 %s216_s7, 4  ;;  %s220_s23 = scalar_lea.hbm %s6596_s2, %s3637_s5  ;;  %s225_s8 = int_to_ptr.vmem [resolvable:$true] %s224_s8 }
  0x23   : > { %p4622_p6 = pnand %p4621_p1, %p90_p9  ;;  %s5007_s25 = smov 384  }
  0x24   : > { %s171_s26 = sshll.u32 %s6660_s0, 4  ;;  %s5008_s0 = smov 24   ;;  %s172_s26 = int_to_ptr.hbm [resolvable:$true] %s171_s26 }
  0x25   : > { %4624 = dma.hbm_to_vmem [thread:$0]  (!%p4622_p6), %s172_s26, 12288, %s174_s29, [#allocation4], %s5007_s25, %s5007_s25, %s5008_s0  }
  0x26   : > { %s222_s1 = sshll.u32 %s220_s23, 4  ;;  %233 = sbr.rel (%p5126_p5) target bundleno = 1011 (0x3f3), region = 32  ;;  %s223_s1 = int_to_ptr.hbm [resolvable:$true] %s222_s1 }
  0x27   : > { %4631 = dma.hbm_to_vmem [thread:$0]  (!%p5087_p7), %s223_s1, 32, %s225_s8, %s5091_s6  }
  0x2b   : > { %4968 = dma.done.wait (%p90_p9), [#allocation4], 12288  }
  0x2c   : > { %4970 = vsyncadd (%p90_p9), [#allocation4], 4294955008  ;;  %s240_s22 = sand.u32 1, %s5097_s10   ;;  %s5151_s28 = sand.u32 1, %s4985_s13  }
  0x2d   : > { %s4610_s0 = smul.u32 768, %s5151_s28  ;;  %s241_s26 = scalar_lea.sflag [#allocation7], %s240_s22 }
  0x2f   : > { %s5154_s30 = scalar_lea.vmem [#allocation6], %s4610_s0 }
  0x30   : > { %4972 = dma.done.wait (%p5106_p12), %s241_s26, 12320  }
  0x31   : > { %4974 = vsyncadd (%p5106_p12), %s241_s26, 4294954976  ;;  %v4084_v0 = vld [vmem:[%s5154_s30 + $0x70] sm:$0xf]  ;;  %v4527_v1 = vld [vmem:[%s5154_s30 + $0x74] sm:$0xf0]  ;;  %s3640_s1 = sshll.u32 %s5151_s28, 1 }
  0x32   : > { %v4148_v2 = vld [vmem:[%s5154_s30 + $0xf0] sm:$0xf]  ;;  %v4085_v3 = vor.u32 %v4527_v1, %v4084_v0  ;;  %v4543_v4 = vld [vmem:[%s5154_s30 + $0xf4] sm:$0xf0]  ;;  %v4076_v11 = vld [vmem:[%s5154_s30 + $0x60] sm:$0xf] }
  0x33   : > { %v4212_v5 = vld [vmem:[%s5154_s30 + $0x170] sm:$0xf]  ;;  %v4559_v6 = vld [vmem:[%s5154_s30 + $0x174] sm:$0xf0]  ;;  %v4149_v7 = vor.u32 %v4543_v4, %v4148_v2  ;;  %v4525_v13 = vld [vmem:[%s5154_s30 + $0x64] sm:$0xf0] }
  0x34   : > { %v4213_v8 = vor.u32 %v4559_v6, %v4212_v5  ;;  %v4276_v9 = vld [vmem:[%s5154_s30 + $0x1f0] sm:$0xf]  ;;  %v4575_v10 = vld [vmem:[%s5154_s30 + $0x1f4] sm:$0xf0]  ;;  %1580 = vmatpush.bf16.msra.mxu0 %v4085_v3  ;;  %v4140_v14 = vld [vmem:[%s5154_s30 + $0xe0] sm:$0xf]  ;;  %v4077_v16 = vor.u32 %v4525_v13, %v4076_v11 }
  0x35   : > { %v4277_v12 = vor.u32 %v4575_v10, %v4276_v9  ;;  %v4541_v15 = vld [vmem:[%s5154_s30 + $0xe4] sm:$0xf0]  ;;  %1669 = vmatpush.bf16.msra.mxu1 %v4149_v7  ;;  %v4204_v18 = vld [vmem:[%s5154_s30 + $0x160] sm:$0xf]  ;;  %v4068_v23 = vld [vmem:[%s5154_s30 + $0x50] sm:$0xf] }
  0x36   : > { %1758 = vmatpush.bf16.msra.mxu2 %v4213_v8  ;;  %v4141_v17 = vor.u32 %v4541_v15, %v4140_v14  ;;  %v4557_v19 = vld [vmem:[%s5154_s30 + $0x164] sm:$0xf0]  ;;  %v4268_v20 = vld [vmem:[%s5154_s30 + $0x1e0] sm:$0xf]  ;;  %v4523_v24 = vld [vmem:[%s5154_s30 + $0x54] sm:$0xf0] }
  0x37   : > { %1847 = vmatpush.bf16.msra.mxu3 %v4277_v12  ;;  %v4205_v21 = vor.u32 %v4557_v19, %v4204_v18  ;;  %v4573_v22 = vld [vmem:[%s5154_s30 + $0x1e4] sm:$0xf0]  ;;  %v4132_v26 = vld [vmem:[%s5154_s30 + $0xd0] sm:$0xf]  ;;  %v4539_v27 = vld [vmem:[%s5154_s30 + $0xd4] sm:$0xf0]  ;;  %v4069_v29 = vor.u32 %v4523_v24, %v4068_v23 }
  0x38   : > { %v4269_v25 = vor.u32 %v4573_v22, %v4268_v20  ;;  %v4196_v28 = vld [vmem:[%s5154_s30 + $0x150] sm:$0xf]  ;;  %1581 = vmatpush.bf16.msra.mxu0 %v4077_v16  ;;  %v4555_v30 = vld [vmem:[%s5154_s30 + $0x154] sm:$0xf0]  ;;  %v4133_v33 = vor.u32 %v4539_v27, %v4132_v26  ;;  %v4060_v35 = vld [vmem:[%s5154_s30 + $0x40] sm:$0xf] }
  0x39   : > { %v4260_v31 = vld [vmem:[%s5154_s30 + $0x1d0] sm:$0xf]  ;;  %v4571_v32 = vld [vmem:[%s5154_s30 + $0x1d4] sm:$0xf0]  ;;  %1670 = vmatpush.bf16.msra.mxu1 %v4141_v17  ;;  %v4197_v34 = vor.u32 %v4555_v30, %v4196_v28  ;;  %v4521_v36 = vld [vmem:[%s5154_s30 + $0x44] sm:$0xf0] }
  0x3a   : > { %1759 = vmatpush.bf16.msra.mxu2 %v4205_v21  ;;  %v4124_v37 = vld [vmem:[%s5154_s30 + $0xc0] sm:$0xf]  ;;  %v4261_v38 = vor.u32 %v4571_v32, %v4260_v31  ;;  %v4537_v39 = vld [vmem:[%s5154_s30 + $0xc4] sm:$0xf0]  ;;  %v4061_v44 = vor.u32 %v4521_v36, %v4060_v35  ;;  %v4052_v47 = vld [vmem:[%s5154_s30 + $0x30] sm:$0xf] }
  0x3b   : > { %1848 = vmatpush.bf16.msra.mxu3 %v4269_v25  ;;  %v4188_v40 = vld [vmem:[%s5154_s30 + $0x140] sm:$0xf]  ;;  %v4553_v41 = vld [vmem:[%s5154_s30 + $0x144] sm:$0xf0]  ;;  %v4125_v45 = vor.u32 %v4537_v39, %v4124_v37  ;;  %v4519_v48 = vld [vmem:[%s5154_s30 + $0x34] sm:$0xf0] }
  0x3c   : > { %v4252_v42 = vld [vmem:[%s5154_s30 + $0x1c0] sm:$0xf]  ;;  %v4569_v43 = vld [vmem:[%s5154_s30 + $0x1c4] sm:$0xf0]  ;;  %1582 = vmatpush.bf16.msra.mxu0 %v4069_v29  ;;  %v4189_v46 = vor.u32 %v4553_v41, %v4188_v40  ;;  %v4116_v49 = vld [vmem:[%s5154_s30 + $0xb0] sm:$0xf]  ;;  %v4053_v56 = vor.u32 %v4519_v48, %v4052_v47 }
  0x3d   : > { %1671 = vmatpush.bf16.msra.mxu1 %v4133_v33  ;;  %v4253_v50 = vor.u32 %v4569_v43, %v4252_v42  ;;  %v4535_v51 = vld [vmem:[%s5154_s30 + $0xb4] sm:$0xf0]  ;;  %v4180_v52 = vld [vmem:[%s5154_s30 + $0x130] sm:$0xf]  ;;  %v4044_v59 = vld [vmem:[%s5154_s30 + $0x20] sm:$0xf] }
  0x3e   : > { %1760 = vmatpush.bf16.msra.mxu2 %v4197_v34  ;;  %v4551_v53 = vld [vmem:[%s5154_s30 + $0x134] sm:$0xf0]  ;;  %v4244_v54 = vld [vmem:[%s5154_s30 + $0x1b0] sm:$0xf]  ;;  %v4117_v57 = vor.u32 %v4535_v51, %v4116_v49  ;;  %v4517_v60 = vld [vmem:[%s5154_s30 + $0x24] sm:$0xf0] }
  0x3f   : > { %1849 = vmatpush.bf16.msra.mxu3 %v4261_v38  ;;  %v4567_v55 = vld [vmem:[%s5154_s30 + $0x1b4] sm:$0xf0]  ;;  %v4181_v58 = vor.u32 %v4551_v53, %v4180_v52  ;;  %v4108_v61 = vld [vmem:[%s5154_s30 + $0xa0] sm:$0xf]  ;;  %v4533_v63 = vld [vmem:[%s5154_s30 + $0xa4] sm:$0xf0]  ;;  %v4045_v4 = vor.u32 %v4517_v60, %v4044_v59 }
  0x40   : > { %1583 = vmatpush.bf16.msra.mxu0 %v4061_v44  ;;  %v4245_v62 = vor.u32 %v4567_v55, %v4244_v54  ;;  %v4172_v0 = vld [vmem:[%s5154_s30 + $0x120] sm:$0xf]  ;;  %v4549_v1 = vld [vmem:[%s5154_s30 + $0x124] sm:$0xf0]  ;;  %v4109_v5 = vor.u32 %v4533_v63, %v4108_v61  ;;  %v4036_v7 = vld [vmem:[%s5154_s30 + $0x10] sm:$0xf] }
  0x41   : > { %1672 = vmatpush.bf16.msra.mxu1 %v4125_v45  ;;  %v4236_v2 = vld [vmem:[%s5154_s30 + $0x1a0] sm:$0xf]  ;;  %v4565_v3 = vld [vmem:[%s5154_s30 + $0x1a4] sm:$0xf0]  ;;  %v4173_v6 = vor.u32 %v4549_v1, %v4172_v0  ;;  %v4515_v8 = vld [vmem:[%s5154_s30 + $0x14] sm:$0xf0] }
  0x42   : > { %1761 = vmatpush.bf16.msra.mxu2 %v4189_v46  ;;  %v4100_v9 = vld [vmem:[%s5154_s30 + $0x90] sm:$0xf]  ;;  %v4237_v10 = vor.u32 %v4565_v3, %v4236_v2  ;;  %v4531_v11 = vld [vmem:[%s5154_s30 + $0x94] sm:$0xf0]  ;;  %v4028_v16 = vld [vmem:[%s5154_s30] sm:$0xf]  ;;  %v4037_v17 = vor.u32 %v4515_v8, %v4036_v7 }
  0x43   : > { %1850 = vmatpush.bf16.msra.mxu3 %v4253_v50  ;;  %v4164_v12 = vld [vmem:[%s5154_s30 + $0x110] sm:$0xf]  ;;  %v4547_v13 = vld [vmem:[%s5154_s30 + $0x114] sm:$0xf0]  ;;  %v4513_v18 = vld [vmem:[%s5154_s30 + $0x4] sm:$0xf0]  ;;  %v4101_v21 = vor.u32 %v4531_v11, %v4100_v9 }
  0x44   : > { %1584 = vmatpush.bf16.msra.mxu0 %v4053_v56  ;;  %v4228_v14 = vld [vmem:[%s5154_s30 + $0x190] sm:$0xf]  ;;  %v4563_v15 = vld [vmem:[%s5154_s30 + $0x194] sm:$0xf0]  ;;  %v4092_v19 = vld [vmem:[%s5154_s30 + $0x80] sm:$0xf]  ;;  %v4165_v22 = vor.u32 %v4547_v13, %v4164_v12  ;;  %v4029_v33 = vor.u32 %v4513_v18, %v4028_v16 }
  0x45   : > { %1673 = vmatpush.bf16.msra.mxu1 %v4117_v57  ;;  %v4529_v20 = vld [vmem:[%s5154_s30 + $0x84] sm:$0xf0]  ;;  %v4156_v23 = vld [vmem:[%s5154_s30 + $0x100] sm:$0xf]  ;;  %v4229_v26 = vor.u32 %v4563_v15, %v4228_v14  ;;  %v4419_v29 = vld [vmem:[#allocation3 + $0x14] sm:$0xf0] }
  0x46   : > { %1762 = vmatpush.bf16.msra.mxu2 %v4181_v58  ;;  %v4545_v24 = vld [vmem:[%s5154_s30 + $0x104] sm:$0xf0]  ;;  %v4220_v25 = vld [vmem:[%s5154_s30 + $0x180] sm:$0xf]  ;;  %v4416_v30 = vld [vmem:[#allocation3 + $0x4] sm:$0xf]  ;;  %v4093_v37 = vor.u32 %v4529_v20, %v4092_v19 }
  0x47   : > { %1851 = vmatpush.bf16.msra.mxu3 %v4245_v62  ;;  %v4561_v27 = vld [vmem:[%s5154_s30 + $0x184] sm:$0xf0]  ;;  %v3644_v28 = vld [vmem:[#allocation3] sm:$0xf]  ;;  %v4526_v31 = vld [vmem:[%s5154_s30 + $0x74] sm:$0xf]  ;;  %v4157_v38 = vor.u32 %v4545_v24, %v4156_v23 }
  0x48   : > { %1585 = vmatpush.bf16.msra.mxu0 %v4045_v4  ;;  %v4086_v32 = vld [vmem:[%s5154_s30 + $0x78] sm:$0xf0]  ;;  %v4542_v35 = vld [vmem:[%s5154_s30 + $0xf4] sm:$0xf]  ;;  %v3652_v39 = vld [vmem:[#allocation3 + $0x8] sm:$0xf]  ;;  %v4221_v42 = vor.u32 %v4561_v27, %v4220_v25  ;;  %v5230_v47 = vor.u32 %v4419_v29, %v3644_v28 }
  0x49   : > { %1674 = vmatpush.bf16.msra.mxu1 %v4109_v5  ;;  %v3646_v34 = vld [vmem:[#allocation3 + $0x18] sm:$0xf0]  ;;  %v4420_v40 = vld [vmem:[#allocation3 + $0x1c] sm:$0xf0]  ;;  %v4417_v41 = vld [vmem:[#allocation3 + $0xc] sm:$0xf]  ;;  %v4089_v44 = vor.u32 %v4526_v31, %v4086_v32 }
  0x4a   : > { %1763 = vmatpush.bf16.msra.mxu2 %v4173_v6  ;;  %v4150_v36 = vld [vmem:[%s5154_s30 + $0xf8] sm:$0xf0]  ;;  %v3654_v43 = vld [vmem:[#allocation3 + $0x20] sm:$0xf0]  ;;  %v4340_v45 = vld [vmem:[%s5154_s30 + $0x270] sm:$0xf]  ;;  %v5234_v51 = vor.u32 %v4416_v30, %v3646_v34  ;;  %v5236_v52 = vor.u32 %v4420_v40, %v3652_v39 }
  0x4b   : > { %1852 = vmatpush.bf16.msra.mxu3 %v4237_v10  ;;  %v4591_v46 = vld [vmem:[%s5154_s30 + $0x274] sm:$0xf0]  ;;  %v4153_v48 = vor.u32 %v4542_v35, %v4150_v36  ;;  %v4404_v49 = vld [vmem:[%s5154_s30 + $0x2f0] sm:$0xf]  ;;  %v5238_v53 = vor.u32 %v4417_v41, %v3654_v43  ;;  %v4524_v56 = vld [vmem:[%s5154_s30 + $0x64] sm:$0xf] }
  0x4c   : > { %1586 = vmatpush.bf16.msra.mxu0 %v4037_v17  ;;  %v4607_v50 = vld [vmem:[%s5154_s30 + $0x2f4] sm:$0xf0]  ;;  %6662 = vst [vmem:[#allocation13_spill] sm:$0xff] %v5236_v52  ;;  %v4341_v54 = vor.u32 %v4591_v46, %v4340_v45  ;;  %v4078_v57 = vld [vmem:[%s5154_s30 + $0x68] sm:$0xf0]  ;;  %s254_s6 = scalar_lea.vmem [#allocation8], %s3640_s1 }
  0x4d   : > { %1675 = vmatpush.bf16.msra.mxu1 %v4101_v21  ;;  %6663 = vst [vmem:[#allocation14_spill] sm:$0xff] %v5238_v53  ;;  %v4405_v55 = vor.u32 %v4607_v50, %v4404_v49  ;;  %v4332_v58 = vld [vmem:[%s5154_s30 + $0x260] sm:$0xf]  ;;  %v4081_v59 = vor.u32 %v4524_v56, %v4078_v57  ;;  %v4589_v60 = vld [vmem:[%s5154_s30 + $0x264] sm:$0xf0]  ;;  %s3641_s10 = sshll.u32 %s5151_s28, 8 }
  0x4e   : > { %1764 = vmatpush.bf16.msra.mxu2 %v4165_v22  ;;  %v4540_v61 = vld [vmem:[%s5154_s30 + $0xe4] sm:$0xf]  ;;  %v4142_v62 = vld [vmem:[%s5154_s30 + $0xe8] sm:$0xf0]  ;;  %v4333_v63 = vor.u32 %v4589_v60, %v4332_v58  ;;  %v4396_v1 = vld [vmem:[%s5154_s30 + $0x2e0] sm:$0xf] }
  0x4f   : > { %1853 = vmatpush.bf16.msra.mxu3 %v4229_v26  ;;  %v4145_v0 = vor.u32 %v4540_v61, %v4142_v62  ;;  %v4605_v2 = vld [vmem:[%s5154_s30 + $0x2e4] sm:$0xf0]  ;;  %v3668_v4 = vld [vmem:[#allocation3 + $0x30] sm:$0xf]  ;;  %v4422_v6 = vld [vmem:[#allocation3 + $0x34] sm:$0xf] }
  0x50   : > { %1587 = vmatpush.bf16.msra.mxu0 %v4029_v33  ;;  %v4397_v3 = vor.u32 %v4605_v2, %v4396_v1  ;;  %v4425_v5 = vld [vmem:[#allocation3 + $0x44] sm:$0xf0]  ;;  %v3670_v7 = vld [vmem:[#allocation3 + $0x48] sm:$0xf0]  ;;  %v3676_v8 = vld [vmem:[#allocation3 + $0x38] sm:$0xf] }
  0x51   : > { %1676 = vmatpush.bf16.msra.mxu1 %v4093_v37  ;;  %v4426_v9 = vld [vmem:[#allocation3 + $0x4c] sm:$0xf0]  ;;  %v4423_v10 = vld [vmem:[#allocation3 + $0x3c] sm:$0xf]  ;;  %v3678_v11 = vld [vmem:[#allocation3 + $0x50] sm:$0xf0]  ;;  %v5252_v12 = vor.u32 %v4425_v5, %v3668_v4  ;;  %v5254_v13 = vor.u32 %v4422_v6, %v3670_v7 }
  0x52   : > { %1765 = vmatpush.bf16.msra.mxu2 %v4157_v38  ;;  %v5256_v14 = vor.u32 %v4426_v9, %v3676_v8  ;;  %v5258_v15 = vor.u32 %v4423_v10, %v3678_v11  ;;  %v3692_v16 = vld [vmem:[#allocation3 + $0x60] sm:$0xf]  ;;  %v4431_v17 = vld [vmem:[#allocation3 + $0x74] sm:$0xf0]  ;;  %v4428_v18 = vld [vmem:[#allocation3 + $0x64] sm:$0xf] }
  0x53   : > { %1854 = vmatpush.bf16.msra.mxu3 %v4221_v42  ;;  %1588 = vmatmul.bf16.vlgmr.msra.gmra.mxu0 %v5230_v47  ;;  %v3694_v19 = vld [vmem:[#allocation3 + $0x78] sm:$0xf0]  ;;  %v3700_v20 = vld [vmem:[#allocation3 + $0x68] sm:$0xf]  ;;  %v4432_v21 = vld [vmem:[#allocation3 + $0x7c] sm:$0xf0]  ;;  %v5264_v24 = vor.u32 %v4431_v17, %v3692_v16 }
  0x54   : > { %1677 = vmatmul.bf16.vlgmr.msra.gmra.mxu1 %v5234_v51  ;;  %1936 = vmatpush.bf16.msrb.mxu0 %v4341_v54  ;;  %6664 = vst [vmem:[#allocation15_spill] sm:$0xff] %v5256_v14  ;;  %v4429_v22 = vld [vmem:[#allocation3 + $0x6c] sm:$0xf]  ;;  %v3702_v23 = vld [vmem:[#allocation3 + $0x80] sm:$0xf0]  ;;  %v5266_v25 = vor.u32 %v4428_v18, %v3694_v19  ;;  %v5268_v26 = vor.u32 %v4432_v21, %v3700_v20  ;;  %s6011_s19 = scalar_lea.vmem [#allocation9], %s3641_s10 }
  0x55   : > { %1766 = vmatmul.bf16.vlgmr.msra.gmra.mxu2 %v5236_v52  ;;  %2025 = vmatpush.bf16.msrb.mxu1 %v4405_v55  ;;  %6665 = vst [vmem:[#allocation16_spill] sm:$0xff] %v5258_v15  ;;  %v5270_v27 = vor.u32 %v4429_v22, %v3702_v23  ;;  %v4522_v28 = vld [vmem:[%s5154_s30 + $0x54] sm:$0xf]  ;;  %v4070_v29 = vld [vmem:[%s5154_s30 + $0x58] sm:$0xf0]  ;;  %s4608_s27 = sshll.u32 %s4993_s15, 3 }
  0x56   : > { %2114 = vmatpush.bf16.msrb.mxu2 %v4089_v44  ;;  %1855 = vmatmul.bf16.vlgmr.msra.gmra.mxu3 %v5238_v53  ;;  %6666 = vst [vmem:[#allocation17_spill] sm:$0xff] %v5268_v26  ;;  %v4324_v30 = vld [vmem:[%s5154_s30 + $0x250] sm:$0xf]  ;;  %v4073_v31 = vor.u32 %v4522_v28, %v4070_v29  ;;  %v4587_v32 = vld [vmem:[%s5154_s30 + $0x254] sm:$0xf0]  ;;  %s3498_s5 = scalar_lea.hbm %s6597_s3, %s4608_s27  ;;  %s3499_s7 = sshll.u32 %s6011_s19, 4  ;;  %s3500_s7 = int_to_ptr.vmem [resolvable:$true] %s3499_s7 }
  0x57   : > { %2203 = vmatpush.bf16.msrb.mxu3 %v4153_v48  ;;  %6667 = vst [vmem:[#allocation18_spill] sm:$0xff] %v5270_v27  ;;  %v4538_v33 = vld [vmem:[%s5154_s30 + $0xd4] sm:$0xf]  ;;  %v4134_v34 = vld [vmem:[%s5154_s30 + $0xd8] sm:$0xf0]  ;;  %v4325_v35 = vor.u32 %v4587_v32, %v4324_v30  ;;  %s3501_s8 = sshll.u32 %s3498_s5, 4  ;;  %s3502_s8 = int_to_ptr.hbm [resolvable:$true] %s3501_s8 }
  0x58   : > { %1937 = vmatpush.bf16.msrb.mxu0 %v4333_v63  ;;  %v4137_v36 = vor.u32 %v4538_v33, %v4134_v34  ;;  %v4388_v37 = vld [vmem:[%s5154_s30 + $0x2d0] sm:$0xf]  ;;  %v4603_v38 = vld [vmem:[%s5154_s30 + $0x2d4] sm:$0xf0]  ;;  %v4437_v41 = vld [vmem:[#allocation3 + $0xa4] sm:$0xf0] }
  0x59   : > { %2026 = vmatpush.bf16.msrb.mxu1 %v4397_v3  ;;  %v4389_v39 = vor.u32 %v4603_v38, %v4388_v37  ;;  %v3716_v40 = vld [vmem:[#allocation3 + $0x90] sm:$0xf]  ;;  %v4434_v42 = vld [vmem:[#allocation3 + $0x94] sm:$0xf]  ;;  %v3718_v43 = vld [vmem:[#allocation3 + $0xa8] sm:$0xf0] }
  0x5a   : > { %2115 = vmatpush.bf16.msrb.mxu2 %v4081_v59  ;;  %v3724_v44 = vld [vmem:[#allocation3 + $0x98] sm:$0xf]  ;;  %v4438_v45 = vld [vmem:[#allocation3 + $0xac] sm:$0xf0]  ;;  %v4435_v46 = vld [vmem:[#allocation3 + $0x9c] sm:$0xf]  ;;  %v5284_v49 = vor.u32 %v4437_v41, %v3716_v40  ;;  %v5286_v50 = vor.u32 %v4434_v42, %v3718_v43 }
  0x5b   : > { %2204 = vmatpush.bf16.msrb.mxu3 %v4145_v0  ;;  %v3726_v48 = vld [vmem:[#allocation3 + $0xb0] sm:$0xf0]  ;;  %v5288_v54 = vor.u32 %v4438_v45, %v3724_v44  ;;  %v3740_v56 = vld [vmem:[#allocation3 + $0xc0] sm:$0xf]  ;;  %v4443_v57 = vld [vmem:[#allocation3 + $0xd4] sm:$0xf0] }
  0x5c   : > { %1938 = vmatpush.bf16.msrb.mxu0 %v4325_v35  ;;  %v5290_v55 = vor.u32 %v4435_v46, %v3726_v48  ;;  %v4440_v58 = vld [vmem:[#allocation3 + $0xc4] sm:$0xf]  ;;  %v3742_v59 = vld [vmem:[#allocation3 + $0xd8] sm:$0xf0]  ;;  %v3748_v60 = vld [vmem:[#allocation3 + $0xc8] sm:$0xf]  ;;  %v5296_v0 = vor.u32 %v4443_v57, %v3740_v56 }
  0x5d   : > { %2027 = vmatpush.bf16.msrb.mxu1 %v4389_v39  ;;  %6668 = vst [vmem:[#allocation19_spill] sm:$0xff] %v5288_v54  ;;  %v4444_v61 = vld [vmem:[#allocation3 + $0xdc] sm:$0xf0]  ;;  %v4441_v62 = vld [vmem:[#allocation3 + $0xcc] sm:$0xf]  ;;  %v5298_v1 = vor.u32 %v4440_v58, %v3742_v59  ;;  %s3484_s15 = scalar_lea.sflag [#allocation5], %s5151_s28 }
  0x5e   : > { %2116 = vmatpush.bf16.msrb.mxu2 %v4073_v31  ;;  %6669 = vst [vmem:[#allocation20_spill] sm:$0xff] %v5290_v55  ;;  %v3750_v63 = vld [vmem:[#allocation3 + $0xe0] sm:$0xf0]  ;;  %v5300_v2 = vor.u32 %v4444_v61, %v3748_v60  ;;  %v4062_v5 = vld [vmem:[%s5154_s30 + $0x48] sm:$0xf0]  ;;  %s4929_s9 = sshra.s32 %s3502_s8, 4  ;;  %s4930_s9 = int_to_ptr.hbm [resolvable:$true] %s4929_s9 }
  0x5f   : > { %2205 = vmatpush.bf16.msrb.mxu3 %v4137_v36  ;;  %v5302_v3 = vor.u32 %v4441_v62, %v3750_v63  ;;  %v4520_v4 = vld [vmem:[%s5154_s30 + $0x44] sm:$0xf]  ;;  %v4316_v6 = vld [vmem:[%s5154_s30 + $0x240] sm:$0xf]  ;;  %v4585_v8 = vld [vmem:[%s5154_s30 + $0x244] sm:$0xf0]  ;;  %p4936_p10 = scmp.lt.s32.totalorder %s4930_s9, %s6597_s3 }
  0x60   : > { %6670 = vst [vmem:[#allocation21_spill] sm:$0xff] %v5300_v2  ;;  %v4065_v7 = vor.u32 %v4520_v4, %v4062_v5  ;;  %v4536_v9 = vld [vmem:[%s5154_s30 + $0xc4] sm:$0xf]  ;;  %v4126_v10 = vld [vmem:[%s5154_s30 + $0xc8] sm:$0xf0]  ;;  %v4317_v11 = vor.u32 %v4585_v8, %v4316_v6  ;;  %s4931_s11 = scalar_lea.hbm %s4930_s9, 256 }
  0x61   : > { %6671 = vst [vmem:[#allocation22_spill] sm:$0xff] %v5302_v3  ;;  %v4129_v16 = vor.u32 %v4536_v9, %v4126_v10  ;;  %v4380_v17 = vld [vmem:[%s5154_s30 + $0x2c0] sm:$0xf]  ;;  %v4601_v18 = vld [vmem:[%s5154_s30 + $0x2c4] sm:$0xf0]  ;;  %p4932_p7 = scmp.ne.s32.totalorder %s4930_s9, %s4931_s11  ;;  %s4935_s22 = scalar_lea.hbm %s6597_s3, 512 }
  0x62   : > { %2117 = vmatpush.bf16.msrb.mxu2 %v4065_v7  ;;  %v4381_v19 = vor.u32 %v4601_v18, %v4380_v17  ;;  %1939 = vmatpush.bf16.msrb.mxu0 %v4317_v11  ;;  %v3764_v20 = vld [vmem:[#allocation3 + $0xf0] sm:$0xf]  ;;  %v4449_v21 = vld [vmem:[#allocation3 + $0x104] sm:$0xf0]  ;;  %v4446_v22 = vld [vmem:[#allocation3 + $0xf4] sm:$0xf]  ;;  %p4937_p11 = scmp.lt.s32.totalorder %s4935_s22, %s4931_s11 }
  0x63   : > { %1593 = vmatmul.bf16.gmra.mxu0 %v5252_v12  ;;  %2206 = vmatpush.bf16.msrb.mxu3 %v4129_v16  ;;  %v3766_v23 = vld [vmem:[#allocation3 + $0x108] sm:$0xf0]  ;;  %v3772_v28 = vld [vmem:[#allocation3 + $0xf8] sm:$0xf]  ;;  %v4450_v29 = vld [vmem:[#allocation3 + $0x10c] sm:$0xf0]  ;;  %v5316_v32 = vor.u32 %v4449_v21, %v3764_v20  ;;  %p4933_p8 = pnand %p4932_p7, %p5114_p0 }
  0x64   : > { %1682 = vmatmul.bf16.gmra.mxu1 %v5254_v13  ;;  %v4447_v30 = vld [vmem:[#allocation3 + $0xfc] sm:$0xf]  ;;  %v3774_v31 = vld [vmem:[#allocation3 + $0x110] sm:$0xf0]  ;;  %v5318_v33 = vor.u32 %v4446_v22, %v3766_v23  ;;  %v5320_v34 = vor.u32 %v4450_v29, %v3772_v28  ;;  %v3788_v36 = vld [vmem:[#allocation3 + $0x120] sm:$0xf]  ;;  %p4938_p12 = por %p4937_p11, %p4936_p10 }
  0x65   : > { %1771 = vmatmul.bf16.gmra.mxu2 %v5256_v14  ;;  %2028 = vmatpush.bf16.msrb.mxu1 %v4381_v19  ;;  %v5322_v35 = vor.u32 %v4447_v30, %v3774_v31  ;;  %v4455_v37 = vld [vmem:[#allocation3 + $0x134] sm:$0xf0]  ;;  %v4452_v38 = vld [vmem:[#allocation3 + $0x124] sm:$0xf]  ;;  %v3790_v39 = vld [vmem:[#allocation3 + $0x138] sm:$0xf0]  ;;  %p4934_p9 = pneg %p4933_p8 }
  0x66   : > { %1860 = vmatmul.bf16.gmra.mxu3 %v5258_v15  ;;  %6672 = vst [vmem:[#allocation23_spill] sm:$0xff] %v5320_v34  ;;  %v3796_v40 = vld [vmem:[#allocation3 + $0x128] sm:$0xf]  ;;  %v4456_v41 = vld [vmem:[#allocation3 + $0x13c] sm:$0xf0]  ;;  %v5328_v44 = vor.u32 %v4455_v37, %v3788_v36  ;;  %v5330_v45 = vor.u32 %v4452_v38, %v3790_v39 }
  0x67   : > { %6673 = vst [vmem:[#allocation24_spill] sm:$0xff] %v5322_v35  ;;  %v4453_v42 = vld [vmem:[#allocation3 + $0x12c] sm:$0xf]  ;;  %v3798_v43 = vld [vmem:[#allocation3 + $0x140] sm:$0xf0]  ;;  %v5332_v46 = vor.u32 %v4456_v41, %v3796_v40  ;;  %p4939_p13 = pnand %p4938_p12, %p4934_p9 }
  0x68   : > { %v5334_v48 = vor.u32 %v4453_v42, %v3798_v43  ;;  %v4518_v56 = vld [vmem:[%s5154_s30 + $0x34] sm:$0xf]  ;;  %v4054_v57 = vld [vmem:[%s5154_s30 + $0x38] sm:$0xf0]  ;;  %v4308_v58 = vld [vmem:[%s5154_s30 + $0x230] sm:$0xf] }
  0x69   : > { %6674 = vst [vmem:[#allocation25_spill] sm:$0xff] %v5332_v46  ;;  %v4057_v59 = vor.u32 %v4518_v56, %v4054_v57  ;;  %v4583_v60 = vld [vmem:[%s5154_s30 + $0x234] sm:$0xf0]  ;;  %v4534_v61 = vld [vmem:[%s5154_s30 + $0xb4] sm:$0xf] }
  0x6a   : > { %6675 = vst [vmem:[#allocation26_spill] sm:$0xff] %v5334_v48  ;;  %v4118_v62 = vld [vmem:[%s5154_s30 + $0xb8] sm:$0xf0]  ;;  %v4309_v63 = vor.u32 %v4583_v60, %v4308_v58  ;;  %v4372_v5 = vld [vmem:[%s5154_s30 + $0x2b0] sm:$0xf] }
  0x6b   : > { %v4121_v4 = vor.u32 %v4534_v61, %v4118_v62  ;;  %2118 = vmatpush.bf16.msrb.mxu2 %v4057_v59  ;;  %v4599_v6 = vld [vmem:[%s5154_s30 + $0x2b4] sm:$0xf0]  ;;  %v3812_v8 = vld [vmem:[#allocation3 + $0x150] sm:$0xf]  ;;  %v4461_v9 = vld [vmem:[#allocation3 + $0x164] sm:$0xf0] }
  0x6c   : > { %1940 = vmatpush.bf16.msrb.mxu0 %v4309_v63  ;;  %v4373_v7 = vor.u32 %v4599_v6, %v4372_v5  ;;  %v4458_v10 = vld [vmem:[#allocation3 + $0x154] sm:$0xf]  ;;  %v3814_v11 = vld [vmem:[#allocation3 + $0x168] sm:$0xf0]  ;;  %v3820_v16 = vld [vmem:[#allocation3 + $0x158] sm:$0xf]  ;;  %v5348_v20 = vor.u32 %v4461_v9, %v3812_v8 }
  0x6d   : > { %2207 = vmatpush.bf16.msrb.mxu3 %v4121_v4  ;;  %v4462_v17 = vld [vmem:[#allocation3 + $0x16c] sm:$0xf0]  ;;  %v4459_v18 = vld [vmem:[#allocation3 + $0x15c] sm:$0xf]  ;;  %v3822_v19 = vld [vmem:[#allocation3 + $0x170] sm:$0xf0]  ;;  %v5350_v21 = vor.u32 %v4458_v10, %v3814_v11 }
  0x6e   : > { %2029 = vmatpush.bf16.msrb.mxu1 %v4373_v7  ;;  %v5352_v22 = vor.u32 %v4462_v17, %v3820_v16  ;;  %v5354_v23 = vor.u32 %v4459_v18, %v3822_v19  ;;  %v3836_v28 = vld [vmem:[#allocation3 + $0x180] sm:$0xf]  ;;  %v4467_v29 = vld [vmem:[#allocation3 + $0x194] sm:$0xf0]  ;;  %v4464_v30 = vld [vmem:[#allocation3 + $0x184] sm:$0xf] }
  0x6f   : > { %v3838_v31 = vld [vmem:[#allocation3 + $0x198] sm:$0xf0]  ;;  %v3844_v36 = vld [vmem:[#allocation3 + $0x188] sm:$0xf]  ;;  %v4468_v37 = vld [vmem:[#allocation3 + $0x19c] sm:$0xf0]  ;;  %v5360_v40 = vor.u32 %v4467_v29, %v3836_v28 }
  0x70   : > { %6676 = vst [vmem:[#allocation27_spill] sm:$0xff] %v5352_v22  ;;  %v4465_v38 = vld [vmem:[#allocation3 + $0x18c] sm:$0xf]  ;;  %v3846_v39 = vld [vmem:[#allocation3 + $0x1a0] sm:$0xf0]  ;;  %v5362_v42 = vor.u32 %v4464_v30, %v3838_v31  ;;  %v5364_v43 = vor.u32 %v4468_v37, %v3844_v36 }
  0x71   : > { %6677 = vst [vmem:[#allocation28_spill] sm:$0xff] %v5354_v23  ;;  %v5366_v57 = vor.u32 %v4465_v38, %v3846_v39  ;;  %v4516_v59 = vld [vmem:[%s5154_s30 + $0x24] sm:$0xf]  ;;  %v4046_v60 = vld [vmem:[%s5154_s30 + $0x28] sm:$0xf0] }
  0x72   : > { %6678 = vst [vmem:[#allocation29_spill] sm:$0xff] %v5364_v43  ;;  %v4300_v61 = vld [vmem:[%s5154_s30 + $0x220] sm:$0xf]  ;;  %v4049_v62 = vor.u32 %v4516_v59, %v4046_v60  ;;  %v4581_v63 = vld [vmem:[%s5154_s30 + $0x224] sm:$0xf0] }
  0x73   : > { %1598 = vmatmul.bf16.gmra.mxu0 %v5264_v24  ;;  %6679 = vst [vmem:[#allocation30_spill] sm:$0xff] %v5366_v57  ;;  %v4532_v4 = vld [vmem:[%s5154_s30 + $0xa4] sm:$0xf]  ;;  %v4110_v5 = vld [vmem:[%s5154_s30 + $0xa8] sm:$0xf0]  ;;  %v4301_v7 = vor.u32 %v4581_v63, %v4300_v61 }
  0x74   : > { %1687 = vmatmul.bf16.gmra.mxu1 %v5266_v25  ;;  %v4113_v8 = vor.u32 %v4532_v4, %v4110_v5  ;;  %2119 = vmatpush.bf16.msrb.mxu2 %v4049_v62  ;;  %v4364_v19 = vld [vmem:[%s5154_s30 + $0x2a0] sm:$0xf]  ;;  %v4597_v28 = vld [vmem:[%s5154_s30 + $0x2a4] sm:$0xf0]  ;;  %v3860_v30 = vld [vmem:[#allocation3 + $0x1b0] sm:$0xf] }
  0x75   : > { %1776 = vmatmul.bf16.gmra.mxu2 %v5268_v26  ;;  %1941 = vmatpush.bf16.msrb.mxu0 %v4301_v7  ;;  %v4365_v29 = vor.u32 %v4597_v28, %v4364_v19  ;;  %v4473_v31 = vld [vmem:[#allocation3 + $0x1c4] sm:$0xf0]  ;;  %v4470_v36 = vld [vmem:[#allocation3 + $0x1b4] sm:$0xf]  ;;  %v3862_v37 = vld [vmem:[#allocation3 + $0x1c8] sm:$0xf0] }
  0x76   : > { %1865 = vmatmul.bf16.gmra.mxu3 %v5270_v27  ;;  %v3868_v38 = vld [vmem:[#allocation3 + $0x1b8] sm:$0xf]  ;;  %v4474_v39 = vld [vmem:[#allocation3 + $0x1cc] sm:$0xf0]  ;;  %v5382_v59 = vor.u32 %v4473_v31, %v3860_v30  ;;  %v5384_v63 = vor.u32 %v4470_v36, %v3862_v37  ;;  %v4476_v31 = vld [vmem:[#allocation3 + $0x1e4] sm:$0xf] }
  0x77   : > { %2208 = vmatpush.bf16.msrb.mxu3 %v4113_v8  ;;  %2030 = vmatpush.bf16.msrb.mxu1 %v4365_v29  ;;  %v5386_v4 = vor.u32 %v4474_v39, %v3868_v38  ;;  %v3884_v29 = vld [vmem:[#allocation3 + $0x1e0] sm:$0xf]  ;;  %v4479_v30 = vld [vmem:[#allocation3 + $0x1f4] sm:$0xf0]  ;;  %v3886_v36 = vld [vmem:[#allocation3 + $0x1f8] sm:$0xf0] }
  0x78   : > { %v3892_v37 = vld [vmem:[#allocation3 + $0x1e8] sm:$0xf]  ;;  %v4480_v38 = vld [vmem:[#allocation3 + $0x1fc] sm:$0xf0]  ;;  %v4477_v39 = vld [vmem:[#allocation3 + $0x1ec] sm:$0xf] }
  0x79   : > { %6680 = vst [vmem:[#allocation31_spill] sm:$0xff] %v5386_v4  ;;  %v4574_v26 = vld [vmem:[%s5154_s30 + $0x1f4] sm:$0xf]  ;;  %v4004_v15 = vld [vmem:[#allocation3 + $0x2d0] sm:$0xf] }
  0x7a   : > { %v4509_v14 = vld [vmem:[#allocation3 + $0x2e4] sm:$0xf0]  ;;  %v4506_v53 = vld [vmem:[#allocation3 + $0x2d4] sm:$0xf]  ;;  %v4006_v52 = vld [vmem:[#allocation3 + $0x2e8] sm:$0xf0] }
  0x83   : > { %1603 = vmatmul.bf16.gmra.mxu0 %v5284_v49 }
  0x84   : > { %1692 = vmatmul.bf16.gmra.mxu1 %v5286_v50 }
  0x85   : > { %1781 = vmatmul.bf16.gmra.mxu2 %v5288_v54 }
  0x86   : > { %1870 = vmatmul.bf16.gmra.mxu3 %v5290_v55  ;;  %v3964_v55 = vld [vmem:[#allocation3 + $0x278] sm:$0xf] }
  0x93   : > { %1608 = vmatmul.bf16.gmra.mxu0 %v5296_v0 }
  0x94   : > { %1697 = vmatmul.bf16.gmra.mxu1 %v5298_v1 }
  0x95   : > { %1786 = vmatmul.bf16.gmra.mxu2 %v5300_v2  ;;  %v3958_v2 = vld [vmem:[#allocation3 + $0x288] sm:$0xf0] }
  0x96   : > { %1875 = vmatmul.bf16.gmra.mxu3 %v5302_v3  ;;  %v4494_v3 = vld [vmem:[#allocation3 + $0x274] sm:$0xf] }
  0xa3   : > { %1613 = vmatmul.bf16.gmra.mxu0 %v5316_v32 }
  0xa4   : > { %1702 = vmatmul.bf16.gmra.mxu1 %v5318_v33 }
  0xa5   : > { %1791 = vmatmul.bf16.gmra.mxu2 %v5320_v34  ;;  %v4497_v34 = vld [vmem:[#allocation3 + $0x284] sm:$0xf0] }
  0xa6   : > { %1880 = vmatmul.bf16.gmra.mxu3 %v5322_v35  ;;  %v3956_v35 = vld [vmem:[#allocation3 + $0x270] sm:$0xf] }
  0xb3   : > { %1618 = vmatmul.bf16.gmra.mxu0 %v5328_v44 }
  0xb4   : > { %1707 = vmatmul.bf16.gmra.mxu1 %v5330_v45 }
  0xb5   : > { %1796 = vmatmul.bf16.gmra.mxu2 %v5332_v46  ;;  %v4348_v46 = vld [vmem:[%s5154_s30 + $0x280] sm:$0xf] }
  0xb6   : > { %1885 = vmatmul.bf16.gmra.mxu3 %v5334_v48 }
  0xc3   : > { %1623 = vmatmul.bf16.gmra.mxu0 %v5348_v20 }
  0xc4   : > { %1712 = vmatmul.bf16.gmra.mxu1 %v5350_v21 }
  0xc5   : > { %1801 = vmatmul.bf16.gmra.mxu2 %v5352_v22 }
  0xc6   : > { %1890 = vmatmul.bf16.gmra.mxu3 %v5354_v23  ;;  %v3916_v23 = vld [vmem:[#allocation3 + $0x218] sm:$0xf] }
  0xd0   : > { %v1589_v41 = vpop.f32.mrf.mxu0 }
  0xd1   : > { %v1678_v56 = vpop.f32.mrf.mxu1 }
  0xd2   : > { %v1679_v58 = vadd.f32 %v1678_v56, %v1589_v41  ;;  %v4471_v41 = vld [vmem:[#allocation3 + $0x1bc] sm:$0xf]  ;;  %v3870_v56 = vld [vmem:[#allocation3 + $0x1d0] sm:$0xf0] }
  0xd3   : > { %1628 = vmatmul.bf16.gmra.mxu0 %v5360_v40 }
  0xd4   : > { %1717 = vmatmul.bf16.gmra.mxu1 %v5362_v42 }
  0xd5   : > { %1806 = vmatmul.bf16.gmra.mxu2 %v5364_v43  ;;  %v3910_v43 = vld [vmem:[#allocation3 + $0x228] sm:$0xf0] }
  0xd6   : > { %1895 = vmatmul.bf16.gmra.mxu3 %v5366_v57  ;;  %v4482_v57 = vld [vmem:[#allocation3 + $0x214] sm:$0xf] }
  0xd8   : > { %v1767_v6 = vpop.f32.mrf.mxu2  ;;  %v1591_v11 = vpop.f32.mrf.mxu0 }
  0xd9   : > { %v1768_v9 = vadd.f32 %v1767_v6, %v1679_v58  ;;  %v1856_v10 = vpop.f32.mrf.mxu3  ;;  %v1680_v16 = vpop.f32.mrf.mxu1  ;;  %v5388_v6 = vor.u32 %v4471_v41, %v3870_v56  ;;  %v3894_v41 = vld [vmem:[#allocation3 + $0x200] sm:$0xf0] }
  0xda   : > { %v1681_v18 = vadd.f32 %v1680_v16, %v1591_v11 }
  0xdb   : > { %v5378_v17 = vadd.f32 %v1856_v10, %v1768_v9  ;;  %6681 = vst [vmem:[#allocation32_spill] sm:$0xff] %v5388_v6 }
  0xe0   : > { %v1769_v58 = vpop.f32.mrf.mxu2  ;;  %v1594_v62 = vpop.f32.mrf.mxu0 }
  0xe1   : > { %v1770_v60 = vadd.f32 %v1769_v58, %v1681_v18  ;;  %v1858_v61 = vpop.f32.mrf.mxu3  ;;  %v1683_v5 = vpop.f32.mrf.mxu1  ;;  %v5398_v58 = vor.u32 %v4479_v30, %v3884_v29  ;;  %v4292_v29 = vld [vmem:[%s5154_s30 + $0x210] sm:$0xf] }
  0xe2   : > { %v1684_v8 = vadd.f32 %v1683_v5, %v1594_v62  ;;  %v5400_v5 = vor.u32 %v4476_v31, %v3886_v36  ;;  %v4579_v31 = vld [vmem:[%s5154_s30 + $0x214] sm:$0xf0]  ;;  %v4530_v36 = vld [vmem:[%s5154_s30 + $0x94] sm:$0xf] }
  0xe3   : > { %v5390_v7 = vadd.f32 %v1858_v61, %v1770_v60  ;;  %1633 = vmatmul.bf16.gmra.mxu0 %v5382_v59 }
  0xe4   : > { %1722 = vmatmul.bf16.gmra.mxu1 %v5384_v63 }
  0xe5   : > { %1811 = vmatmul.bf16.gmra.mxu2 %v5386_v4  ;;  %v4485_v4 = vld [vmem:[#allocation3 + $0x224] sm:$0xf0] }
  0xe6   : > { %1900 = vmatmul.bf16.gmra.mxu3 %v5388_v6  ;;  %v3908_v6 = vld [vmem:[#allocation3 + $0x210] sm:$0xf] }
  0xe8   : > { %v1772_v9 = vpop.f32.mrf.mxu2  ;;  %v1596_v16 = vpop.f32.mrf.mxu0 }
  0xe9   : > { %v1773_v10 = vadd.f32 %v1772_v9, %v1684_v8  ;;  %v1861_v11 = vpop.f32.mrf.mxu3  ;;  %v1685_v18 = vpop.f32.mrf.mxu1  ;;  %v5402_v8 = vor.u32 %v4480_v38, %v3892_v37  ;;  %v4102_v37 = vld [vmem:[%s5154_s30 + $0x98] sm:$0xf0] }
  0xea   : > { %v1686_v28 = vadd.f32 %v1685_v18, %v1596_v16  ;;  %v4514_v18 = vld [vmem:[%s5154_s30 + $0x14] sm:$0xf] }
  0xeb   : > { %v5396_v19 = vadd.f32 %v1861_v11, %v1773_v10  ;;  %6682 = vst [vmem:[#allocation33_spill] sm:$0xff] %v5402_v8  ;;  %v5404_v10 = vor.u32 %v4477_v39, %v3894_v41  ;;  %v4293_v39 = vor.u32 %v4579_v31, %v4292_v29  ;;  %v4105_v41 = vor.u32 %v4530_v36, %v4102_v37  ;;  %v4486_v29 = vld [vmem:[#allocation3 + $0x22c] sm:$0xf0]  ;;  %v3918_v31 = vld [vmem:[#allocation3 + $0x230] sm:$0xf0] }
  0xed   : > { %6683 = vst [vmem:[#allocation34_spill] sm:$0xff] %v5404_v10  ;;  %1942 = vmatpush.bf16.msrb.mxu0 %v4293_v39  ;;  %2209 = vmatpush.bf16.msrb.mxu3 %v4105_v41  ;;  %v5424_v41 = vor.u32 %v4482_v57, %v3910_v43 }
  0xf0   : > { %v1774_v56 = vpop.f32.mrf.mxu2  ;;  %v1599_v62 = vpop.f32.mrf.mxu0 }
  0xf1   : > { %v1775_v60 = vadd.f32 %v1774_v56, %v1686_v28  ;;  %v1863_v61 = vpop.f32.mrf.mxu3  ;;  %v1688_v9 = vpop.f32.mrf.mxu1  ;;  %v4038_v28 = vld [vmem:[%s5154_s30 + $0x18] sm:$0xf0] }
  0xf2   : > { %v1689_v16 = vadd.f32 %v1688_v9, %v1599_v62  ;;  %v4041_v30 = vor.u32 %v4514_v18, %v4038_v28  ;;  %v4595_v18 = vld [vmem:[%s5154_s30 + $0x294] sm:$0xf0] }
  0xf3   : > { %v5406_v11 = vadd.f32 %v1863_v61, %v1775_v60  ;;  %1638 = vmatmul.bf16.gmra.mxu0 %v5398_v58 }
  0xf4   : > { %1727 = vmatmul.bf16.gmra.mxu1 %v5400_v5  ;;  %2120 = vmatpush.bf16.msrb.mxu2 %v4041_v30  ;;  %v5422_v30 = vor.u32 %v4485_v4, %v3908_v6 }
  0xf5   : > { %1816 = vmatmul.bf16.gmra.mxu2 %v5402_v8  ;;  %v4356_v8 = vld [vmem:[%s5154_s30 + $0x290] sm:$0xf] }
  0xf6   : > { %1905 = vmatmul.bf16.gmra.mxu3 %v5404_v10  ;;  %v4357_v28 = vor.u32 %v4595_v18, %v4356_v8 }
  0xf8   : > { %v1777_v38 = vpop.f32.mrf.mxu2  ;;  %v1601_v61 = vpop.f32.mrf.mxu0  ;;  %2031 = vmatpush.bf16.msrb.mxu1 %v4357_v28  ;;  %v3932_v28 = vld [vmem:[#allocation3 + $0x240] sm:$0xf] }
  0xf9   : > { %v1778_v56 = vadd.f32 %v1777_v38, %v1689_v16  ;;  %v1866_v60 = vpop.f32.mrf.mxu3  ;;  %v1690_v62 = vpop.f32.mrf.mxu1  ;;  %v4483_v16 = vld [vmem:[#allocation3 + $0x21c] sm:$0xf] }
  0xfa   : > { %v1691_v10 = vadd.f32 %v1690_v62, %v1601_v61 }
  0xfb   : > { %v5418_v9 = vadd.f32 %v1866_v60, %v1778_v56  ;;  %v5426_v56 = vor.u32 %v4486_v29, %v3916_v23  ;;  %v5428_v60 = vor.u32 %v4483_v16, %v3918_v31  ;;  %v4491_v29 = vld [vmem:[#allocation3 + $0x254] sm:$0xf0]  ;;  %v4488_v16 = vld [vmem:[#allocation3 + $0x244] sm:$0xf]  ;;  %v3934_v31 = vld [vmem:[#allocation3 + $0x258] sm:$0xf0] }
  0xfd   : > { %6684 = vst [vmem:[#allocation35_spill] sm:$0xff] %v5426_v56 }
  0xfe   : > { %6685 = vst [vmem:[#allocation36_spill] sm:$0xff] %v5428_v60 }
 0x100   : > { %v1779_v36 = vpop.f32.mrf.mxu2  ;;  %v1604_v39 = vpop.f32.mrf.mxu0 }
 0x101   : > { %v1780_v37 = vadd.f32 %v1779_v36, %v1691_v10  ;;  %v1868_v38 = vpop.f32.mrf.mxu3  ;;  %v1693_v8 = vpop.f32.mrf.mxu1  ;;  %v3940_v36 = vld [vmem:[#allocation3 + $0x248] sm:$0xf] }
 0x102   : > { %v1694_v62 = vadd.f32 %v1693_v8, %v1604_v39  ;;  %v3942_v39 = vld [vmem:[#allocation3 + $0x260] sm:$0xf0] }
 0x103   : > { %v5430_v61 = vadd.f32 %v1868_v38, %v1780_v37  ;;  %1643 = vmatmul.bf16.gmra.mxu0 %v5422_v30  ;;  %v4492_v37 = vld [vmem:[#allocation3 + $0x25c] sm:$0xf0]  ;;  %v4489_v38 = vld [vmem:[#allocation3 + $0x24c] sm:$0xf] }
 0x104   : > { %1732 = vmatmul.bf16.gmra.mxu1 %v5424_v41 }
 0x105   : > { %1821 = vmatmul.bf16.gmra.mxu2 %v5426_v56  ;;  %v5444_v56 = vor.u32 %v4489_v38, %v3942_v39 }
 0x106   : > { %1910 = vmatmul.bf16.gmra.mxu3 %v5428_v60  ;;  %v5438_v60 = vor.u32 %v4491_v29, %v3932_v28  ;;  %v4030_v28 = vld [vmem:[%s5154_s30 + $0x8] sm:$0xf0]  ;;  %v4284_v29 = vld [vmem:[%s5154_s30 + $0x200] sm:$0xf] }
 0x107   : > { %6687 = vst [vmem:[#allocation38_spill] sm:$0xff] %v5444_v56 }
 0x108   : > { %v1782_v4 = vpop.f32.mrf.mxu2  ;;  %v1606_v57 = vpop.f32.mrf.mxu0 }
 0x109   : > { %v1783_v6 = vadd.f32 %v1782_v4, %v1694_v62  ;;  %v1871_v43 = vpop.f32.mrf.mxu3  ;;  %v1695_v23 = vpop.f32.mrf.mxu1 }
 0x10a   : > { %v1696_v18 = vadd.f32 %v1695_v23, %v1606_v57  ;;  %v5442_v57 = vor.u32 %v4492_v37, %v3940_v36  ;;  %v4528_v36 = vld [vmem:[%s5154_s30 + $0x84] sm:$0xf]  ;;  %v4094_v37 = vld [vmem:[%s5154_s30 + $0x88] sm:$0xf0] }
 0x10b   : > { %v5436_v10 = vadd.f32 %v1871_v43, %v1783_v6  ;;  %v5440_v43 = vor.u32 %v4488_v16, %v3934_v31  ;;  %v4577_v31 = vld [vmem:[%s5154_s30 + $0x204] sm:$0xf0] }
 0x10c   : > { %6686 = vst [vmem:[#allocation37_spill] sm:$0xff] %v5442_v57  ;;  %v4285_v39 = vor.u32 %v4577_v31, %v4284_v29  ;;  %v4498_v29 = vld [vmem:[#allocation3 + $0x28c] sm:$0xf0]  ;;  %v3966_v31 = vld [vmem:[#allocation3 + $0x290] sm:$0xf0] }
 0x10e   : > { %1943 = vmatpush.bf16.msrb.mxu0 %v4285_v39 }
 0x110   : > { %v1784_v8 = vpop.f32.mrf.mxu2  ;;  %v1609_v6 = vpop.f32.mrf.mxu0 }
 0x111   : > { %v1785_v62 = vadd.f32 %v1784_v8, %v1696_v18  ;;  %v1873_v4 = vpop.f32.mrf.mxu3  ;;  %v1698_v23 = vpop.f32.mrf.mxu1  ;;  %v4512_v18 = vld [vmem:[%s5154_s30 + $0x4] sm:$0xf]  ;;  %v4097_v8 = vor.u32 %v4528_v36, %v4094_v37 }
 0x112   : > { %v1699_v48 = vadd.f32 %v1698_v23, %v1609_v6  ;;  %v4033_v16 = vor.u32 %v4512_v18, %v4030_v28  ;;  %v4593_v18 = vld [vmem:[%s5154_s30 + $0x284] sm:$0xf0] }
 0x113   : > { %v5446_v22 = vadd.f32 %v1873_v4, %v1785_v62  ;;  %1648 = vmatmul.bf16.gmra.mxu0 %v5438_v60  ;;  %2210 = vmatpush.bf16.msrb.mxu3 %v4097_v8  ;;  %v4349_v28 = vor.u32 %v4593_v18, %v4348_v46  ;;  %v5464_v8 = vor.u32 %v4494_v3, %v3958_v2 }
 0x114   : > { %1737 = vmatmul.bf16.gmra.mxu1 %v5440_v43  ;;  %2121 = vmatpush.bf16.msrb.mxu2 %v4033_v16  ;;  %v5462_v16 = vor.u32 %v4497_v34, %v3956_v35 }
 0x115   : > { %1826 = vmatmul.bf16.gmra.mxu2 %v5442_v57  ;;  %2032 = vmatpush.bf16.msrb.mxu1 %v4349_v28  ;;  %v3980_v28 = vld [vmem:[#allocation3 + $0x2a0] sm:$0xf] }
 0x116   : > { %1915 = vmatmul.bf16.gmra.mxu3 %v5444_v56 }
 0x118   : > { %v1787_v38 = vpop.f32.mrf.mxu2  ;;  %v1611_v6 = vpop.f32.mrf.mxu0 }
 0x119   : > { %v1788_v62 = vadd.f32 %v1787_v38, %v1699_v48  ;;  %v1876_v4 = vpop.f32.mrf.mxu3  ;;  %v1700_v23 = vpop.f32.mrf.mxu1  ;;  %v4495_v48 = vld [vmem:[#allocation3 + $0x27c] sm:$0xf] }
 0x11a   : > { %v1701_v57 = vadd.f32 %v1700_v23, %v1611_v6 }
 0x11b   : > { %v5458_v56 = vadd.f32 %v1876_v4, %v1788_v62  ;;  %v5466_v62 = vor.u32 %v4498_v29, %v3964_v55  ;;  %v5468_v4 = vor.u32 %v4495_v48, %v3966_v31  ;;  %v4503_v29 = vld [vmem:[#allocation3 + $0x2b4] sm:$0xf0]  ;;  %v4500_v48 = vld [vmem:[#allocation3 + $0x2a4] sm:$0xf]  ;;  %v3982_v31 = vld [vmem:[#allocation3 + $0x2b8] sm:$0xf0] }
 0x11d   : > { %6688 = vst [vmem:[#allocation39_spill] sm:$0xff] %v5466_v62 }
 0x11e   : > { %6689 = vst [vmem:[#allocation40_spill] sm:$0xff] %v5468_v4 }
 0x120   : > { %v1789_v36 = vpop.f32.mrf.mxu2  ;;  %v1614_v39 = vpop.f32.mrf.mxu0 }
 0x121   : > { %v1790_v37 = vadd.f32 %v1789_v36, %v1701_v57  ;;  %v1878_v38 = vpop.f32.mrf.mxu3  ;;  %v1703_v46 = vpop.f32.mrf.mxu1  ;;  %v3988_v36 = vld [vmem:[#allocation3 + $0x2a8] sm:$0xf] }
 0x122   : > { %v1704_v23 = vadd.f32 %v1703_v46, %v1614_v39  ;;  %v3990_v39 = vld [vmem:[#allocation3 + $0x2c0] sm:$0xf0] }
 0x123   : > { %v5470_v6 = vadd.f32 %v1878_v38, %v1790_v37  ;;  %1653 = vmatmul.bf16.gmra.mxu0 %v5462_v16  ;;  %v4504_v37 = vld [vmem:[#allocation3 + $0x2bc] sm:$0xf0]  ;;  %v4501_v38 = vld [vmem:[#allocation3 + $0x2ac] sm:$0xf] }
 0x124   : > { %1742 = vmatmul.bf16.gmra.mxu1 %v5464_v8 }
 0x125   : > { %1831 = vmatmul.bf16.gmra.mxu2 %v5466_v62  ;;  %v5484_v62 = vor.u32 %v4501_v38, %v3990_v39 }
 0x126   : > { %1920 = vmatmul.bf16.gmra.mxu3 %v5468_v4  ;;  %v5478_v4 = vor.u32 %v4503_v29, %v3980_v28  ;;  %v4342_v28 = vld [vmem:[%s5154_s30 + $0x278] sm:$0xf0]  ;;  %v4558_v29 = vld [vmem:[%s5154_s30 + $0x174] sm:$0xf] }
 0x127   : > { %6692 = vst [vmem:[#allocation43_spill] sm:$0xff] %v5484_v62 }
 0x128   : > { %v1792_v34 = vpop.f32.mrf.mxu2  ;;  %v1616_v3 = vpop.f32.mrf.mxu0 }
 0x129   : > { %v1793_v35 = vadd.f32 %v1792_v34, %v1704_v23  ;;  %v1881_v2 = vpop.f32.mrf.mxu3  ;;  %v1705_v55 = vpop.f32.mrf.mxu1 }
 0x12a   : > { %v1706_v18 = vadd.f32 %v1705_v55, %v1616_v3  ;;  %v5482_v3 = vor.u32 %v4504_v37, %v3988_v36  ;;  %v4606_v36 = vld [vmem:[%s5154_s30 + $0x2f4] sm:$0xf]  ;;  %v4406_v37 = vld [vmem:[%s5154_s30 + $0x2f8] sm:$0xf0] }
 0x12b   : > { %v5476_v57 = vadd.f32 %v1881_v2, %v1793_v35  ;;  %v5480_v2 = vor.u32 %v4500_v48, %v3982_v31  ;;  %v4214_v31 = vld [vmem:[%s5154_s30 + $0x178] sm:$0xf0] }
 0x12c   : > { %6691 = vst [vmem:[#allocation42_spill] sm:$0xff] %v5482_v3  ;;  %v4217_v39 = vor.u32 %v4558_v29, %v4214_v31  ;;  %v4510_v29 = vld [vmem:[#allocation3 + $0x2ec] sm:$0xf0]  ;;  %v4014_v31 = vld [vmem:[#allocation3 + $0x2f0] sm:$0xf0] }
 0x12d   : > { %6690 = vst [vmem:[#allocation41_spill] sm:$0xff] %v5480_v2 }
 0x12e   : > { %2292 = vmatpush.bf16.msra.mxu0 %v4217_v39 }
 0x130   : > { %v1794_v46 = vpop.f32.mrf.mxu2  ;;  %v1619_v35 = vpop.f32.mrf.mxu0 }
 0x131   : > { %v1795_v23 = vadd.f32 %v1794_v46, %v1706_v18  ;;  %v1883_v34 = vpop.f32.mrf.mxu3  ;;  %v1708_v55 = vpop.f32.mrf.mxu1  ;;  %v4590_v18 = vld [vmem:[%s5154_s30 + $0x274] sm:$0xf]  ;;  %v4409_v46 = vor.u32 %v4606_v36, %v4406_v37 }
 0x132   : > { %v1709_v27 = vadd.f32 %v1708_v55, %v1619_v35  ;;  %v4345_v48 = vor.u32 %v4590_v18, %v4342_v28  ;;  %v4278_v18 = vld [vmem:[%s5154_s30 + $0x1f8] sm:$0xf0] }
 0x133   : > { %v5486_v54 = vadd.f32 %v1883_v34, %v1795_v23  ;;  %1658 = vmatmul.bf16.gmra.mxu0 %v5478_v4  ;;  %2559 = vmatpush.bf16.msra.mxu3 %v4409_v46  ;;  %v4281_v28 = vor.u32 %v4574_v26, %v4278_v18  ;;  %v5504_v46 = vor.u32 %v4506_v53, %v4006_v52 }
 0x134   : > { %1747 = vmatmul.bf16.gmra.mxu1 %v5480_v2  ;;  %2470 = vmatpush.bf16.msra.mxu2 %v4345_v48  ;;  %v4012_v2 = vld [vmem:[#allocation3 + $0x2d8] sm:$0xf]  ;;  %v5502_v48 = vor.u32 %v4509_v14, %v4004_v15 }
 0x135   : > { %1836 = vmatmul.bf16.gmra.mxu2 %v5482_v3  ;;  %2381 = vmatpush.bf16.msra.mxu1 %v4281_v28  ;;  %6694 = vst [vmem:[#allocation45_spill] sm:$0xff] %v5504_v46  ;;  %v3660_v28 = vld [vmem:[#allocation3 + $0x10] sm:$0xf] }
 0x136   : > { %1925 = vmatmul.bf16.gmra.mxu3 %v5484_v62  ;;  %6693 = vst [vmem:[#allocation44_spill] sm:$0xff] %v5502_v48 }
 0x138   : > { %v1797_v38 = vpop.f32.mrf.mxu2  ;;  %v1621_v35 = vpop.f32.mrf.mxu0 }
 0x139   : > { %v1798_v23 = vadd.f32 %v1797_v38, %v1709_v27  ;;  %v1886_v34 = vpop.f32.mrf.mxu3  ;;  %v1710_v55 = vpop.f32.mrf.mxu1  ;;  %v4507_v27 = vld [vmem:[#allocation3 + $0x2dc] sm:$0xf] }
 0x13a   : > { %v1711_v3 = vadd.f32 %v1710_v55, %v1621_v35 }
 0x13b   : > { %v5498_v62 = vadd.f32 %v1886_v34, %v1798_v23  ;;  %v5506_v23 = vor.u32 %v4510_v29, %v4012_v2  ;;  %v5508_v34 = vor.u32 %v4507_v27, %v4014_v31  ;;  %v4421_v29 = vld [vmem:[#allocation3 + $0x24] sm:$0xf0]  ;;  %v4418_v27 = vld [vmem:[#allocation3 + $0x14] sm:$0xf]  ;;  %v3662_v31 = vld [vmem:[#allocation3 + $0x28] sm:$0xf0] }
 0x13d   : > { %6695 = vst [vmem:[#allocation46_spill] sm:$0xff] %v5506_v23 }
 0x13e   : > { %6696 = vst [vmem:[#allocation47_spill] sm:$0xff] %v5508_v34 }
 0x140   : > { %v1799_v36 = vpop.f32.mrf.mxu2  ;;  %v1624_v39 = vpop.f32.mrf.mxu0 }
 0x141   : > { %v1800_v37 = vadd.f32 %v1799_v36, %v1711_v3  ;;  %v1888_v38 = vpop.f32.mrf.mxu3  ;;  %v1713_v26 = vpop.f32.mrf.mxu1 }
 0x142   : > { %v1714_v55 = vadd.f32 %v1713_v26, %v1624_v39 }
 0x143   : > { %v5510_v35 = vadd.f32 %v1888_v38, %v1800_v37  ;;  %1663 = vmatmul.bf16.gmra.mxu0 %v5502_v48  ;;  %v5518_v37 = vor.u32 %v4421_v29, %v3660_v28  ;;  %v4206_v29 = vld [vmem:[%s5154_s30 + $0x168] sm:$0xf0]  ;;  %v3686_v48 = vld [vmem:[#allocation3 + $0x58] sm:$0xf0] }
 0x144   : > { %1752 = vmatmul.bf16.gmra.mxu1 %v5504_v46  ;;  %v4424_v46 = vld [vmem:[#allocation3 + $0x44] sm:$0xf] }
 0x145   : > { %1841 = vmatmul.bf16.gmra.mxu2 %v5506_v23  ;;  %6697 = vst [vmem:[#allocation48_spill] sm:$0xff] %v5518_v37 }
 0x146   : > { %1930 = vmatmul.bf16.gmra.mxu3 %v5508_v34 }
 0x148   : > { %v1802_v14 = vpop.f32.mrf.mxu2  ;;  %v1626_v53 = vpop.f32.mrf.mxu0 }
 0x149   : > { %v1803_v15 = vadd.f32 %v1802_v14, %v1714_v55  ;;  %v1891_v52 = vpop.f32.mrf.mxu3  ;;  %v1715_v2 = vpop.f32.mrf.mxu1  ;;  %v5520_v55 = vor.u32 %v4418_v27, %v3662_v31  ;;  %v4604_v27 = vld [vmem:[%s5154_s30 + $0x2e4] sm:$0xf]  ;;  %v4398_v31 = vld [vmem:[%s5154_s30 + $0x2e8] sm:$0xf0] }
 0x14a   : > { %v1716_v18 = vadd.f32 %v1715_v2, %v1626_v53  ;;  %v4588_v53 = vld [vmem:[%s5154_s30 + $0x264] sm:$0xf]  ;;  %v4334_v2 = vld [vmem:[%s5154_s30 + $0x268] sm:$0xf0] }
 0x14b   : > { %v5516_v3 = vadd.f32 %v1891_v52, %v1803_v15  ;;  %6698 = vst [vmem:[#allocation49_spill] sm:$0xff] %v5520_v55  ;;  %v4337_v28 = vor.u32 %v4588_v53, %v4334_v2  ;;  %v4270_v53 = vld [vmem:[%s5154_s30 + $0x1e8] sm:$0xf0] }
 0x14d   : > { %2471 = vmatpush.bf16.msra.mxu2 %v4337_v28 }
 0x150   : > { %v1804_v36 = vpop.f32.mrf.mxu2  ;;  %v1629_v26 = vpop.f32.mrf.mxu0 }
 0x151   : > { %v1805_v38 = vadd.f32 %v1804_v36, %v1716_v18  ;;  %v1893_v39 = vpop.f32.mrf.mxu3  ;;  %v1718_v14 = vpop.f32.mrf.mxu1  ;;  %v4556_v18 = vld [vmem:[%s5154_s30 + $0x164] sm:$0xf] }
 0x152   : > { %v1719_v52 = vadd.f32 %v1718_v14, %v1629_v26 }
 0x153   : > { %v5522_v15 = vadd.f32 %v1893_v39, %v1805_v38  ;;  %1944 = vmatmul.bf16.vlgmr.msrb.gmra.mxu0 %v5518_v37  ;;  %v4209_v38 = vor.u32 %v4556_v18, %v4206_v29  ;;  %v4401_v39 = vor.u32 %v4604_v27, %v4398_v31  ;;  %v3684_v37 = vld [vmem:[#allocation3 + $0x40] sm:$0xf]  ;;  %v5540_v31 = vor.u32 %v4424_v46, %v3686_v48  ;;  %v3708_v46 = vld [vmem:[#allocation3 + $0x70] sm:$0xf] }
 0x154   : > { %2033 = vmatmul.bf16.vlgmr.msrb.gmra.mxu1 %v5520_v55  ;;  %v4572_v55 = vld [vmem:[%s5154_s30 + $0x1e4] sm:$0xf] }
 0x155   : > { %6699 = vst [vmem:[#allocation50_spill] sm:$0xff] %v5522_v15  ;;  %2122 = vmatmul.bf16.vlgmr.msrb.gmra.mxu2 %v5230_v47  ;;  %2293 = vmatpush.bf16.msra.mxu0 %v4209_v38  ;;  %v4273_v2 = vor.u32 %v4572_v55, %v4270_v53  ;;  %v4427_v15 = vld [vmem:[#allocation3 + $0x54] sm:$0xf0]  ;;  %v3710_v53 = vld [vmem:[#allocation3 + $0x88] sm:$0xf0] }
 0x156   : > { %2211 = vmatmul.bf16.vlgmr.msrb.gmra.mxu3 %v5234_v51  ;;  %v5538_v29 = vor.u32 %v4427_v15, %v3684_v37  ;;  %6700 = vst [vmem:[#allocation51_spill] sm:$0xff] %v5540_v31 }
 0x157   : > { %2560 = vmatpush.bf16.msra.mxu3 %v4401_v39  ;;  %2382 = vmatpush.bf16.msra.mxu1 %v4273_v2 }
 0x158   : > { %v1807_v36 = vpop.f32.mrf.mxu2  ;;  %v1631_v34 = vpop.f32.mrf.mxu0 }
 0x159   : > { %v1808_v26 = vadd.f32 %v1807_v36, %v1719_v52  ;;  %v1896_v14 = vpop.f32.mrf.mxu3  ;;  %v1720_v23 = vpop.f32.mrf.mxu1 }
 0x15a   : > { %v1721_v51 = vadd.f32 %v1720_v23, %v1631_v34 }
 0x15b   : > { %v5534_v47 = vadd.f32 %v1896_v14, %v1808_v26  ;;  %v4433_v14 = vld [vmem:[#allocation3 + $0x84] sm:$0xf0] }
 0x160   : > { %v1809_v18 = vpop.f32.mrf.mxu2  ;;  %v1634_v28 = vpop.f32.mrf.mxu0 }
 0x161   : > { %v1810_v52 = vadd.f32 %v1809_v18, %v1721_v51  ;;  %v1898_v27 = vpop.f32.mrf.mxu3  ;;  %v1723_v36 = vpop.f32.mrf.mxu1  ;;  %v4430_v51 = vld [vmem:[#allocation3 + $0x74] sm:$0xf]  ;;  %v5550_v18 = vor.u32 %v4433_v14, %v3708_v46  ;;  %v4390_v46 = vld [vmem:[%s5154_s30 + $0x2d8] sm:$0xf0] }
 0x162   : > { %v1724_v23 = vadd.f32 %v1723_v36, %v1634_v28 }
 0x163   : > { %v5542_v38 = vadd.f32 %v1898_v27, %v1810_v52  ;;  %1949 = vmatmul.bf16.gmra.mxu0 %v5538_v29  ;;  %6701 = vst [vmem:[#allocation52_spill] sm:$0xff] %v5550_v18  ;;  %v5552_v27 = vor.u32 %v4430_v51, %v3710_v53 }
 0x164   : > { %2038 = vmatmul.bf16.gmra.mxu1 %v5540_v31  ;;  %v3734_v31 = vld [vmem:[#allocation3 + $0xb8] sm:$0xf0] }
 0x165   : > { %2127 = vmatmul.bf16.gmra.mxu2 %v5252_v12  ;;  %6702 = vst [vmem:[#allocation53_spill] sm:$0xff] %v5552_v27 }
 0x166   : > { %2216 = vmatmul.bf16.gmra.mxu3 %v5254_v13 }
 0x168   : > { %v1812_v34 = vpop.f32.mrf.mxu2  ;;  %v1636_v15 = vpop.f32.mrf.mxu0 }
 0x169   : > { %v1813_v37 = vadd.f32 %v1812_v34, %v1724_v23  ;;  %v1901_v55 = vpop.f32.mrf.mxu3  ;;  %v1725_v39 = vpop.f32.mrf.mxu1  ;;  %v4586_v34 = vld [vmem:[%s5154_s30 + $0x254] sm:$0xf] }
 0x16a   : > { %v1726_v48 = vadd.f32 %v1725_v39, %v1636_v15  ;;  %v4198_v39 = vld [vmem:[%s5154_s30 + $0x158] sm:$0xf0] }
 0x16b   : > { %v5548_v26 = vadd.f32 %v1901_v55, %v1813_v37  ;;  %v4326_v37 = vld [vmem:[%s5154_s30 + $0x258] sm:$0xf0]  ;;  %v4554_v55 = vld [vmem:[%s5154_s30 + $0x154] sm:$0xf] }
 0x16c   : > { %v4329_v15 = vor.u32 %v4586_v34, %v4326_v37  ;;  %v4201_v51 = vor.u32 %v4554_v55, %v4198_v39  ;;  %v4262_v34 = vld [vmem:[%s5154_s30 + $0x1d8] sm:$0xf0] }
 0x16e   : > { %2472 = vmatpush.bf16.msra.mxu2 %v4329_v15  ;;  %2294 = vmatpush.bf16.msra.mxu0 %v4201_v51 }
 0x170   : > { %v1814_v2 = vpop.f32.mrf.mxu2  ;;  %v1639_v52 = vpop.f32.mrf.mxu0 }
 0x171   : > { %v1815_v12 = vadd.f32 %v1814_v2, %v1726_v48  ;;  %v1903_v13 = vpop.f32.mrf.mxu3  ;;  %v1728_v28 = vpop.f32.mrf.mxu1  ;;  %v4602_v48 = vld [vmem:[%s5154_s30 + $0x2d4] sm:$0xf] }
 0x172   : > { %v1729_v23 = vadd.f32 %v1728_v28, %v1639_v52  ;;  %v4393_v53 = vor.u32 %v4602_v48, %v4390_v46  ;;  %v4570_v28 = vld [vmem:[%s5154_s30 + $0x1d4] sm:$0xf] }
 0x173   : > { %v5554_v36 = vadd.f32 %v1903_v13, %v1815_v12  ;;  %1954 = vmatmul.bf16.gmra.mxu0 %v5550_v18  ;;  %v4265_v37 = vor.u32 %v4570_v28, %v4262_v34  ;;  %v4439_v18 = vld [vmem:[#allocation3 + $0xb4] sm:$0xf0]  ;;  %v4442_v28 = vld [vmem:[#allocation3 + $0xd4] sm:$0xf]  ;;  %v3758_v34 = vld [vmem:[#allocation3 + $0xe8] sm:$0xf0] }
 0x174   : > { %2043 = vmatmul.bf16.gmra.mxu1 %v5552_v27  ;;  %2561 = vmatpush.bf16.msra.mxu3 %v4393_v53  ;;  %v3732_v27 = vld [vmem:[#allocation3 + $0xa0] sm:$0xf] }
 0x175   : > { %6703 = vst [vmem:[#allocation54_spill] sm:$0xff] %v5554_v36  ;;  %2132 = vmatmul.bf16.gmra.mxu2 %v5264_v24  ;;  %v4436_v36 = vld [vmem:[#allocation3 + $0xa4] sm:$0xf]  ;;  %2383 = vmatpush.bf16.msra.mxu1 %v4265_v37  ;;  %v5570_v39 = vor.u32 %v4439_v18, %v3732_v27 }
 0x176   : > { %2221 = vmatmul.bf16.gmra.mxu3 %v5266_v25  ;;  %v5572_v46 = vor.u32 %v4436_v36, %v3734_v31  ;;  %v3756_v36 = vld [vmem:[#allocation3 + $0xd0] sm:$0xf] }
 0x178   : > { %v1817_v14 = vpop.f32.mrf.mxu2  ;;  %v1641_v13 = vpop.f32.mrf.mxu0  ;;  %6704 = vst [vmem:[#allocation55_spill] sm:$0xff] %v5572_v46 }
 0x179   : > { %v1818_v2 = vadd.f32 %v1817_v14, %v1729_v23  ;;  %v1906_v12 = vpop.f32.mrf.mxu3  ;;  %v1730_v52 = vpop.f32.mrf.mxu1 }
 0x17a   : > { %v1731_v25 = vadd.f32 %v1730_v52, %v1641_v13 }
 0x17b   : > { %v5566_v24 = vadd.f32 %v1906_v12, %v1818_v2 }
 0x180   : > { %v1819_v55 = vpop.f32.mrf.mxu2  ;;  %v1644_v15 = vpop.f32.mrf.mxu0 }
 0x181   : > { %v1820_v23 = vadd.f32 %v1819_v55, %v1731_v25  ;;  %v1908_v48 = vpop.f32.mrf.mxu3  ;;  %v1733_v14 = vpop.f32.mrf.mxu1  ;;  %v4445_v25 = vld [vmem:[#allocation3 + $0xe4] sm:$0xf0] }
 0x182   : > { %v1734_v53 = vadd.f32 %v1733_v14, %v1644_v15  ;;  %v5582_v55 = vor.u32 %v4445_v25, %v3756_v36  ;;  %v4382_v36 = vld [vmem:[%s5154_s30 + $0x2c8] sm:$0xf0] }
 0x183   : > { %v5574_v51 = vadd.f32 %v1908_v48, %v1820_v23  ;;  %1959 = vmatmul.bf16.gmra.mxu0 %v5570_v39  ;;  %v5584_v48 = vor.u32 %v4442_v28, %v3758_v34 }
 0x184   : > { %2048 = vmatmul.bf16.gmra.mxu1 %v5572_v46  ;;  %6705 = vst [vmem:[#allocation56_spill] sm:$0xff] %v5582_v55  ;;  %v3782_v46 = vld [vmem:[#allocation3 + $0x118] sm:$0xf0] }
 0x185   : > { %2137 = vmatmul.bf16.gmra.mxu2 %v5284_v49  ;;  %6706 = vst [vmem:[#allocation57_spill] sm:$0xff] %v5584_v48 }
 0x186   : > { %2226 = vmatmul.bf16.gmra.mxu3 %v5286_v50 }
 0x188   : > { %v1822_v2 = vpop.f32.mrf.mxu2  ;;  %v1646_v12 = vpop.f32.mrf.mxu0 }
 0x189   : > { %v1823_v18 = vadd.f32 %v1822_v2, %v1734_v53  ;;  %v1911_v27 = vpop.f32.mrf.mxu3  ;;  %v1735_v13 = vpop.f32.mrf.mxu1  ;;  %v4584_v2 = vld [vmem:[%s5154_s30 + $0x244] sm:$0xf] }
 0x18a   : > { %v1736_v31 = vadd.f32 %v1735_v13, %v1646_v12  ;;  %v4190_v13 = vld [vmem:[%s5154_s30 + $0x148] sm:$0xf0] }
 0x18b   : > { %v5580_v52 = vadd.f32 %v1911_v27, %v1823_v18  ;;  %v4318_v18 = vld [vmem:[%s5154_s30 + $0x248] sm:$0xf0]  ;;  %v4552_v27 = vld [vmem:[%s5154_s30 + $0x144] sm:$0xf] }
 0x18c   : > { %v4321_v12 = vor.u32 %v4584_v2, %v4318_v18  ;;  %v4193_v28 = vor.u32 %v4552_v27, %v4190_v13  ;;  %v4254_v2 = vld [vmem:[%s5154_s30 + $0x1c8] sm:$0xf0] }
 0x18e   : > { %2473 = vmatpush.bf16.msra.mxu2 %v4321_v12  ;;  %2295 = vmatpush.bf16.msra.mxu0 %v4193_v28 }
 0x190   : > { %v1824_v37 = vpop.f32.mrf.mxu2  ;;  %v1649_v23 = vpop.f32.mrf.mxu0 }
 0x191   : > { %v1825_v49 = vadd.f32 %v1824_v37, %v1736_v31  ;;  %v1913_v50 = vpop.f32.mrf.mxu3  ;;  %v1738_v15 = vpop.f32.mrf.mxu1  ;;  %v4600_v31 = vld [vmem:[%s5154_s30 + $0x2c4] sm:$0xf] }
 0x192   : > { %v1739_v53 = vadd.f32 %v1738_v15, %v1649_v23  ;;  %v4385_v34 = vor.u32 %v4600_v31, %v4382_v36  ;;  %v4568_v15 = vld [vmem:[%s5154_s30 + $0x1c4] sm:$0xf] }
 0x193   : > { %v5586_v14 = vadd.f32 %v1913_v50, %v1825_v49  ;;  %1964 = vmatmul.bf16.gmra.mxu0 %v5582_v55  ;;  %v4257_v18 = vor.u32 %v4568_v15, %v4254_v2  ;;  %v4451_v55 = vld [vmem:[#allocation3 + $0x114] sm:$0xf0]  ;;  %v4454_v15 = vld [vmem:[#allocation3 + $0x134] sm:$0xf]  ;;  %v3806_v2 = vld [vmem:[#allocation3 + $0x148] sm:$0xf0] }
 0x194   : > { %2053 = vmatmul.bf16.gmra.mxu1 %v5584_v48  ;;  %2562 = vmatpush.bf16.msra.mxu3 %v4385_v34  ;;  %v3780_v48 = vld [vmem:[#allocation3 + $0x100] sm:$0xf] }
 0x195   : > { %6707 = vst [vmem:[#allocation58_spill] sm:$0xff] %v5586_v14  ;;  %2142 = vmatmul.bf16.gmra.mxu2 %v5296_v0  ;;  %v4448_v14 = vld [vmem:[#allocation3 + $0x104] sm:$0xf]  ;;  %2384 = vmatpush.bf16.msra.mxu1 %v4257_v18  ;;  %v5602_v13 = vor.u32 %v4451_v55, %v3780_v48 }
 0x196   : > { %2231 = vmatmul.bf16.gmra.mxu3 %v5298_v1  ;;  %v5604_v36 = vor.u32 %v4448_v14, %v3782_v46  ;;  %v3804_v14 = vld [vmem:[#allocation3 + $0x130] sm:$0xf] }
 0x198   : > { %v1827_v25 = vpop.f32.mrf.mxu2  ;;  %v1651_v50 = vpop.f32.mrf.mxu0 }
 0x199   : > { %v1828_v37 = vadd.f32 %v1827_v25, %v1739_v53  ;;  %v1916_v49 = vpop.f32.mrf.mxu3  ;;  %v1740_v23 = vpop.f32.mrf.mxu1 }
 0x19a   : > { %v1741_v1 = vadd.f32 %v1740_v23, %v1651_v50 }
 0x19b   : > { %v5598_v0 = vadd.f32 %v1916_v49, %v1828_v37 }
 0x1a0   : > { %v1829_v27 = vpop.f32.mrf.mxu2  ;;  %v1654_v12 = vpop.f32.mrf.mxu0 }
 0x1a1   : > { %v1830_v53 = vadd.f32 %v1829_v27, %v1741_v1  ;;  %v1918_v31 = vpop.f32.mrf.mxu3  ;;  %v1743_v25 = vpop.f32.mrf.mxu1  ;;  %v4457_v1 = vld [vmem:[#allocation3 + $0x144] sm:$0xf0] }
 0x1a2   : > { %v1744_v34 = vadd.f32 %v1743_v25, %v1654_v12  ;;  %v5614_v27 = vor.u32 %v4457_v1, %v3804_v14  ;;  %v5616_v12 = vor.u32 %v4454_v15, %v3806_v2  ;;  %v3828_v1 = vld [vmem:[#allocation3 + $0x160] sm:$0xf]  ;;  %v4463_v15 = vld [vmem:[#allocation3 + $0x174] sm:$0xf0]  ;;  %v4460_v2 = vld [vmem:[#allocation3 + $0x164] sm:$0xf] }
 0x1a3   : > { %v5606_v28 = vadd.f32 %v1918_v31, %v1830_v53  ;;  %1969 = vmatmul.bf16.gmra.mxu0 %v5602_v13 }
 0x1a4   : > { %2058 = vmatmul.bf16.gmra.mxu1 %v5604_v36  ;;  %6708 = vst [vmem:[#allocation59_spill] sm:$0xff] %v5614_v27 }
 0x1a5   : > { %2147 = vmatmul.bf16.gmra.mxu2 %v5316_v32  ;;  %6709 = vst [vmem:[#allocation60_spill] sm:$0xff] %v5616_v12 }
 0x1a6   : > { %2236 = vmatmul.bf16.gmra.mxu3 %v5318_v33 }
 0x1a8   : > { %v1832_v37 = vpop.f32.mrf.mxu2  ;;  %v1656_v49 = vpop.f32.mrf.mxu0 }
 0x1a9   : > { %v1833_v55 = vadd.f32 %v1832_v37, %v1744_v34  ;;  %v1921_v48 = vpop.f32.mrf.mxu3  ;;  %v1745_v50 = vpop.f32.mrf.mxu1 }
 0x1aa   : > { %v1746_v46 = vadd.f32 %v1745_v50, %v1656_v49 }
 0x1ab   : > { %v5612_v23 = vadd.f32 %v1921_v48, %v1833_v55 }
 0x1b0   : > { %v1834_v18 = vpop.f32.mrf.mxu2  ;;  %v1659_v32 = vpop.f32.mrf.mxu0 }
 0x1b1   : > { %v1835_v53 = vadd.f32 %v1834_v18, %v1746_v46  ;;  %v1923_v31 = vpop.f32.mrf.mxu3  ;;  %v1748_v33 = vpop.f32.mrf.mxu1  ;;  %v3830_v18 = vld [vmem:[#allocation3 + $0x178] sm:$0xf0] }
 0x1b2   : > { %v1749_v34 = vadd.f32 %v1748_v33, %v1659_v32 }
 0x1b3   : > { %v5618_v25 = vadd.f32 %v1923_v31, %v1835_v53  ;;  %1974 = vmatmul.bf16.gmra.mxu0 %v5614_v27  ;;  %v5626_v31 = vor.u32 %v4463_v15, %v3828_v1  ;;  %v3854_v27 = vld [vmem:[#allocation3 + $0x1a8] sm:$0xf0] }
 0x1b4   : > { %2063 = vmatmul.bf16.gmra.mxu1 %v5616_v12  ;;  %v5628_v12 = vor.u32 %v4460_v2, %v3830_v18  ;;  %v3852_v2 = vld [vmem:[#allocation3 + $0x190] sm:$0xf]  ;;  %v4582_v18 = vld [vmem:[%s5154_s30 + $0x234] sm:$0xf] }
 0x1b5   : > { %2152 = vmatmul.bf16.gmra.mxu2 %v5328_v44  ;;  %6711 = vst [vmem:[#allocation62_spill] sm:$0xff] %v5626_v31 }
 0x1b6   : > { %2241 = vmatmul.bf16.gmra.mxu3 %v5330_v45  ;;  %6712 = vst [vmem:[#allocation63_spill] sm:$0xff] %v5628_v12 }
 0x1b8   : > { %v1837_v37 = vpop.f32.mrf.mxu2  ;;  %v1661_v49 = vpop.f32.mrf.mxu0 }
 0x1b9   : > { %v1838_v55 = vadd.f32 %v1837_v37, %v1749_v34  ;;  %v1926_v48 = vpop.f32.mrf.mxu3  ;;  %v1750_v50 = vpop.f32.mrf.mxu1 }
 0x1ba   : > { %v1751_v14 = vadd.f32 %v1750_v50, %v1661_v49 }
 0x1bb   : > { %v5624_v46 = vadd.f32 %v1926_v48, %v1838_v55 }
 0x1bd   : > { %6710 = vst [vmem:[#allocation61_spill] sm:$0xff] %v5624_v46 }
 0x1c0   : > { %v1839_v53 = vpop.f32.mrf.mxu2  ;;  %v1664_v44 = vpop.f32.mrf.mxu0 }
 0x1c1   : > { %v1840_v32 = vadd.f32 %v1839_v53, %v1751_v14  ;;  %v1928_v33 = vpop.f32.mrf.mxu3  ;;  %v1753_v45 = vpop.f32.mrf.mxu1  ;;  %v4310_v53 = vld [vmem:[%s5154_s30 + $0x238] sm:$0xf0] }
 0x1c2   : > { %v1754_v37 = vadd.f32 %v1753_v45, %v1664_v44  ;;  %v4182_v44 = vld [vmem:[%s5154_s30 + $0x138] sm:$0xf0] }
 0x1c3   : > { %v5630_v34 = vadd.f32 %v1928_v33, %v1840_v32  ;;  %1979 = vmatmul.bf16.gmra.mxu0 %v5626_v31  ;;  %v4550_v32 = vld [vmem:[%s5154_s30 + $0x134] sm:$0xf]  ;;  %v4313_v33 = vor.u32 %v4582_v18, %v4310_v53  ;;  %v4374_v45 = vld [vmem:[%s5154_s30 + $0x2b8] sm:$0xf0] }
 0x1c4   : > { %2068 = vmatmul.bf16.gmra.mxu1 %v5628_v12  ;;  %v4469_v12 = vld [vmem:[#allocation3 + $0x1a4] sm:$0xf0] }
 0x1c5   : > { %6713 = vst [vmem:[#allocation64_spill] sm:$0xff] %v5630_v34  ;;  %2157 = vmatmul.bf16.gmra.mxu2 %v5348_v20  ;;  %v4598_v20 = vld [vmem:[%s5154_s30 + $0x2b4] sm:$0xf] }
 0x1c6   : > { %2246 = vmatmul.bf16.gmra.mxu3 %v5350_v21  ;;  %v4185_v21 = vor.u32 %v4550_v32, %v4182_v44  ;;  %v4377_v31 = vor.u32 %v4598_v20, %v4374_v45  ;;  %v4466_v34 = vld [vmem:[#allocation3 + $0x194] sm:$0xf]  ;;  %2474 = vmatpush.bf16.msra.mxu2 %v4313_v33  ;;  %v4475_v33 = vld [vmem:[#allocation3 + $0x1d4] sm:$0xf0] }
 0x1c7   : > { %v5648_v53 = vor.u32 %v4466_v34, %v3854_v27 }
 0x1c8   : > { %v1842_v55 = vpop.f32.mrf.mxu2  ;;  %v1666_v50 = vpop.f32.mrf.mxu0  ;;  %2296 = vmatpush.bf16.msra.mxu0 %v4185_v21  ;;  %2563 = vmatpush.bf16.msra.mxu3 %v4377_v31  ;;  %v4472_v21 = vld [vmem:[#allocation3 + $0x1c4] sm:$0xf] }
 0x1c9   : > { %v1843_v48 = vadd.f32 %v1842_v55, %v1754_v37  ;;  %v1931_v49 = vpop.f32.mrf.mxu3  ;;  %v1755_v14 = vpop.f32.mrf.mxu1  ;;  %v4566_v37 = vld [vmem:[%s5154_s30 + $0x1b4] sm:$0xf]  ;;  %v4246_v55 = vld [vmem:[%s5154_s30 + $0x1b8] sm:$0xf0] }
 0x1ca   : > { %v1756_v15 = vadd.f32 %v1755_v14, %v1666_v50  ;;  %v4249_v46 = vor.u32 %v4566_v37, %v4246_v55  ;;  %v3878_v37 = vld [vmem:[#allocation3 + $0x1d8] sm:$0xf0] }
 0x1cb   : > { %v5636_v1 = vadd.f32 %v1931_v49, %v1843_v48  ;;  %v5646_v49 = vor.u32 %v4469_v12, %v3852_v2  ;;  %v3876_v2 = vld [vmem:[#allocation3 + $0x1c0] sm:$0xf] }
 0x1cc   : > { %2385 = vmatpush.bf16.msra.mxu1 %v4249_v46 }
 0x1d0   : > { %v1844_v48 = vpop.f32.mrf.mxu2  ;;  %v1945_v18 = vpop.f32.mrf.mxu0 }
 0x1d1   : > { %v1845_v50 = vadd.f32 %v1844_v48, %v1756_v15  ;;  %v1933_v14 = vpop.f32.mrf.mxu3  ;;  %v1946_v32 = vadd.f32 %v1945_v18, %v5378_v17  ;;  %v2034_v44 = vpop.f32.mrf.mxu1  ;;  %v5664_v48 = vor.u32 %v4475_v33, %v3876_v2  ;;  %v4580_v2 = vld [vmem:[%s5154_s30 + $0x224] sm:$0xf]  ;;  %v4302_v33 = vld [vmem:[%s5154_s30 + $0x228] sm:$0xf0] }
 0x1d3   : > { %v5651_v20 = vadd.f32 %v1933_v14, %v1845_v50  ;;  %v5653_v45 = vadd.f32 %v2034_v44, %v1946_v32  ;;  %1984 = vmatmul.bf16.gmra.mxu0 %v5646_v49  ;;  %6714 = vst [vmem:[#allocation65_spill] sm:$0xff] %v5664_v48 }
 0x1d4   : > { %2073 = vmatmul.bf16.gmra.mxu1 %v5648_v53 }
 0x1d5   : > { %2162 = vmatmul.bf16.gmra.mxu2 %v5360_v40 }
 0x1d6   : > { %2251 = vmatmul.bf16.gmra.mxu3 %v5362_v42  ;;  %v5666_v42 = vor.u32 %v4472_v21, %v3878_v37  ;;  %v4548_v21 = vld [vmem:[%s5154_s30 + $0x124] sm:$0xf] }
 0x1d8   : > { %v2123_v12 = vpop.f32.mrf.mxu2  ;;  %v1947_v31 = vpop.f32.mrf.mxu0  ;;  %6715 = vst [vmem:[#allocation66_spill] sm:$0xff] %v5666_v42 }
 0x1d9   : > { %v2212_v46 = vpop.f32.mrf.mxu3  ;;  %v1948_v17 = vadd.f32 %v1947_v31, %v5390_v7  ;;  %v2036_v34 = vpop.f32.mrf.mxu1 }
 0x1da   : > { %v5659_v27 = vadd.f32 %v2212_v46, %v2123_v12 }
 0x1db   : > { %v5662_v15 = vadd.f32 %v2036_v34, %v1948_v17  ;;  %v3900_v34 = vld [vmem:[#allocation3 + $0x1f0] sm:$0xf] }
 0x1e0   : > { %v2125_v55 = vpop.f32.mrf.mxu2  ;;  %v1950_v50 = vpop.f32.mrf.mxu0 }
 0x1e1   : > { %v2214_v40 = vpop.f32.mrf.mxu3  ;;  %v1951_v7 = vadd.f32 %v1950_v50, %v5396_v19  ;;  %v2039_v18 = vpop.f32.mrf.mxu1  ;;  %v4481_v50 = vld [vmem:[#allocation3 + $0x204] sm:$0xf0] }
 0x1e2   : > { %v5668_v14 = vadd.f32 %v2214_v40, %v2125_v55  ;;  %v4174_v55 = vld [vmem:[%s5154_s30 + $0x128] sm:$0xf0]  ;;  %v4596_v40 = vld [vmem:[%s5154_s30 + $0x2a4] sm:$0xf] }
 0x1e3   : > { %v5671_v32 = vadd.f32 %v2039_v18, %v1951_v7  ;;  %1989 = vmatmul.bf16.gmra.mxu0 %v5664_v48  ;;  %v4177_v7 = vor.u32 %v4548_v21, %v4174_v55  ;;  %v3902_v48 = vld [vmem:[#allocation3 + $0x208] sm:$0xf0] }
 0x1e4   : > { %2078 = vmatmul.bf16.gmra.mxu1 %v5666_v42  ;;  %v4564_v42 = vld [vmem:[%s5154_s30 + $0x1a4] sm:$0xf] }
 0x1e5   : > { %2167 = vmatmul.bf16.gmra.mxu2 %v5382_v59  ;;  %v4305_v59 = vor.u32 %v4580_v2, %v4302_v33  ;;  %2297 = vmatpush.bf16.msra.mxu0 %v4177_v7  ;;  %v3924_v7 = vld [vmem:[#allocation3 + $0x220] sm:$0xf] }
 0x1e6   : > { %2256 = vmatmul.bf16.gmra.mxu3 %v5384_v63  ;;  %v4366_v63 = vld [vmem:[%s5154_s30 + $0x2a8] sm:$0xf0] }
 0x1e7   : > { %v4369_v18 = vor.u32 %v4596_v40, %v4366_v63  ;;  %2475 = vmatpush.bf16.msra.mxu2 %v4305_v59 }
 0x1e8   : > { %v2128_v44 = vpop.f32.mrf.mxu2  ;;  %v1952_v46 = vpop.f32.mrf.mxu0 }
 0x1e9   : > { %v2217_v12 = vpop.f32.mrf.mxu3  ;;  %v1953_v31 = vadd.f32 %v1952_v46, %v5406_v11  ;;  %v2041_v17 = vpop.f32.mrf.mxu1  ;;  %2564 = vmatpush.bf16.msra.mxu3 %v4369_v18  ;;  %v4487_v18 = vld [vmem:[#allocation3 + $0x234] sm:$0xf0] }
 0x1ea   : > { %v5677_v19 = vadd.f32 %v2217_v12, %v2128_v44  ;;  %v4238_v44 = vld [vmem:[%s5154_s30 + $0x1a8] sm:$0xf0]  ;;  %v4478_v12 = vld [vmem:[#allocation3 + $0x1f4] sm:$0xf] }
 0x1eb   : > { %v5683_v37 = vadd.f32 %v2041_v17, %v1953_v31  ;;  %v4241_v11 = vor.u32 %v4564_v42, %v4238_v44  ;;  %v5692_v2 = vor.u32 %v4478_v12, %v3902_v48  ;;  %v4484_v44 = vld [vmem:[#allocation3 + $0x224] sm:$0xf]  ;;  %v3926_v12 = vld [vmem:[#allocation3 + $0x238] sm:$0xf0] }
 0x1ec   : > { %6716 = vst [vmem:[#allocation67_spill] sm:$0xff] %v5677_v19  ;;  %v5690_v19 = vor.u32 %v4481_v50, %v3900_v34 }
 0x1ed   : > { %2386 = vmatpush.bf16.msra.mxu1 %v4241_v11 }
 0x1f0   : > { %v2130_v46 = vpop.f32.mrf.mxu2  ;;  %v1955_v17 = vpop.f32.mrf.mxu0 }
 0x1f1   : > { %v2219_v31 = vpop.f32.mrf.mxu3  ;;  %v1956_v21 = vadd.f32 %v1955_v17, %v5418_v9  ;;  %v2044_v55 = vpop.f32.mrf.mxu1 }
 0x1f2   : > { %v5694_v33 = vadd.f32 %v2219_v31, %v2130_v46  ;;  %v5708_v46 = vor.u32 %v4487_v18, %v3924_v7  ;;  %v3948_v7 = vld [vmem:[#allocation3 + $0x250] sm:$0xf]  ;;  %v4578_v18 = vld [vmem:[%s5154_s30 + $0x214] sm:$0xf] }
 0x1f3   : > { %v5697_v40 = vadd.f32 %v2044_v55, %v1956_v21  ;;  %1994 = vmatmul.bf16.gmra.mxu0 %v5690_v19 }
 0x1f4   : > { %2083 = vmatmul.bf16.gmra.mxu1 %v5692_v2  ;;  %6717 = vst [vmem:[#allocation68_spill] sm:$0xff] %v5708_v46 }
 0x1f5   : > { %2172 = vmatmul.bf16.gmra.mxu2 %v5398_v58 }
 0x1f6   : > { %2261 = vmatmul.bf16.gmra.mxu3 %v5400_v5  ;;  %v5710_v5 = vor.u32 %v4484_v44, %v3926_v12  ;;  %v4294_v44 = vld [vmem:[%s5154_s30 + $0x218] sm:$0xf0]  ;;  %v4546_v12 = vld [vmem:[%s5154_s30 + $0x114] sm:$0xf] }
 0x1f8   : > { %v2133_v42 = vpop.f32.mrf.mxu2  ;;  %v1957_v59 = vpop.f32.mrf.mxu0  ;;  %6718 = vst [vmem:[#allocation69_spill] sm:$0xff] %v5710_v5 }
 0x1f9   : > { %v2222_v34 = vpop.f32.mrf.mxu3  ;;  %v1958_v63 = vadd.f32 %v1957_v59, %v5430_v61  ;;  %v2046_v50 = vpop.f32.mrf.mxu1 }
 0x1fa   : > { %v5703_v48 = vadd.f32 %v2222_v34, %v2133_v42 }
 0x1fb   : > { %v5706_v9 = vadd.f32 %v2046_v50, %v1958_v63 }
 0x200   : > { %v2135_v11 = vpop.f32.mrf.mxu2  ;;  %v1960_v31 = vpop.f32.mrf.mxu0 }
 0x201   : > { %v2224_v58 = vpop.f32.mrf.mxu3  ;;  %v1961_v61 = vadd.f32 %v1960_v31, %v5436_v10  ;;  %v2049_v21 = vpop.f32.mrf.mxu1  ;;  %v4594_v31 = vld [vmem:[%s5154_s30 + $0x294] sm:$0xf] }
 0x202   : > { %v5712_v17 = vadd.f32 %v2224_v58, %v2135_v11  ;;  %v4166_v58 = vld [vmem:[%s5154_s30 + $0x118] sm:$0xf0] }
 0x203   : > { %v5715_v55 = vadd.f32 %v2049_v21, %v1961_v61  ;;  %1999 = vmatmul.bf16.gmra.mxu0 %v5708_v46  ;;  %v4493_v61 = vld [vmem:[#allocation3 + $0x264] sm:$0xf0]  ;;  %v4169_v21 = vor.u32 %v4546_v12, %v4166_v58  ;;  %v4562_v46 = vld [vmem:[%s5154_s30 + $0x194] sm:$0xf] }
 0x204   : > { %2088 = vmatmul.bf16.gmra.mxu1 %v5710_v5 }
 0x205   : > { %6719 = vst [vmem:[#allocation70_spill] sm:$0xff] %v5715_v55  ;;  %2177 = vmatmul.bf16.gmra.mxu2 %v5422_v30  ;;  %v4297_v30 = vor.u32 %v4578_v18, %v4294_v44  ;;  %2298 = vmatpush.bf16.msra.mxu0 %v4169_v21  ;;  %v5734_v55 = vor.u32 %v4493_v61, %v3948_v7  ;;  %v3972_v61 = vld [vmem:[#allocation3 + $0x280] sm:$0xf]  ;;  %v4499_v21 = vld [vmem:[#allocation3 + $0x294] sm:$0xf0] }
 0x206   : > { %2266 = vmatmul.bf16.gmra.mxu3 %v5424_v41  ;;  %v4358_v41 = vld [vmem:[%s5154_s30 + $0x298] sm:$0xf0] }
 0x207   : > { %v4361_v5 = vor.u32 %v4594_v31, %v4358_v41  ;;  %2476 = vmatpush.bf16.msra.mxu2 %v4297_v30 }
 0x208   : > { %v2138_v42 = vpop.f32.mrf.mxu2  ;;  %v1962_v59 = vpop.f32.mrf.mxu0 }
 0x209   : > { %v2227_v34 = vpop.f32.mrf.mxu3  ;;  %v1963_v63 = vadd.f32 %v1962_v59, %v5446_v22  ;;  %v2051_v50 = vpop.f32.mrf.mxu1  ;;  %2565 = vmatpush.bf16.msra.mxu3 %v4361_v5 }
 0x20a   : > { %v5721_v10 = vadd.f32 %v2227_v34, %v2138_v42  ;;  %v4230_v42 = vld [vmem:[%s5154_s30 + $0x198] sm:$0xf0]  ;;  %v4490_v34 = vld [vmem:[#allocation3 + $0x254] sm:$0xf] }
 0x20b   : > { %v5727_v11 = vadd.f32 %v2051_v50, %v1963_v63  ;;  %v4233_v22 = vor.u32 %v4562_v46, %v4230_v42  ;;  %v4496_v42 = vld [vmem:[#allocation3 + $0x284] sm:$0xf] }
 0x20c   : > { %6720 = vst [vmem:[#allocation71_spill] sm:$0xff] %v5721_v10  ;;  %v3950_v10 = vld [vmem:[#allocation3 + $0x268] sm:$0xf0] }
 0x20d   : > { %2387 = vmatpush.bf16.msra.mxu1 %v4233_v22  ;;  %v5736_v18 = vor.u32 %v4490_v34, %v3950_v10  ;;  %v3974_v34 = vld [vmem:[#allocation3 + $0x298] sm:$0xf0] }
 0x210   : > { %v2140_v59 = vpop.f32.mrf.mxu2  ;;  %v1965_v50 = vpop.f32.mrf.mxu0 }
 0x211   : > { %v2229_v63 = vpop.f32.mrf.mxu3  ;;  %v1966_v12 = vadd.f32 %v1965_v50, %v5458_v56  ;;  %v2054_v58 = vpop.f32.mrf.mxu1 }
 0x212   : > { %v5738_v44 = vadd.f32 %v2229_v63, %v2140_v59  ;;  %v5752_v59 = vor.u32 %v4499_v21, %v3972_v61  ;;  %v3996_v61 = vld [vmem:[#allocation3 + $0x2b0] sm:$0xf]  ;;  %v4576_v21 = vld [vmem:[%s5154_s30 + $0x204] sm:$0xf] }
 0x213   : > { %v5741_v31 = vadd.f32 %v2054_v58, %v1966_v12  ;;  %2004 = vmatmul.bf16.gmra.mxu0 %v5734_v55 }
 0x214   : > { %2093 = vmatmul.bf16.gmra.mxu1 %v5736_v18  ;;  %6721 = vst [vmem:[#allocation72_spill] sm:$0xff] %v5752_v59 }
 0x215   : > { %2182 = vmatmul.bf16.gmra.mxu2 %v5438_v60 }
 0x216   : > { %2271 = vmatmul.bf16.gmra.mxu3 %v5440_v43  ;;  %v5754_v43 = vor.u32 %v4496_v42, %v3974_v34  ;;  %v4286_v42 = vld [vmem:[%s5154_s30 + $0x208] sm:$0xf0]  ;;  %v4544_v34 = vld [vmem:[%s5154_s30 + $0x104] sm:$0xf] }
 0x218   : > { %v2143_v46 = vpop.f32.mrf.mxu2  ;;  %v1967_v7 = vpop.f32.mrf.mxu0  ;;  %6722 = vst [vmem:[#allocation73_spill] sm:$0xff] %v5754_v43 }
 0x219   : > { %v2232_v5 = vpop.f32.mrf.mxu3  ;;  %v1968_v30 = vadd.f32 %v1967_v7, %v5470_v6  ;;  %v2056_v41 = vpop.f32.mrf.mxu1 }
 0x21a   : > { %v5747_v10 = vadd.f32 %v2232_v5, %v2143_v46 }
 0x21b   : > { %v5750_v56 = vadd.f32 %v2056_v41, %v1968_v30 }
 0x220   : > { %v2145_v22 = vpop.f32.mrf.mxu2  ;;  %v1970_v63 = vpop.f32.mrf.mxu0 }
 0x221   : > { %v2234_v60 = vpop.f32.mrf.mxu3  ;;  %v1971_v6 = vadd.f32 %v1970_v63, %v5476_v57  ;;  %v2059_v12 = vpop.f32.mrf.mxu1  ;;  %v4592_v63 = vld [vmem:[%s5154_s30 + $0x284] sm:$0xf] }
 0x222   : > { %v5756_v50 = vadd.f32 %v2234_v60, %v2145_v22  ;;  %v4158_v60 = vld [vmem:[%s5154_s30 + $0x108] sm:$0xf0] }
 0x223   : > { %v5759_v58 = vadd.f32 %v2059_v12, %v1971_v6  ;;  %2009 = vmatmul.bf16.gmra.mxu0 %v5752_v59  ;;  %v4505_v6 = vld [vmem:[#allocation3 + $0x2c4] sm:$0xf0]  ;;  %v4161_v12 = vor.u32 %v4544_v34, %v4158_v60  ;;  %v4560_v59 = vld [vmem:[%s5154_s30 + $0x184] sm:$0xf] }
 0x224   : > { %2098 = vmatmul.bf16.gmra.mxu1 %v5754_v43 }
 0x225   : > { %6723 = vst [vmem:[#allocation74_spill] sm:$0xff] %v5759_v58  ;;  %2187 = vmatmul.bf16.gmra.mxu2 %v5462_v16  ;;  %v4289_v16 = vor.u32 %v4576_v21, %v4286_v42  ;;  %2299 = vmatpush.bf16.msra.mxu0 %v4161_v12  ;;  %v5778_v58 = vor.u32 %v4505_v6, %v3996_v61  ;;  %v4020_v12 = vld [vmem:[#allocation3 + $0x2e0] sm:$0xf] }
 0x226   : > { %2276 = vmatmul.bf16.gmra.mxu3 %v5464_v8  ;;  %v4350_v8 = vld [vmem:[%s5154_s30 + $0x288] sm:$0xf0] }
 0x227   : > { %v4353_v43 = vor.u32 %v4592_v63, %v4350_v8  ;;  %2477 = vmatpush.bf16.msra.mxu2 %v4289_v16 }
 0x228   : > { %v2148_v46 = vpop.f32.mrf.mxu2  ;;  %v1972_v7 = vpop.f32.mrf.mxu0 }
 0x229   : > { %v2237_v5 = vpop.f32.mrf.mxu3  ;;  %v1973_v30 = vadd.f32 %v1972_v7, %v5486_v54  ;;  %v2061_v41 = vpop.f32.mrf.mxu1  ;;  %2566 = vmatpush.bf16.msra.mxu3 %v4353_v43 }
 0x22a   : > { %v5765_v57 = vadd.f32 %v2237_v5, %v2148_v46  ;;  %v4222_v46 = vld [vmem:[%s5154_s30 + $0x188] sm:$0xf0]  ;;  %v4502_v5 = vld [vmem:[#allocation3 + $0x2b4] sm:$0xf] }
 0x22b   : > { %v5771_v22 = vadd.f32 %v2061_v41, %v1973_v30  ;;  %v4225_v54 = vor.u32 %v4560_v59, %v4222_v46  ;;  %v6725_v59 = vld [vmem:[#allocation41_spill] sm:$0xff]  ;;  %v4511_v46 = vld [vmem:[#allocation3 + $0x2f4] sm:$0xf0] }
 0x22c   : > { %6724 = vst [vmem:[#allocation75_spill] sm:$0xff] %v5765_v57  ;;  %v3998_v57 = vld [vmem:[#allocation3 + $0x2c8] sm:$0xf0] }
 0x22d   : > { %2388 = vmatpush.bf16.msra.mxu1 %v4225_v54  ;;  %v5780_v21 = vor.u32 %v4502_v5, %v3998_v57  ;;  %v4508_v5 = vld [vmem:[#allocation3 + $0x2e4] sm:$0xf]  ;;  %v4022_v54 = vld [vmem:[#allocation3 + $0x2f8] sm:$0xf0] }
 0x230   : > { %v2150_v7 = vpop.f32.mrf.mxu2  ;;  %v1975_v41 = vpop.f32.mrf.mxu0 }
 0x231   : > { %v2239_v30 = vpop.f32.mrf.mxu3  ;;  %v1976_v34 = vadd.f32 %v1975_v41, %v5498_v62  ;;  %v2064_v60 = vpop.f32.mrf.mxu1 }
 0x232   : > { %v5782_v42 = vadd.f32 %v2239_v30, %v2150_v7  ;;  %v5796_v30 = vor.u32 %v4511_v46, %v4020_v12 }
 0x233   : > { %v5785_v63 = vadd.f32 %v2064_v60, %v1976_v34  ;;  %2014 = vmatmul.bf16.gmra.mxu0 %v5778_v58  ;;  %v5798_v34 = vor.u32 %v4508_v5, %v4022_v54  ;;  %v6731_v5 = vld [vmem:[#allocation50_spill] sm:$0xff] }
 0x234   : > { %2103 = vmatmul.bf16.gmra.mxu1 %v5780_v21  ;;  %6726 = vst [vmem:[#allocation41_spill] sm:$0xff] %v5796_v30 }
 0x235   : > { %2192 = vmatmul.bf16.gmra.mxu2 %v5478_v4  ;;  %6727 = vst [vmem:[#allocation76_spill] sm:$0xff] %v5798_v34 }
 0x236   : > { %2281 = vmatmul.bf16.gmra.mxu3 %v6725_v59 }
 0x238   : > { %v2153_v43 = vpop.f32.mrf.mxu2  ;;  %v1977_v16 = vpop.f32.mrf.mxu0 }
 0x239   : > { %v2242_v61 = vpop.f32.mrf.mxu3  ;;  %v1978_v8 = vadd.f32 %v1977_v16, %v5510_v35  ;;  %v2066_v6 = vpop.f32.mrf.mxu1  ;;  %v6730_v16 = vld [vmem:[#allocation45_spill] sm:$0xff] }
 0x23a   : > { %v5791_v57 = vadd.f32 %v2242_v61, %v2153_v43  ;;  %v6729_v61 = vld [vmem:[#allocation44_spill] sm:$0xff] }
 0x23b   : > { %v5794_v62 = vadd.f32 %v2066_v6, %v1978_v8 }
 0x240   : > { %v2155_v7 = vpop.f32.mrf.mxu2  ;;  %v1980_v41 = vpop.f32.mrf.mxu0 }
 0x241   : > { %v2244_v4 = vpop.f32.mrf.mxu3  ;;  %v1981_v59 = vadd.f32 %v1980_v41, %v5516_v3  ;;  %v2069_v43 = vpop.f32.mrf.mxu1 }
 0x242   : > { %v5800_v60 = vadd.f32 %v2244_v4, %v2155_v7 }
 0x243   : > { %v5803_v35 = vadd.f32 %v2069_v43, %v1981_v59  ;;  %2019 = vmatmul.bf16.gmra.mxu0 %v5796_v30 }
 0x244   : > { %2108 = vmatmul.bf16.gmra.mxu1 %v5798_v34 }
 0x245   : > { %6728 = vst [vmem:[#allocation77_spill] sm:$0xff] %v5803_v35  ;;  %2197 = vmatmul.bf16.gmra.mxu2 %v6729_v61  ;;  %v6735_v35 = vld [vmem:[#allocation14_spill] sm:$0xff] }
 0x246   : > { %2286 = vmatmul.bf16.gmra.mxu3 %v6730_v16  ;;  %v6734_v16 = vld [vmem:[#allocation13_spill] sm:$0xff] }
 0x248   : > { %v2158_v8 = vpop.f32.mrf.mxu2  ;;  %v1982_v12 = vpop.f32.mrf.mxu0 }
 0x249   : > { %v2247_v6 = vpop.f32.mrf.mxu3  ;;  %v1983_v54 = vadd.f32 %v1982_v12, %v6731_v5  ;;  %v2071_v7 = vpop.f32.mrf.mxu1 }
 0x24a   : > { %v5809_v46 = vadd.f32 %v2247_v6, %v2158_v8  ;;  %v6736_v8 = vld [vmem:[#allocation48_spill] sm:$0xff]  ;;  %v6737_v6 = vld [vmem:[#allocation49_spill] sm:$0xff] }
 0x24b   : > { %v5812_v3 = vadd.f32 %v2071_v7, %v1983_v54 }
 0x250   : > { %v2160_v4 = vpop.f32.mrf.mxu2  ;;  %v1985_v59 = vpop.f32.mrf.mxu0 }
 0x251   : > { %v2249_v41 = vpop.f32.mrf.mxu3  ;;  %v1986_v34 = vadd.f32 %v1985_v59, %v5534_v47  ;;  %v2074_v61 = vpop.f32.mrf.mxu1 }
 0x252   : > { %v5814_v43 = vadd.f32 %v2249_v41, %v2160_v4 }
 0x253   : > { %v5817_v30 = vadd.f32 %v2074_v61, %v1986_v34  ;;  %2300 = vmatmul.bf16.vlgmr.msra.gmra.mxu0 %v6734_v16 }
 0x254   : > { %6732 = vst [vmem:[#allocation44_spill] sm:$0xff] %v5814_v43  ;;  %2389 = vmatmul.bf16.vlgmr.msra.gmra.mxu1 %v6735_v35  ;;  %v6741_v43 = vld [vmem:[#allocation16_spill] sm:$0xff] }
 0x255   : > { %6733 = vst [vmem:[#allocation45_spill] sm:$0xff] %v5817_v30  ;;  %2478 = vmatmul.bf16.vlgmr.msra.gmra.mxu2 %v6736_v8 }
 0x256   : > { %2567 = vmatmul.bf16.vlgmr.msra.gmra.mxu3 %v6737_v6  ;;  %v6740_v6 = vld [vmem:[#allocation15_spill] sm:$0xff] }
 0x258   : > { %v2163_v12 = vpop.f32.mrf.mxu2  ;;  %v1987_v54 = vpop.f32.mrf.mxu0 }
 0x259   : > { %v2252_v5 = vpop.f32.mrf.mxu3  ;;  %v1988_v4 = vadd.f32 %v1987_v54, %v5542_v38  ;;  %v2076_v41 = vpop.f32.mrf.mxu1  ;;  %v6742_v38 = vld [vmem:[#allocation51_spill] sm:$0xff] }
 0x25a   : > { %v5823_v7 = vadd.f32 %v2252_v5, %v2163_v12 }
 0x25b   : > { %v5826_v47 = vadd.f32 %v2076_v41, %v1988_v4  ;;  %v6743_v41 = vld [vmem:[#allocation54_spill] sm:$0xff] }
 0x260   : > { %v2165_v34 = vpop.f32.mrf.mxu2  ;;  %v1990_v61 = vpop.f32.mrf.mxu0 }
 0x261   : > { %v2254_v59 = vpop.f32.mrf.mxu3  ;;  %v1991_v35 = vadd.f32 %v1990_v61, %v5548_v26  ;;  %v2079_v8 = vpop.f32.mrf.mxu1 }
 0x262   : > { %v5828_v16 = vadd.f32 %v2254_v59, %v2165_v34 }
 0x263   : > { %v5831_v30 = vadd.f32 %v2079_v8, %v1991_v35  ;;  %2305 = vmatmul.bf16.gmra.mxu0 %v6740_v6 }
 0x264   : > { %6738 = vst [vmem:[#allocation50_spill] sm:$0xff] %v5828_v16  ;;  %2394 = vmatmul.bf16.gmra.mxu1 %v6741_v43  ;;  %v6747_v16 = vld [vmem:[#allocation18_spill] sm:$0xff] }
 0x265   : > { %6739 = vst [vmem:[#allocation13_spill] sm:$0xff] %v5831_v30  ;;  %2483 = vmatmul.bf16.gmra.mxu2 %v5538_v29 }
 0x266   : > { %2572 = vmatmul.bf16.gmra.mxu3 %v6742_v38  ;;  %v6746_v38 = vld [vmem:[#allocation17_spill] sm:$0xff] }
 0x268   : > { %v2168_v12 = vpop.f32.mrf.mxu2  ;;  %v1992_v54 = vpop.f32.mrf.mxu0 }
 0x269   : > { %v2257_v5 = vpop.f32.mrf.mxu3  ;;  %v1993_v34 = vadd.f32 %v1992_v54, %v6743_v41  ;;  %v2081_v59 = vpop.f32.mrf.mxu1 }
 0x26a   : > { %v5837_v4 = vadd.f32 %v2257_v5, %v2168_v12  ;;  %v6748_v12 = vld [vmem:[#allocation52_spill] sm:$0xff]  ;;  %v6749_v5 = vld [vmem:[#allocation53_spill] sm:$0xff] }
 0x26b   : > { %v5840_v26 = vadd.f32 %v2081_v59, %v1993_v34 }
 0x270   : > { %v2170_v61 = vpop.f32.mrf.mxu2  ;;  %v1995_v8 = vpop.f32.mrf.mxu0 }
 0x271   : > { %v2259_v35 = vpop.f32.mrf.mxu3  ;;  %v1996_v43 = vadd.f32 %v1995_v8, %v5566_v24  ;;  %v2084_v29 = vpop.f32.mrf.mxu1 }
 0x272   : > { %v5842_v6 = vadd.f32 %v2259_v35, %v2170_v61 }
 0x273   : > { %v5845_v30 = vadd.f32 %v2084_v29, %v1996_v43  ;;  %2310 = vmatmul.bf16.gmra.mxu0 %v6746_v38 }
 0x274   : > { %6744 = vst [vmem:[#allocation14_spill] sm:$0xff] %v5842_v6  ;;  %2399 = vmatmul.bf16.gmra.mxu1 %v6747_v16  ;;  %v6753_v6 = vld [vmem:[#allocation20_spill] sm:$0xff] }
 0x275   : > { %6745 = vst [vmem:[#allocation48_spill] sm:$0xff] %v5845_v30  ;;  %2488 = vmatmul.bf16.gmra.mxu2 %v6748_v12 }
 0x276   : > { %2577 = vmatmul.bf16.gmra.mxu3 %v6749_v5  ;;  %v6752_v5 = vld [vmem:[#allocation19_spill] sm:$0xff] }
 0x278   : > { %v2173_v54 = vpop.f32.mrf.mxu2  ;;  %v1997_v34 = vpop.f32.mrf.mxu0 }
 0x279   : > { %v2262_v41 = vpop.f32.mrf.mxu3  ;;  %v1998_v61 = vadd.f32 %v1997_v34, %v5574_v51  ;;  %v2086_v35 = vpop.f32.mrf.mxu1  ;;  %v6754_v51 = vld [vmem:[#allocation55_spill] sm:$0xff] }
 0x27a   : > { %v5851_v59 = vadd.f32 %v2262_v41, %v2173_v54 }
 0x27b   : > { %v5854_v24 = vadd.f32 %v2086_v35, %v1998_v61  ;;  %v6755_v35 = vld [vmem:[#allocation58_spill] sm:$0xff] }
 0x280   : > { %v2175_v8 = vpop.f32.mrf.mxu2  ;;  %v2000_v29 = vpop.f32.mrf.mxu0 }
 0x281   : > { %v2264_v43 = vpop.f32.mrf.mxu3  ;;  %v2001_v16 = vadd.f32 %v2000_v29, %v5580_v52  ;;  %v2089_v12 = vpop.f32.mrf.mxu1 }
 0x282   : > { %v5856_v38 = vadd.f32 %v2264_v43, %v2175_v8 }
 0x283   : > { %v5859_v30 = vadd.f32 %v2089_v12, %v2001_v16  ;;  %2315 = vmatmul.bf16.gmra.mxu0 %v6752_v5 }
 0x284   : > { %6750 = vst [vmem:[#allocation49_spill] sm:$0xff] %v5856_v38  ;;  %2404 = vmatmul.bf16.gmra.mxu1 %v6753_v6  ;;  %v6759_v38 = vld [vmem:[#allocation22_spill] sm:$0xff] }
 0x285   : > { %6751 = vst [vmem:[#allocation15_spill] sm:$0xff] %v5859_v30  ;;  %2493 = vmatmul.bf16.gmra.mxu2 %v5570_v39 }
 0x286   : > { %2582 = vmatmul.bf16.gmra.mxu3 %v6754_v51  ;;  %v6758_v51 = vld [vmem:[#allocation21_spill] sm:$0xff] }
 0x288   : > { %v2178_v54 = vpop.f32.mrf.mxu2  ;;  %v2002_v34 = vpop.f32.mrf.mxu0 }
 0x289   : > { %v2267_v41 = vpop.f32.mrf.mxu3  ;;  %v2003_v8 = vadd.f32 %v2002_v34, %v6755_v35  ;;  %v2091_v43 = vpop.f32.mrf.mxu1 }
 0x28a   : > { %v5865_v61 = vadd.f32 %v2267_v41, %v2178_v54  ;;  %v6760_v54 = vld [vmem:[#allocation56_spill] sm:$0xff]  ;;  %v6761_v41 = vld [vmem:[#allocation57_spill] sm:$0xff] }
 0x28b   : > { %v5868_v52 = vadd.f32 %v2091_v43, %v2003_v8 }
 0x290   : > { %v2180_v29 = vpop.f32.mrf.mxu2  ;;  %v2005_v12 = vpop.f32.mrf.mxu0 }
 0x291   : > { %v2269_v16 = vpop.f32.mrf.mxu3  ;;  %v2006_v6 = vadd.f32 %v2005_v12, %v5598_v0  ;;  %v2094_v39 = vpop.f32.mrf.mxu1 }
 0x292   : > { %v5870_v5 = vadd.f32 %v2269_v16, %v2180_v29 }
 0x293   : > { %v5873_v30 = vadd.f32 %v2094_v39, %v2006_v6  ;;  %2320 = vmatmul.bf16.gmra.mxu0 %v6758_v51 }
 0x294   : > { %6756 = vst [vmem:[#allocation16_spill] sm:$0xff] %v5870_v5  ;;  %2409 = vmatmul.bf16.gmra.mxu1 %v6759_v38  ;;  %v6767_v5 = vld [vmem:[#allocation24_spill] sm:$0xff] }
 0x295   : > { %6757 = vst [vmem:[#allocation51_spill] sm:$0xff] %v5873_v30  ;;  %2498 = vmatmul.bf16.gmra.mxu2 %v6760_v54 }
 0x296   : > { %2587 = vmatmul.bf16.gmra.mxu3 %v6761_v41  ;;  %v6766_v41 = vld [vmem:[#allocation23_spill] sm:$0xff] }
 0x298   : > { %v2183_v34 = vpop.f32.mrf.mxu2  ;;  %v2007_v8 = vpop.f32.mrf.mxu0 }
 0x299   : > { %v2272_v35 = vpop.f32.mrf.mxu3  ;;  %v2008_v29 = vadd.f32 %v2007_v8, %v5606_v28  ;;  %v2096_v16 = vpop.f32.mrf.mxu1 }
 0x29a   : > { %v5879_v43 = vadd.f32 %v2272_v35, %v2183_v34 }
 0x29b   : > { %v5882_v0 = vadd.f32 %v2096_v16, %v2008_v29 }
 0x29c   : > { %6762 = vst [vmem:[#allocation54_spill] sm:$0xff] %v5879_v43 }
 0x29d   : > { %6763 = vst [vmem:[#allocation17_spill] sm:$0xff] %v5882_v0 }
 0x2a0   : > { %v2185_v12 = vpop.f32.mrf.mxu2  ;;  %v2010_v39 = vpop.f32.mrf.mxu0 }
 0x2a1   : > { %v2274_v6 = vpop.f32.mrf.mxu3  ;;  %v2011_v38 = vadd.f32 %v2010_v39, %v5612_v23  ;;  %v2099_v54 = vpop.f32.mrf.mxu1 }
 0x2a2   : > { %v5884_v51 = vadd.f32 %v2274_v6, %v2185_v12 }
 0x2a3   : > { %v5887_v30 = vadd.f32 %v2099_v54, %v2011_v38  ;;  %2325 = vmatmul.bf16.gmra.mxu0 %v6766_v41  ;;  %v6773_v41 = vld [vmem:[#allocation25_spill] sm:$0xff] }
 0x2a4   : > { %6764 = vst [vmem:[#allocation18_spill] sm:$0xff] %v5884_v51  ;;  %2414 = vmatmul.bf16.gmra.mxu1 %v6767_v5  ;;  %v6771_v5 = vld [vmem:[#allocation61_spill] sm:$0xff] }
 0x2a5   : > { %6765 = vst [vmem:[#allocation52_spill] sm:$0xff] %v5887_v30  ;;  %2503 = vmatmul.bf16.gmra.mxu2 %v5602_v13 }
 0x2a6   : > { %2592 = vmatmul.bf16.gmra.mxu3 %v5604_v36 }
 0x2a8   : > { %v2188_v28 = vpop.f32.mrf.mxu2  ;;  %v2012_v35 = vpop.f32.mrf.mxu0 }
 0x2a9   : > { %v2277_v34 = vpop.f32.mrf.mxu3  ;;  %v2013_v29 = vadd.f32 %v2012_v35, %v5618_v25  ;;  %v2101_v16 = vpop.f32.mrf.mxu1  ;;  %v6776_v25 = vld [vmem:[#allocation60_spill] sm:$0xff] }
 0x2aa   : > { %v5893_v8 = vadd.f32 %v2277_v34, %v2188_v28  ;;  %v6774_v28 = vld [vmem:[#allocation26_spill] sm:$0xff]  ;;  %v6775_v34 = vld [vmem:[#allocation59_spill] sm:$0xff] }
 0x2ab   : > { %v5896_v23 = vadd.f32 %v2101_v16, %v2013_v29 }
 0x2ac   : > { %6768 = vst [vmem:[#allocation53_spill] sm:$0xff] %v5893_v8 }
 0x2ad   : > { %6769 = vst [vmem:[#allocation19_spill] sm:$0xff] %v5896_v23 }
 0x2b0   : > { %v2190_v12 = vpop.f32.mrf.mxu2  ;;  %v2015_v39 = vpop.f32.mrf.mxu0 }
 0x2b1   : > { %v2279_v6 = vpop.f32.mrf.mxu3  ;;  %v2016_v13 = vadd.f32 %v2015_v39, %v6771_v5  ;;  %v2104_v54 = vpop.f32.mrf.mxu1 }
 0x2b2   : > { %v5898_v38 = vadd.f32 %v2279_v6, %v2190_v12  ;;  %v6778_v12 = vld [vmem:[#allocation64_spill] sm:$0xff] }
 0x2b3   : > { %v5901_v36 = vadd.f32 %v2104_v54, %v2016_v13  ;;  %2330 = vmatmul.bf16.gmra.mxu0 %v6773_v41 }
 0x2b4   : > { %6770 = vst [vmem:[#allocation20_spill] sm:$0xff] %v5898_v38  ;;  %2419 = vmatmul.bf16.gmra.mxu1 %v6774_v28 }
 0x2b5   : > { %6772 = vst [vmem:[#allocation55_spill] sm:$0xff] %v5901_v36  ;;  %2508 = vmatmul.bf16.gmra.mxu2 %v6775_v34  ;;  %v6782_v36 = vld [vmem:[#allocation27_spill] sm:$0xff] }
 0x2b6   : > { %2597 = vmatmul.bf16.gmra.mxu3 %v6776_v25 }
 0x2b8   : > { %v2193_v35 = vpop.f32.mrf.mxu2  ;;  %v2017_v16 = vpop.f32.mrf.mxu0 }
 0x2b9   : > { %v2282_v29 = vpop.f32.mrf.mxu3  ;;  %v2018_v6 = vadd.f32 %v2017_v16, %v6778_v12  ;;  %v2106_v38 = vpop.f32.mrf.mxu1  ;;  %v6785_v16 = vld [vmem:[#allocation63_spill] sm:$0xff] }
 0x2ba   : > { %v5907_v23 = vadd.f32 %v2282_v29, %v2193_v35  ;;  %v6783_v35 = vld [vmem:[#allocation28_spill] sm:$0xff]  ;;  %v6784_v29 = vld [vmem:[#allocation62_spill] sm:$0xff] }
 0x2bb   : > { %v5910_v39 = vadd.f32 %v2106_v38, %v2018_v6  ;;  %v294_v38 = vld [vmem:[%s254_s6] sm:$0x3] }
 0x2bc   : > { %6777 = vst [vmem:[#allocation58_spill] sm:$0xff] %v5907_v23  ;;  %v5922_v6 = vperm.slane %v294_v38, 0 }
 0x2bd   : > { %6779 = vst [vmem:[#allocation21_spill] sm:$0xff] %v5910_v39 }
 0x2c0   : > { %v2195_v5 = vpop.f32.mrf.mxu2  ;;  %v2020_v54 = vpop.f32.mrf.mxu0 }
 0x2c1   : > { %v2284_v13 = vpop.f32.mrf.mxu3  ;;  %v2021_v28 = vadd.f32 %v2020_v54, %v5636_v1  ;;  %v2109_v34 = vpop.f32.mrf.mxu1 }
 0x2c2   : > { %v5913_v41 = vadd.f32 %v2284_v13, %v2195_v5 }
 0x2c3   : > { %v5916_v25 = vadd.f32 %v2109_v34, %v2021_v28  ;;  %2335 = vmatmul.bf16.gmra.mxu0 %v6782_v36  ;;  %v5931_v36 = vadd.f32 %v5653_v45, %v5922_v6  ;;  %v6790_v45 = vld [vmem:[#allocation30_spill] sm:$0xff] }
 0x2c4   : > { %6780 = vst [vmem:[#allocation22_spill] sm:$0xff] %v5913_v41  ;;  %2424 = vmatmul.bf16.gmra.mxu1 %v6783_v35 }
 0x2c5   : > { %6781 = vst [vmem:[#allocation56_spill] sm:$0xff] %v5916_v25  ;;  %2513 = vmatmul.bf16.gmra.mxu2 %v6784_v29  ;;  %v2907_v35 = vmul.f32 0.044715, %v5931_v36 }
 0x2c6   : > { %2602 = vmatmul.bf16.gmra.mxu3 %v6785_v16 }
 0x2c8   : > { %v2198_v12 = vpop.f32.mrf.mxu2  ;;  %v2022_v13 = vpop.f32.mrf.mxu0 }
 0x2c9   : > { %v2287_v5 = vpop.f32.mrf.mxu3  ;;  %v2023_v1 = vadd.f32 %v2022_v13, %v5651_v20  ;;  %v2111_v54 = vpop.f32.mrf.mxu1  ;;  %v2971_v20 = vmul.f32 %v2907_v35, %v5931_v36  ;;  %v5941_v13 = vadd.f32 %v5662_v15, %v5922_v6 }
 0x2ca   : > { %v5924_v41 = vadd.f32 %v2287_v5, %v2198_v12  ;;  %v6789_v5 = vld [vmem:[#allocation29_spill] sm:$0xff] }
 0x2cb   : > { %v5927_v28 = vadd.f32 %v2111_v54, %v2023_v1 }
 0x2cc   : > { %6786 = vst [vmem:[#allocation57_spill] sm:$0xff] %v5924_v41 }
 0x2cd   : > { %6787 = vst [vmem:[#allocation23_spill] sm:$0xff] %v5927_v28 }
 0x2d0   : > { %v2200_v34 = vpop.f32.mrf.mxu2  ;;  %v2301_v16 = vpop.f32.mrf.mxu0 }
 0x2d1   : > { %v2289_v29 = vpop.f32.mrf.mxu3  ;;  %v2390_v39 = vpop.f32.mrf.mxu1  ;;  %v2302_v12 = vadd.f32 %v2301_v16, %v5659_v27  ;;  %v2909_v27 = vmul.f32 0.044715, %v5941_v13  ;;  %v5948_v16 = vperm.slane %v294_v38, 1 }
 0x2d2   : > { %v5934_v25 = vadd.f32 %v2289_v29, %v2200_v34  ;;  %v3035_v34 = vmul.f32 %v2971_v20, %v5931_v36 }
 0x2d3   : > { %2340 = vmatmul.bf16.gmra.mxu0 %v6789_v5  ;;  %v2391_v1 = vadd.f32 %v2390_v39, %v2302_v12  ;;  %v2973_v39 = vmul.f32 %v2909_v27, %v5941_v13 }
 0x2d4   : > { %6788 = vst [vmem:[#allocation24_spill] sm:$0xff] %v5934_v25  ;;  %2429 = vmatmul.bf16.gmra.mxu1 %v6790_v45 }
 0x2d5   : > { %2518 = vmatmul.bf16.gmra.mxu2 %v5646_v49  ;;  %v5953_v49 = vadd.f32 %v5671_v32, %v5922_v6 }
 0x2d6   : > { %2607 = vmatmul.bf16.gmra.mxu3 %v5648_v53  ;;  %v3099_v53 = vadd.f32 %v3035_v34, %v5931_v36  ;;  %v6791_v34 = vld [vmem:[#allocation67_spill] sm:$0xff] }
 0x2d7   : > { %v2911_v38 = vmul.f32 0.044715, %v5953_v49 }
 0x2d8   : > { %v2479_v54 = vpop.f32.mrf.mxu2  ;;  %v2303_v5 = vpop.f32.mrf.mxu0 }
 0x2d9   : > { %v2480_v29 = vadd.f32 %v2479_v54, %v2391_v1  ;;  %v2568_v35 = vpop.f32.mrf.mxu3  ;;  %v2392_v25 = vpop.f32.mrf.mxu1  ;;  %v2304_v28 = vadd.f32 %v2303_v5, %v5668_v14  ;;  %v3163_v54 = vmul.f32 0.7978846, %v3099_v53  ;;  %v2975_v27 = vmul.f32 %v2911_v38, %v5953_v49 }
 0x2db   : > { %v2569_v15 = vadd.f32 %v2568_v35, %v2480_v29  ;;  %v2393_v45 = vadd.f32 %v2392_v25, %v2304_v28  ;;  %v3037_v29 = vmul.f32 %v2973_v39, %v5941_v13  ;;  %v5964_v25 = vadd.f32 %v5683_v37, %v5922_v6  ;;  %v6792_v28 = vld [vmem:[#allocation31_spill] sm:$0xff] }
 0x2dc   : > { %4697 = vtanh.f32 %v3163_v54 }
 0x2dd   : > { %v2649_v12 = vadd.f32 %v2569_v15, %v5948_v16  ;;  %v3101_v15 = vadd.f32 %v3037_v29, %v5941_v13  ;;  %v2913_v54 = vmul.f32 0.044715, %v5964_v25 }
 0x2df   : > { %v2908_v20 = vmul.f32 0.044715, %v2649_v12  ;;  %v3165_v29 = vmul.f32 0.7978846, %v3101_v15  ;;  %v5984_v15 = vadd.f32 %v5697_v40, %v5922_v6 }
 0x2e0   : > { %v2481_v1 = vpop.f32.mrf.mxu2  ;;  %v2306_v41 = vpop.f32.mrf.mxu0 }
 0x2e1   : > { %v2972_v35 = vmul.f32 %v2908_v20, %v2649_v12  ;;  %v2482_v14 = vadd.f32 %v2481_v1, %v2393_v45  ;;  %v2570_v5 = vpop.f32.mrf.mxu3  ;;  %v2395_v32 = vpop.f32.mrf.mxu1  ;;  %v2307_v30 = vadd.f32 %v2306_v41, %v6791_v34  ;;  %v6793_v20 = vld [vmem:[#allocation32_spill] sm:$0xff]  ;;  %v6794_v45 = vld [vmem:[#allocation65_spill] sm:$0xff]  ;;  %v6795_v41 = vld [vmem:[#allocation66_spill] sm:$0xff] }
 0x2e3   : > { %v3036_v23 = vmul.f32 %v2972_v35, %v2649_v12  ;;  %v2571_v8 = vadd.f32 %v2570_v5, %v2482_v14  ;;  %2345 = vmatmul.bf16.gmra.mxu0 %v6792_v28  ;;  %v2396_v37 = vadd.f32 %v2395_v32, %v2307_v30  ;;  %v3039_v35 = vmul.f32 %v2975_v27, %v5953_v49 }
 0x2e4   : > { %2434 = vmatmul.bf16.gmra.mxu1 %v6793_v20  ;;  %v4698_v20 = vpop.eup %4697  ;;  %v2977_v27 = vmul.f32 %v2913_v54, %v5964_v25 }
 0x2e5   : > { %v3100_v53 = vadd.f32 %v3036_v23, %v2649_v12  ;;  %v5969_v39 = vadd.f32 %v2571_v8, %v5948_v16  ;;  %2523 = vmatmul.bf16.gmra.mxu2 %v6794_v45  ;;  %v3103_v32 = vadd.f32 %v3039_v35, %v5953_v49 }
 0x2e6   : > { %2612 = vmatmul.bf16.gmra.mxu3 %v6795_v41  ;;  %v3041_v54 = vmul.f32 %v2977_v27, %v5964_v25  ;;  %v6001_v27 = vadd.f32 %v5706_v9, %v5922_v6 }
 0x2e7   : > { %v3164_v38 = vmul.f32 0.7978846, %v3100_v53  ;;  %v2910_v1 = vmul.f32 0.044715, %v5969_v39 }
 0x2e8   : > { %v2484_v14 = vpop.f32.mrf.mxu2  ;;  %v2308_v34 = vpop.f32.mrf.mxu0 }
 0x2e9   : > { %4699 = vtanh.f32 %v3164_v38  ;;  %v2974_v8 = vmul.f32 %v2910_v1, %v5969_v39  ;;  %v2485_v23 = vadd.f32 %v2484_v14, %v2396_v37  ;;  %v2573_v5 = vpop.f32.mrf.mxu3  ;;  %v2397_v28 = vpop.f32.mrf.mxu1  ;;  %v2309_v30 = vadd.f32 %v2308_v34, %v5694_v33 }
 0x2ea   : > { %4701 = vtanh.f32 %v3165_v29  ;;  %v3291_v1 = vadd.f32 1.0, %v4698_v20  ;;  %v2843_v14 = vmul.f32 0.5, %v5931_v36  ;;  %v2844_v29 = vmul.f32 0.5, %v2649_v12 }
 0x2eb   : > { %v3038_v45 = vmul.f32 %v2974_v8, %v5969_v39  ;;  %v2574_v53 = vadd.f32 %v2573_v5, %v2485_v23  ;;  %v2398_v35 = vadd.f32 %v2397_v28, %v2309_v30  ;;  %v3167_v23 = vmul.f32 0.7978846, %v3103_v32 }
 0x2ec   : > { %v2915_v34 = vmul.f32 0.044715, %v5984_v15  ;;  %v3355_v36 = vmul.f32 %v3291_v1, %v2843_v14  ;;  %v3105_v12 = vadd.f32 %v3041_v54, %v5964_v25 }
 0x2ed   : > { %v3102_v41 = vadd.f32 %v3038_v45, %v5969_v39  ;;  %v5988_v38 = vadd.f32 %v2574_v53, %v5948_v16 }
 0x2ee   : > { %v2979_v1 = vmul.f32 %v2915_v34, %v5984_v15  ;;  %v2846_v34 = vmul.f32 0.5, %v5969_v39 }
 0x2ef   : > { %v4700_v37 = vpop.eup %4699  ;;  %v3166_v8 = vmul.f32 0.7978846, %v3102_v41  ;;  %v2912_v33 = vmul.f32 0.044715, %v5988_v38 }
 0x2f0   : > { %v3292_v40 = vadd.f32 1.0, %v4700_v37  ;;  %v2486_v5 = vpop.f32.mrf.mxu2  ;;  %v2311_v51 = vpop.f32.mrf.mxu0 }
 0x2f1   : > { %4703 = vtanh.f32 %v3166_v8  ;;  %v2976_v45 = vmul.f32 %v2912_v33, %v5988_v38  ;;  %v2487_v20 = vadd.f32 %v2486_v5, %v2398_v35  ;;  %v2575_v53 = vpop.f32.mrf.mxu3  ;;  %v2400_v0 = vpop.f32.mrf.mxu1  ;;  %v2312_v32 = vadd.f32 %v2311_v51, %v5703_v48  ;;  %v6796_v8 = vld [vmem:[#allocation33_spill] sm:$0xff]  ;;  %v6797_v35 = vld [vmem:[#allocation34_spill] sm:$0xff] }
 0x2f2   : > { %v3356_v41 = vmul.f32 %v3292_v40, %v2844_v29  ;;  %v4702_v43 = vpop.eup %4701  ;;  %4705 = vtanh.f32 %v3167_v23  ;;  %v2845_v51 = vmul.f32 0.5, %v5941_v13  ;;  %v3169_v40 = vmul.f32 0.7978846, %v3105_v12 }
 0x2f3   : > { %v3040_v28 = vmul.f32 %v2976_v45, %v5988_v38  ;;  %v2576_v30 = vadd.f32 %v2575_v53, %v2487_v20  ;;  %2350 = vmatmul.bf16.gmra.mxu0 %v6796_v8  ;;  %v3293_v48 = vadd.f32 1.0, %v4702_v43  ;;  %v2401_v29 = vadd.f32 %v2400_v0, %v2312_v32 }
 0x2f4   : > { %v3419_v37 = vpack.c.bf16 %v3356_v41, %v3355_v36  ;;  %2439 = vmatmul.bf16.gmra.mxu1 %v6797_v35  ;;  %v2917_v5 = vmul.f32 0.044715, %v6001_v27  ;;  %v3043_v45 = vmul.f32 %v2979_v1, %v5984_v15 }
 0x2f5   : > { %v3104_v14 = vadd.f32 %v3040_v28, %v5988_v38  ;;  %v6007_v33 = vadd.f32 %v2576_v30, %v5948_v16  ;;  %2528 = vmatmul.bf16.gmra.mxu2 %v5690_v19  ;;  %v3357_v13 = vmul.f32 %v3293_v48, %v2845_v51 }
 0x2f6   : > { %3451 = vst [vmem:[%s6011_s19] sm:$0xff] %v3419_v37  ;;  %2617 = vmatmul.bf16.gmra.mxu3 %v5692_v2  ;;  %v2981_v12 = vmul.f32 %v2917_v5, %v6001_v27  ;;  %v6798_v37 = vld [vmem:[#allocation70_spill] sm:$0xff] }
 0x2f7   : > { %v4704_v9 = vpop.eup %4703  ;;  %v3168_v23 = vmul.f32 0.7978846, %v3104_v14  ;;  %v2914_v54 = vmul.f32 0.044715, %v6007_v33  ;;  %v6026_v8 = vadd.f32 %v6798_v37, %v5922_v6  ;;  %v3107_v14 = vadd.f32 %v3043_v45, %v5984_v15 }
 0x2f8   : > { %v3294_v19 = vadd.f32 1.0, %v4704_v9  ;;  %v2489_v43 = vpop.f32.mrf.mxu2  ;;  %v2313_v36 = vpop.f32.mrf.mxu0  ;;  %v3045_v5 = vmul.f32 %v2981_v12, %v6001_v27 }
 0x2f9   : > { %4707 = vtanh.f32 %v3168_v23  ;;  %v2978_v20 = vmul.f32 %v2914_v54, %v6007_v33  ;;  %v2490_v2 = vadd.f32 %v2489_v43, %v2401_v29  ;;  %v2578_v53 = vpop.f32.mrf.mxu3  ;;  %v2402_v28 = vpop.f32.mrf.mxu1  ;;  %v2314_v39 = vadd.f32 %v2313_v36, %v5712_v17 }
 0x2fa   : > { %v3358_v41 = vmul.f32 %v3294_v19, %v2846_v34  ;;  %v4706_v0 = vpop.eup %4705  ;;  %4709 = vtanh.f32 %v3169_v40  ;;  %v2847_v17 = vmul.f32 0.5, %v5953_v49  ;;  %v2919_v40 = vmul.f32 0.044715, %v6026_v8 }
 0x2fb   : > { %v3042_v30 = vmul.f32 %v2978_v20, %v6007_v33  ;;  %v2579_v32 = vadd.f32 %v2578_v53, %v2490_v2  ;;  %v3295_v9 = vadd.f32 1.0, %v4706_v0  ;;  %v2403_v29 = vadd.f32 %v2402_v28, %v2314_v39 }
 0x2fc   : > { %v3420_v1 = vpack.c.bf16 %v3358_v41, %v3357_v13  ;;  %v2848_v34 = vmul.f32 0.5, %v5988_v38  ;;  %v3171_v45 = vmul.f32 0.7978846, %v3107_v14  ;;  %v3109_v38 = vadd.f32 %v3045_v5, %v6001_v27 }
 0x2fd   : > { %v3106_v35 = vadd.f32 %v3042_v30, %v6007_v33  ;;  %v6031_v48 = vadd.f32 %v2579_v32, %v5948_v16  ;;  %v3359_v49 = vmul.f32 %v3295_v9, %v2847_v17  ;;  %v6799_v32 = vld [vmem:[#allocation71_spill] sm:$0xff]  ;;  %v2983_v12 = vmul.f32 %v2919_v40, %v6026_v8  ;;  %v6802_v17 = vld [vmem:[#allocation68_spill] sm:$0xff] }
 0x2fe   : > { %3452 = vst [vmem:[%s6011_s19 + $0x8] sm:$0xff] %v3420_v1  ;;  %v6800_v1 = vld [vmem:[#allocation35_spill] sm:$0xff]  ;;  %v6047_v14 = vadd.f32 %v5727_v11, %v5922_v6  ;;  %v2849_v5 = vmul.f32 0.5, %v5964_v25 }
 0x2ff   : > { %v4708_v51 = vpop.eup %4707  ;;  %v3170_v23 = vmul.f32 0.7978846, %v3106_v35  ;;  %v2916_v54 = vmul.f32 0.044715, %v6031_v48 }
 0x300   : > { %v3296_v19 = vadd.f32 1.0, %v4708_v51  ;;  %v2491_v43 = vpop.f32.mrf.mxu2  ;;  %v2316_v36 = vpop.f32.mrf.mxu0  ;;  %v6801_v51 = vld [vmem:[#allocation36_spill] sm:$0xff] }
 0x301   : > { %4711 = vtanh.f32 %v3170_v23  ;;  %v2980_v20 = vmul.f32 %v2916_v54, %v6031_v48  ;;  %v2492_v2 = vadd.f32 %v2491_v43, %v2403_v29  ;;  %v2580_v53 = vpop.f32.mrf.mxu3  ;;  %v2405_v41 = vpop.f32.mrf.mxu1  ;;  %v2317_v39 = vadd.f32 %v2316_v36, %v6799_v32  ;;  %v6803_v54 = vld [vmem:[#allocation69_spill] sm:$0xff] }
 0x302   : > { %v3360_v13 = vmul.f32 %v3296_v19, %v2848_v34  ;;  %v4710_v28 = vpop.eup %4709  ;;  %4713 = vtanh.f32 %v3171_v45  ;;  %v3173_v19 = vmul.f32 0.7978846, %v3109_v38  ;;  %v3047_v43 = vmul.f32 %v2983_v12, %v6026_v8 }
 0x303   : > { %v3044_v0 = vmul.f32 %v2980_v20, %v6031_v48  ;;  %v2581_v30 = vadd.f32 %v2580_v53, %v2492_v2  ;;  %2355 = vmatmul.bf16.gmra.mxu0 %v6800_v1  ;;  %v3297_v23 = vadd.f32 1.0, %v4710_v28  ;;  %v2406_v34 = vadd.f32 %v2405_v41, %v2317_v39 }
 0x304   : > { %v3421_v37 = vpack.c.bf16 %v3360_v13, %v3359_v49  ;;  %2444 = vmatmul.bf16.gmra.mxu1 %v6801_v51  ;;  %v2850_v45 = vmul.f32 0.5, %v6007_v33  ;;  %v2921_v53 = vmul.f32 0.044715, %v6047_v14  ;;  %v3111_v38 = vadd.f32 %v3047_v43, %v6026_v8 }
 0x305   : > { %v3108_v35 = vadd.f32 %v3044_v0, %v6031_v48  ;;  %v6051_v9 = vadd.f32 %v2581_v30, %v5948_v16  ;;  %2533 = vmatmul.bf16.gmra.mxu2 %v6802_v17  ;;  %v3361_v25 = vmul.f32 %v3297_v23, %v2849_v5  ;;  %v6068_v12 = vadd.f32 %v5741_v31, %v5922_v6 }
 0x306   : > { %3453 = vst [vmem:[%s6011_s19 + $0x10] sm:$0xff] %v3421_v37  ;;  %2622 = vmatmul.bf16.gmra.mxu3 %v6803_v54  ;;  %v2985_v1 = vmul.f32 %v2921_v53, %v6047_v14  ;;  %v3175_v31 = vmul.f32 0.7978846, %v3111_v38 }
 0x307   : > { %v4712_v29 = vpop.eup %4711  ;;  %v3172_v40 = vmul.f32 0.7978846, %v3108_v35  ;;  %v2918_v11 = vmul.f32 0.044715, %v6051_v9 }
 0x308   : > { %v3298_v20 = vadd.f32 1.0, %v4712_v29  ;;  %v2494_v2 = vpop.f32.mrf.mxu2  ;;  %v2318_v28 = vpop.f32.mrf.mxu0  ;;  %v3049_v43 = vmul.f32 %v2985_v1, %v6047_v14  ;;  %v2853_v1 = vmul.f32 0.5, %v6001_v27 }
 0x309   : > { %4715 = vtanh.f32 %v3172_v40  ;;  %v2982_v36 = vmul.f32 %v2918_v11, %v6051_v9  ;;  %v2495_v49 = vadd.f32 %v2494_v2, %v2406_v34  ;;  %v2583_v13 = vpop.f32.mrf.mxu3  ;;  %v2407_v30 = vpop.f32.mrf.mxu1  ;;  %v2319_v33 = vadd.f32 %v2318_v28, %v5738_v44 }
 0x30a   : > { %v3362_v0 = vmul.f32 %v3298_v20, %v2850_v45  ;;  %v4714_v41 = vpop.eup %4713  ;;  %4717 = vtanh.f32 %v3173_v19  ;;  %v2851_v44 = vmul.f32 0.5, %v5984_v15  ;;  %v2923_v40 = vmul.f32 0.044715, %v6068_v12 }
 0x30b   : > { %v3046_v32 = vmul.f32 %v2982_v36, %v6051_v9  ;;  %v2584_v39 = vadd.f32 %v2583_v13, %v2495_v49  ;;  %v3299_v17 = vadd.f32 1.0, %v4714_v41  ;;  %v2408_v5 = vadd.f32 %v2407_v30, %v2319_v33 }
 0x30c   : > { %v3422_v37 = vpack.c.bf16 %v3362_v0, %v3361_v25  ;;  %v2852_v11 = vmul.f32 0.5, %v6031_v48  ;;  %v2987_v0 = vmul.f32 %v2923_v40, %v6068_v12  ;;  %v6087_v30 = vadd.f32 %v5750_v56, %v5922_v6 }
 0x30d   : > { %v3110_v35 = vadd.f32 %v3046_v32, %v6051_v9  ;;  %v6073_v51 = vadd.f32 %v2584_v39, %v5948_v16  ;;  %v3363_v15 = vmul.f32 %v3299_v17, %v2851_v44  ;;  %v6804_v32 = vld [vmem:[#allocation37_spill] sm:$0xff]  ;;  %v3113_v39 = vadd.f32 %v3049_v43, %v6047_v14 }
 0x30e   : > { %3454 = vst [vmem:[%s6011_s19 + $0x18] sm:$0xff] %v3422_v37  ;;  %v6805_v37 = vld [vmem:[#allocation38_spill] sm:$0xff]  ;;  %v3051_v44 = vmul.f32 %v2987_v0, %v6068_v12 }
 0x30f   : > { %v4716_v23 = vpop.eup %4715  ;;  %v3174_v54 = vmul.f32 0.7978846, %v3110_v35  ;;  %v2920_v29 = vmul.f32 0.044715, %v6073_v51 }
 0x310   : > { %v3300_v34 = vadd.f32 1.0, %v4716_v23  ;;  %v2496_v19 = vpop.f32.mrf.mxu2  ;;  %v2321_v53 = vpop.f32.mrf.mxu0 }
 0x311   : > { %4719 = vtanh.f32 %v3174_v54  ;;  %v2984_v45 = vmul.f32 %v2920_v29, %v6073_v51  ;;  %v2497_v20 = vadd.f32 %v2496_v19, %v2408_v5  ;;  %v2585_v2 = vpop.f32.mrf.mxu3  ;;  %v2410_v49 = vpop.f32.mrf.mxu1  ;;  %v2322_v48 = vadd.f32 %v2321_v53, %v5747_v10 }
 0x312   : > { %v3364_v36 = vmul.f32 %v3300_v34, %v2852_v11  ;;  %v4718_v13 = vpop.eup %4717  ;;  %4721 = vtanh.f32 %v3175_v31  ;;  %v2925_v54 = vmul.f32 0.044715, %v6087_v30  ;;  %v2854_v29 = vmul.f32 0.5, %v6051_v9 }
 0x313   : > { %v3048_v28 = vmul.f32 %v2984_v45, %v6073_v51  ;;  %v2586_v25 = vadd.f32 %v2585_v2, %v2497_v20  ;;  %2360 = vmatmul.bf16.gmra.mxu0 %v6804_v32  ;;  %v3301_v10 = vadd.f32 1.0, %v4718_v13  ;;  %v2411_v23 = vadd.f32 %v2410_v49, %v2322_v48  ;;  %v6806_v49 = vld [vmem:[#allocation74_spill] sm:$0xff] }
 0x314   : > { %v3423_v41 = vpack.c.bf16 %v3364_v36, %v3363_v15  ;;  %2449 = vmatmul.bf16.gmra.mxu1 %v6805_v37  ;;  %v3115_v9 = vadd.f32 %v3051_v44, %v6068_v12  ;;  %v2989_v15 = vmul.f32 %v2925_v54, %v6087_v30  ;;  %v6111_v13 = vadd.f32 %v6806_v49, %v5922_v6 }
 0x315   : > { %v3112_v33 = vadd.f32 %v3048_v28, %v6073_v51  ;;  %v6093_v38 = vadd.f32 %v2586_v25, %v5948_v16  ;;  %2538 = vmatmul.bf16.gmra.mxu2 %v5734_v55  ;;  %v3177_v55 = vmul.f32 0.7978846, %v3113_v39  ;;  %v3365_v27 = vmul.f32 %v3301_v10, %v2853_v1 }
 0x316   : > { %3455 = vst [vmem:[%s6011_s19 + $0x20] sm:$0xff] %v3423_v41  ;;  %2627 = vmatmul.bf16.gmra.mxu3 %v5736_v18  ;;  %v3053_v37 = vmul.f32 %v2989_v15, %v6087_v30  ;;  %v2856_v10 = vmul.f32 0.5, %v6073_v51  ;;  %v6811_v15 = vld [vmem:[#allocation73_spill] sm:$0xff] }
 0x317   : > { %v4720_v56 = vpop.eup %4719  ;;  %v3176_v35 = vmul.f32 0.7978846, %v3112_v33  ;;  %v2922_v17 = vmul.f32 0.044715, %v6093_v38  ;;  %v3179_v33 = vmul.f32 0.7978846, %v3115_v9 }
 0x318   : > { %v3302_v5 = vadd.f32 1.0, %v4720_v56  ;;  %v2499_v31 = vpop.f32.mrf.mxu2  ;;  %v2323_v34 = vpop.f32.mrf.mxu0 }
 0x319   : > { %4723 = vtanh.f32 %v3176_v35  ;;  %v2986_v40 = vmul.f32 %v2922_v17, %v6093_v38  ;;  %v2500_v18 = vadd.f32 %v2499_v31, %v2411_v23  ;;  %v2588_v11 = vpop.f32.mrf.mxu3  ;;  %v2412_v43 = vpop.f32.mrf.mxu1  ;;  %v2324_v53 = vadd.f32 %v2323_v34, %v5756_v50 }
 0x31a   : > { %v3366_v19 = vmul.f32 %v3302_v5, %v2854_v29  ;;  %v4722_v45 = vpop.eup %4721  ;;  %4725 = vtanh.f32 %v3177_v55  ;;  %v2855_v50 = vmul.f32 0.5, %v6026_v8  ;;  %v2927_v35 = vmul.f32 0.044715, %v6111_v13 }
 0x31b   : > { %v3050_v20 = vmul.f32 %v2986_v40, %v6093_v38  ;;  %v2589_v2 = vadd.f32 %v2588_v11, %v2500_v18  ;;  %v3303_v48 = vadd.f32 1.0, %v4722_v45  ;;  %v2413_v39 = vadd.f32 %v2412_v43, %v2324_v53  ;;  %v6807_v18 = vld [vmem:[#allocation75_spill] sm:$0xff]  ;;  %v6810_v53 = vld [vmem:[#allocation72_spill] sm:$0xff] }
 0x31c   : > { %v3424_v36 = vpack.c.bf16 %v3366_v19, %v3365_v27  ;;  %v3117_v11 = vadd.f32 %v3053_v37, %v6087_v30  ;;  %v6129_v34 = vadd.f32 %v5771_v22, %v5922_v6  ;;  %v6808_v19 = vld [vmem:[#allocation39_spill] sm:$0xff]  ;;  %v2991_v43 = vmul.f32 %v2927_v35, %v6111_v13 }
 0x31d   : > { %v3114_v28 = vadd.f32 %v3050_v20, %v6093_v38  ;;  %v6115_v25 = vadd.f32 %v2589_v2, %v5948_v16  ;;  %v3367_v8 = vmul.f32 %v3303_v48, %v2855_v50  ;;  %v6809_v2 = vld [vmem:[#allocation40_spill] sm:$0xff] }
 0x31e   : > { %3456 = vst [vmem:[%s6011_s19 + $0x28] sm:$0xff] %v3424_v36  ;;  %v2857_v36 = vmul.f32 0.5, %v6047_v14  ;;  %v2929_v50 = vmul.f32 0.044715, %v6129_v34 }
 0x31f   : > { %v4724_v0 = vpop.eup %4723  ;;  %v3178_v41 = vmul.f32 0.7978846, %v3114_v28  ;;  %v2924_v32 = vmul.f32 0.044715, %v6115_v25 }
 0x320   : > { %v3304_v56 = vadd.f32 1.0, %v4724_v0  ;;  %v2501_v1 = vpop.f32.mrf.mxu2  ;;  %v2326_v54 = vpop.f32.mrf.mxu0  ;;  %v3181_v0 = vmul.f32 0.7978846, %v3117_v11 }
 0x321   : > { %4727 = vtanh.f32 %v3178_v41  ;;  %v2988_v17 = vmul.f32 %v2924_v32, %v6115_v25  ;;  %v2502_v23 = vadd.f32 %v2501_v1, %v2413_v39  ;;  %v2590_v44 = vpop.f32.mrf.mxu3  ;;  %v2415_v5 = vpop.f32.mrf.mxu1  ;;  %v2327_v51 = vadd.f32 %v2326_v54, %v6807_v18 }
 0x322   : > { %v3368_v29 = vmul.f32 %v3304_v56, %v2856_v10  ;;  %v4726_v31 = vpop.eup %4725  ;;  %4729 = vtanh.f32 %v3179_v33  ;;  %v2858_v41 = vmul.f32 0.5, %v6093_v38  ;;  %v3055_v33 = vmul.f32 %v2991_v43, %v6111_v13 }
 0x323   : > { %v3052_v55 = vmul.f32 %v2988_v17, %v6115_v25  ;;  %v2591_v40 = vadd.f32 %v2590_v44, %v2502_v23  ;;  %2365 = vmatmul.bf16.gmra.mxu0 %v6808_v19  ;;  %v3305_v9 = vadd.f32 1.0, %v4726_v31  ;;  %v2416_v48 = vadd.f32 %v2415_v5, %v2327_v51 }
 0x324   : > { %v3425_v27 = vpack.c.bf16 %v3368_v29, %v3367_v8  ;;  %2454 = vmatmul.bf16.gmra.mxu1 %v6809_v2  ;;  %v2993_v8 = vmul.f32 %v2929_v50, %v6129_v34  ;;  %v6152_v29 = vadd.f32 %v5785_v63, %v5922_v6  ;;  %v3119_v31 = vadd.f32 %v3055_v33, %v6111_v13 }
 0x325   : > { %v3116_v45 = vadd.f32 %v3052_v55, %v6115_v25  ;;  %v6135_v20 = vadd.f32 %v2591_v40, %v5948_v16  ;;  %2543 = vmatmul.bf16.gmra.mxu2 %v6810_v53  ;;  %v3369_v14 = vmul.f32 %v3305_v9, %v2857_v36 }
 0x326   : > { %3457 = vst [vmem:[%s6011_s19 + $0x30] sm:$0xff] %v3425_v27  ;;  %2632 = vmatmul.bf16.gmra.mxu3 %v6811_v15  ;;  %v3057_v63 = vmul.f32 %v2993_v8, %v6129_v34  ;;  %v2931_v43 = vmul.f32 0.044715, %v6152_v29  ;;  %v3183_v9 = vmul.f32 0.7978846, %v3119_v31 }
 0x327   : > { %v4728_v22 = vpop.eup %4727  ;;  %v3180_v49 = vmul.f32 0.7978846, %v3116_v45  ;;  %v2926_v28 = vmul.f32 0.044715, %v6135_v20  ;;  %v2860_v45 = vmul.f32 0.5, %v6115_v25  ;;  %v2862_v8 = vmul.f32 0.5, %v6135_v20 }
 0x328   : > { %v3306_v32 = vadd.f32 1.0, %v4728_v22  ;;  %v2504_v39 = vpop.f32.mrf.mxu2  ;;  %v2328_v1 = vpop.f32.mrf.mxu0  ;;  %v3121_v25 = vadd.f32 %v3057_v63, %v6129_v34 }
 0x329   : > { %4731 = vtanh.f32 %v3180_v49  ;;  %v2990_v37 = vmul.f32 %v2926_v28, %v6135_v20  ;;  %v2505_v10 = vadd.f32 %v2504_v39, %v2416_v48  ;;  %v2593_v56 = vpop.f32.mrf.mxu3  ;;  %v2417_v17 = vpop.f32.mrf.mxu1  ;;  %v2329_v38 = vadd.f32 %v2328_v1, %v5782_v42 }
 0x32a   : > { %v3370_v35 = vmul.f32 %v3306_v32, %v2858_v41  ;;  %v4730_v23 = vpop.eup %4729  ;;  %4733 = vtanh.f32 %v3181_v0  ;;  %v2859_v42 = vmul.f32 0.5, %v6068_v12  ;;  %v2995_v39 = vmul.f32 %v2931_v43, %v6152_v29 }
 0x32b   : > { %v3054_v44 = vmul.f32 %v2990_v37, %v6135_v20  ;;  %v2594_v54 = vadd.f32 %v2593_v56, %v2505_v10  ;;  %v3307_v18 = vadd.f32 1.0, %v4730_v23  ;;  %v2418_v19 = vadd.f32 %v2417_v17, %v2329_v38  ;;  %v6812_v37 = vld [vmem:[#allocation42_spill] sm:$0xff] }
 0x32c   : > { %v3426_v5 = vpack.c.bf16 %v3370_v35, %v3369_v14  ;;  %v6173_v10 = vadd.f32 %v5794_v62, %v5922_v6  ;;  %v6813_v14 = vld [vmem:[#allocation43_spill] sm:$0xff]  ;;  %v2861_v17 = vmul.f32 0.5, %v6087_v30  ;;  %v3059_v38 = vmul.f32 %v2995_v39, %v6152_v29 }
 0x32d   : > { %v3118_v55 = vadd.f32 %v3054_v44, %v6135_v20  ;;  %v6157_v40 = vadd.f32 %v2594_v54, %v5948_v16  ;;  %v3371_v12 = vmul.f32 %v3307_v18, %v2859_v42  ;;  %v3185_v54 = vmul.f32 0.7978846, %v3121_v25 }
 0x32e   : > { %3458 = vst [vmem:[%s6011_s19 + $0x38] sm:$0xff] %v3426_v5  ;;  %v3123_v43 = vadd.f32 %v3059_v38, %v6152_v29 }
 0x32f   : > { %v4732_v51 = vpop.eup %4731  ;;  %v3182_v11 = vmul.f32 0.7978846, %v3118_v55  ;;  %v2928_v27 = vmul.f32 0.044715, %v6157_v40 }
 0x330   : > { %v3308_v2 = vadd.f32 1.0, %v4732_v51  ;;  %v2506_v53 = vpop.f32.mrf.mxu2  ;;  %v2331_v49 = vpop.f32.mrf.mxu0 }
 0x331   : > { %4735 = vtanh.f32 %v3182_v11  ;;  %v2992_v15 = vmul.f32 %v2928_v27, %v6157_v40  ;;  %v2507_v22 = vadd.f32 %v2506_v53, %v2418_v19  ;;  %v2595_v36 = vpop.f32.mrf.mxu3  ;;  %v2420_v48 = vpop.f32.mrf.mxu1  ;;  %v2332_v32 = vadd.f32 %v2331_v49, %v5791_v57 }
 0x332   : > { %v3372_v28 = vmul.f32 %v3308_v2, %v2860_v45  ;;  %v4734_v0 = vpop.eup %4733  ;;  %4737 = vtanh.f32 %v3183_v9  ;;  %v6814_v45 = vld [vmem:[#allocation77_spill] sm:$0xff] }
 0x333   : > { %v3056_v50 = vmul.f32 %v2992_v15, %v6157_v40  ;;  %v2596_v41 = vadd.f32 %v2595_v36, %v2507_v22  ;;  %2370 = vmatmul.bf16.gmra.mxu0 %v6812_v37  ;;  %v3309_v57 = vadd.f32 1.0, %v4734_v0  ;;  %v2421_v44 = vadd.f32 %v2420_v48, %v2332_v32 }
 0x334   : > { %v3427_v33 = vpack.c.bf16 %v3372_v28, %v3371_v12  ;;  %2459 = vmatmul.bf16.gmra.mxu1 %v6813_v14  ;;  %v6194_v2 = vadd.f32 %v6814_v45, %v5922_v6  ;;  %v3187_v0 = vmul.f32 0.7978846, %v3123_v43 }
 0x335   : > { %v3120_v56 = vadd.f32 %v3056_v50, %v6157_v40  ;;  %v6177_v1 = vadd.f32 %v2596_v41, %v5948_v16  ;;  %2548 = vmatmul.bf16.gmra.mxu2 %v5778_v58  ;;  %v2933_v58 = vmul.f32 0.044715, %v6173_v10  ;;  %v3373_v30 = vmul.f32 %v3309_v57, %v2861_v17 }
 0x336   : > { %3459 = vst [vmem:[%s6011_s19 + $0x40] sm:$0xff] %v3427_v33  ;;  %2637 = vmatmul.bf16.gmra.mxu3 %v5780_v21  ;;  %v2935_v50 = vmul.f32 0.044715, %v6194_v2  ;;  %v2864_v41 = vmul.f32 0.5, %v6157_v40 }
 0x337   : > { %v4736_v35 = vpop.eup %4735  ;;  %v3184_v23 = vmul.f32 0.7978846, %v3120_v56  ;;  %v2930_v62 = vmul.f32 0.044715, %v6177_v1  ;;  %v2997_v9 = vmul.f32 %v2933_v58, %v6173_v10 }
 0x338   : > { %v3310_v5 = vadd.f32 1.0, %v4736_v35  ;;  %v2509_v31 = vpop.f32.mrf.mxu2  ;;  %v2333_v51 = vpop.f32.mrf.mxu0 }
 0x339   : > { %4739 = vtanh.f32 %v3184_v23  ;;  %v2994_v55 = vmul.f32 %v2930_v62, %v6177_v1  ;;  %v2510_v21 = vadd.f32 %v2509_v31, %v2421_v44  ;;  %v2598_v18 = vpop.f32.mrf.mxu3  ;;  %v2422_v11 = vpop.f32.mrf.mxu1  ;;  %v2334_v20 = vadd.f32 %v2333_v51, %v5800_v60 }
 0x33a   : > { %v3374_v42 = vmul.f32 %v3310_v5, %v2862_v8  ;;  %v4738_v27 = vpop.eup %4737  ;;  %4741 = vtanh.f32 %v3185_v54  ;;  %v2863_v60 = vmul.f32 0.5, %v6111_v13  ;;  %v3061_v39 = vmul.f32 %v2997_v9, %v6173_v10  ;;  %v6815_v8 = vld [vmem:[#allocation46_spill] sm:$0xff] }
 0x33b   : > { %v3058_v19 = vmul.f32 %v2994_v55, %v6177_v1  ;;  %v2599_v63 = vadd.f32 %v2598_v18, %v2510_v21  ;;  %v3311_v36 = vadd.f32 1.0, %v4738_v27  ;;  %v2423_v48 = vadd.f32 %v2422_v11, %v2334_v20  ;;  %v6816_v55 = vld [vmem:[#allocation47_spill] sm:$0xff]  ;;  %v6818_v18 = vld [vmem:[#allocation76_spill] sm:$0xff] }
 0x33c   : > { %v3428_v53 = vpack.c.bf16 %v3374_v42, %v3373_v30  ;;  %v2999_v44 = vmul.f32 %v2935_v50, %v6194_v2  ;;  %v6213_v54 = vadd.f32 %v5812_v3, %v5922_v6  ;;  %v3125_v5 = vadd.f32 %v3061_v39, %v6173_v10 }
 0x33d   : > { %v3122_v15 = vadd.f32 %v3058_v19, %v6177_v1  ;;  %v6199_v22 = vadd.f32 %v2599_v63, %v5948_v16  ;;  %v3375_v13 = vmul.f32 %v3311_v36, %v2863_v60  ;;  %v2865_v51 = vmul.f32 0.5, %v6129_v34 }
 0x33e   : > { %3460 = vst [vmem:[%s6011_s19 + $0x48] sm:$0xff] %v3428_v53  ;;  %v3063_v27 = vmul.f32 %v2999_v44, %v6194_v2  ;;  %v2937_v19 = vmul.f32 0.044715, %v6213_v54  ;;  %v2866_v63 = vmul.f32 0.5, %v6177_v1  ;;  %v3189_v45 = vmul.f32 0.7978846, %v3125_v5 }
 0x33f   : > { %v4740_v49 = vpop.eup %4739  ;;  %v3186_v12 = vmul.f32 0.7978846, %v3122_v15  ;;  %v2932_v28 = vmul.f32 0.044715, %v6199_v22 }
 0x340   : > { %v3312_v32 = vadd.f32 1.0, %v4740_v49  ;;  %v2511_v25 = vpop.f32.mrf.mxu2  ;;  %v2336_v14 = vpop.f32.mrf.mxu0  ;;  %v3127_v1 = vadd.f32 %v3063_v27, %v6194_v2 }
 0x341   : > { %4743 = vtanh.f32 %v3186_v12  ;;  %v2996_v33 = vmul.f32 %v2932_v28, %v6199_v22  ;;  %v2512_v37 = vadd.f32 %v2511_v25, %v2423_v48  ;;  %v2600_v56 = vpop.f32.mrf.mxu3  ;;  %v2425_v35 = vpop.f32.mrf.mxu1  ;;  %v2337_v40 = vadd.f32 %v2336_v14, %v5809_v46  ;;  %v6817_v46 = vld [vmem:[#allocation41_spill] sm:$0xff] }
 0x342   : > { %v3376_v57 = vmul.f32 %v3312_v32, %v2864_v41  ;;  %v4742_v17 = vpop.eup %4741  ;;  %4745 = vtanh.f32 %v3187_v0  ;;  %v6819_v0 = vld [vmem:[#allocation44_spill] sm:$0xff]  ;;  %v3001_v41 = vmul.f32 %v2937_v19, %v6213_v54  ;;  %v6820_v25 = vld [vmem:[#allocation45_spill] sm:$0xff] }
 0x343   : > { %v3060_v23 = vmul.f32 %v2996_v33, %v6199_v22  ;;  %v2601_v62 = vadd.f32 %v2600_v56, %v2512_v37  ;;  %2375 = vmatmul.bf16.gmra.mxu0 %v6815_v8  ;;  %v3313_v21 = vadd.f32 1.0, %v4742_v17  ;;  %v2426_v11 = vadd.f32 %v2425_v35, %v2337_v40 }
 0x344   : > { %v3429_v38 = vpack.c.bf16 %v3376_v57, %v3375_v13  ;;  %2464 = vmatmul.bf16.gmra.mxu1 %v6816_v55  ;;  %v6237_v39 = vadd.f32 %v6820_v25, %v5922_v6  ;;  %v2867_v13 = vmul.f32 0.5, %v6152_v29  ;;  %v2868_v40 = vmul.f32 0.5, %v6199_v22 }
 0x345   : > { %v3124_v31 = vadd.f32 %v3060_v23, %v6199_v22  ;;  %v6219_v58 = vadd.f32 %v2601_v62, %v5948_v16  ;;  %2553 = vmatmul.bf16.gmra.mxu2 %v6817_v46  ;;  %v3377_v34 = vmul.f32 %v3313_v21, %v2865_v51  ;;  %v3191_v23 = vmul.f32 0.7978846, %v3127_v1 }
 0x346   : > { %3461 = vst [vmem:[%s6011_s19 + $0x50] sm:$0xff] %v3429_v38  ;;  %2642 = vmatmul.bf16.gmra.mxu3 %v6818_v18  ;;  %v3065_v62 = vmul.f32 %v3001_v41, %v6213_v54  ;;  %v2939_v8 = vmul.f32 0.044715, %v6237_v39 }
 0x347   : > { %v4744_v3 = vpop.eup %4743  ;;  %v3188_v30 = vmul.f32 0.7978846, %v3124_v31  ;;  %v2934_v42 = vmul.f32 0.044715, %v6219_v58 }
 0x348   : > { %v3314_v20 = vadd.f32 1.0, %v4744_v3  ;;  %v2514_v43 = vpop.f32.mrf.mxu2  ;;  %v2338_v36 = vpop.f32.mrf.mxu0  ;;  %v3003_v19 = vmul.f32 %v2939_v8, %v6237_v39 }
 0x349   : > { %4747 = vtanh.f32 %v3188_v30  ;;  %v2998_v53 = vmul.f32 %v2934_v42, %v6219_v58  ;;  %v2515_v9 = vadd.f32 %v2514_v43, %v2426_v11  ;;  %v2603_v15 = vpop.f32.mrf.mxu3  ;;  %v2427_v60 = vpop.f32.mrf.mxu1  ;;  %v2339_v50 = vadd.f32 %v2338_v36, %v6819_v0 }
 0x34a   : > { %v3378_v49 = vmul.f32 %v3314_v20, %v2866_v63  ;;  %v4746_v12 = vpop.eup %4745  ;;  %4749 = vtanh.f32 %v3189_v45  ;;  %v3129_v42 = vadd.f32 %v3065_v62, %v6213_v54  ;;  %v6255_v11 = vadd.f32 %v5826_v47, %v5922_v6 }
 0x34b   : > { %v3062_v28 = vmul.f32 %v2998_v53, %v6219_v58  ;;  %v2604_v48 = vadd.f32 %v2603_v15, %v2515_v9  ;;  %v3315_v56 = vadd.f32 1.0, %v4746_v12  ;;  %v2428_v17 = vadd.f32 %v2427_v60, %v2339_v50 }
 0x34c   : > { %v3430_v32 = vpack.c.bf16 %v3378_v49, %v3377_v34  ;;  %v3193_v47 = vmul.f32 0.7978846, %v3129_v42  ;;  %v2941_v36 = vmul.f32 0.044715, %v6255_v11  ;;  %v2870_v34 = vmul.f32 0.5, %v6219_v58 }
 0x34d   : > { %v3126_v33 = vadd.f32 %v3062_v28, %v6219_v58  ;;  %v6241_v37 = vadd.f32 %v2604_v48, %v5948_v16  ;;  %v3379_v29 = vmul.f32 %v3315_v56, %v2867_v13  ;;  %v3067_v12 = vmul.f32 %v3003_v19, %v6237_v39  ;;  %v6821_v56 = vld [vmem:[#allocation50_spill] sm:$0xff]  ;;  %v6822_v13 = vld [vmem:[#allocation13_spill] sm:$0xff] }
 0x34e   : > { %3462 = vst [vmem:[%s6011_s19 + $0x58] sm:$0xff] %v3430_v32 }
 0x34f   : > { %v4748_v14 = vpop.eup %4747  ;;  %v3190_v57 = vmul.f32 0.7978846, %v3126_v33  ;;  %v2936_v35 = vmul.f32 0.044715, %v6241_v37 }
 0x350   : > { %v3316_v44 = vadd.f32 1.0, %v4748_v14  ;;  %v2516_v38 = vpop.f32.mrf.mxu2  ;;  %v2341_v46 = vpop.f32.mrf.mxu0  ;;  %v3005_v14 = vmul.f32 %v2941_v36, %v6255_v11 }
 0x351   : > { %4751 = vtanh.f32 %v3190_v57  ;;  %v3000_v5 = vmul.f32 %v2936_v35, %v6241_v37  ;;  %v2517_v31 = vadd.f32 %v2516_v38, %v2428_v17  ;;  %v2605_v55 = vpop.f32.mrf.mxu3  ;;  %v2430_v18 = vpop.f32.mrf.mxu1  ;;  %v2342_v22 = vadd.f32 %v2341_v46, %v5823_v7 }
 0x352   : > { %v3380_v21 = vmul.f32 %v3316_v44, %v2868_v40  ;;  %v4750_v3 = vpop.eup %4749  ;;  %4753 = vtanh.f32 %v3191_v23  ;;  %v2869_v7 = vmul.f32 0.5, %v6173_v10  ;;  %v6274_v57 = vadd.f32 %v6822_v13, %v5922_v6 }
 0x353   : > { %v3064_v51 = vmul.f32 %v3000_v5, %v6241_v37  ;;  %v2606_v30 = vadd.f32 %v2605_v55, %v2517_v31  ;;  %v3317_v43 = vadd.f32 1.0, %v4750_v3  ;;  %v2431_v15 = vadd.f32 %v2430_v18, %v2342_v22 }
 0x354   : > { %v3431_v27 = vpack.c.bf16 %v3380_v21, %v3379_v29  ;;  %v3131_v17 = vadd.f32 %v3067_v12, %v6237_v39  ;;  %v2871_v38 = vmul.f32 0.5, %v6194_v2  ;;  %v3069_v55 = vmul.f32 %v3005_v14, %v6255_v11 }
 0x355   : > { %v3128_v63 = vadd.f32 %v3064_v51, %v6241_v37  ;;  %v6260_v20 = vadd.f32 %v2606_v30, %v5948_v16  ;;  %v3381_v10 = vmul.f32 %v3317_v43, %v2869_v7  ;;  %v2943_v46 = vmul.f32 0.044715, %v6274_v57 }
 0x356   : > { %3463 = vst [vmem:[%s6011_s19 + $0x60] sm:$0xff] %v3431_v27  ;;  %v2872_v29 = vmul.f32 0.5, %v6241_v37  ;;  %v3195_v3 = vmul.f32 0.7978846, %v3131_v17  ;;  %v3133_v37 = vadd.f32 %v3069_v55, %v6255_v11  ;;  %v6823_v17 = vld [vmem:[#allocation14_spill] sm:$0xff] }
 0x357   : > { %v4752_v45 = vpop.eup %4751  ;;  %v3192_v53 = vmul.f32 0.7978846, %v3128_v63  ;;  %v2938_v9 = vmul.f32 0.044715, %v6260_v20 }
 0x358   : > { %v3318_v49 = vadd.f32 1.0, %v4752_v45  ;;  %v2519_v60 = vpop.f32.mrf.mxu2  ;;  %v2343_v50 = vpop.f32.mrf.mxu0 }
 0x359   : > { %4755 = vtanh.f32 %v3192_v53  ;;  %v3002_v28 = vmul.f32 %v2938_v9, %v6260_v20  ;;  %v2520_v48 = vadd.f32 %v2519_v60, %v2431_v15  ;;  %v2608_v0 = vpop.f32.mrf.mxu3  ;;  %v2432_v41 = vpop.f32.mrf.mxu1  ;;  %v2344_v58 = vadd.f32 %v2343_v50, %v6821_v56 }
 0x35a   : > { %v3382_v1 = vmul.f32 %v3318_v49, %v2870_v34  ;;  %v4754_v32 = vpop.eup %4753  ;;  %4757 = vtanh.f32 %v3193_v47  ;;  %v3007_v53 = vmul.f32 %v2943_v46, %v6274_v57  ;;  %v6294_v15 = vadd.f32 %v5840_v26, %v5922_v6 }
 0x35b   : > { %v3066_v25 = vmul.f32 %v3002_v28, %v6260_v20  ;;  %v2609_v33 = vadd.f32 %v2608_v0, %v2520_v48  ;;  %v3319_v40 = vadd.f32 1.0, %v4754_v32  ;;  %v2433_v31 = vadd.f32 %v2432_v41, %v2344_v58 }
 0x35c   : > { %v3432_v35 = vpack.c.bf16 %v3382_v1, %v3381_v10  ;;  %v3197_v48 = vmul.f32 0.7978846, %v3133_v37  ;;  %v3071_v0 = vmul.f32 %v3007_v53, %v6274_v57  ;;  %v2874_v26 = vmul.f32 0.5, %v6260_v20 }
 0x35d   : > { %v3130_v23 = vadd.f32 %v3066_v25, %v6260_v20  ;;  %v6279_v62 = vadd.f32 %v2609_v33, %v5948_v16  ;;  %v3383_v2 = vmul.f32 %v3319_v40, %v2871_v38  ;;  %v2945_v1 = vmul.f32 0.044715, %v6294_v15  ;;  %v6824_v40 = vld [vmem:[#allocation48_spill] sm:$0xff] }
 0x35e   : > { %3464 = vst [vmem:[%s6011_s19 + $0x68] sm:$0xff] %v3432_v35 }
 0x35f   : > { %v4756_v44 = vpop.eup %4755  ;;  %v3194_v8 = vmul.f32 0.7978846, %v3130_v23  ;;  %v2940_v5 = vmul.f32 0.044715, %v6279_v62  ;;  %v3135_v23 = vadd.f32 %v3071_v0, %v6274_v57 }
 0x360   : > { %v3320_v21 = vadd.f32 1.0, %v4756_v44  ;;  %v2521_v18 = vpop.f32.mrf.mxu2  ;;  %v2346_v42 = vpop.f32.mrf.mxu0  ;;  %v6312_v44 = vadd.f32 %v6824_v40, %v5922_v6  ;;  %v6825_v40 = vld [vmem:[#allocation49_spill] sm:$0xff] }
 0x361   : > { %4759 = vtanh.f32 %v3194_v8  ;;  %v3004_v51 = vmul.f32 %v2940_v5, %v6279_v62  ;;  %v2522_v30 = vadd.f32 %v2521_v18, %v2433_v31  ;;  %v2610_v22 = vpop.f32.mrf.mxu3  ;;  %v2435_v19 = vpop.f32.mrf.mxu1  ;;  %v2347_v7 = vadd.f32 %v2346_v42, %v5837_v4 }
 0x362   : > { %v3384_v27 = vmul.f32 %v3320_v21, %v2872_v29  ;;  %v4758_v63 = vpop.eup %4757  ;;  %4761 = vtanh.f32 %v3195_v3  ;;  %v2873_v4 = vmul.f32 0.5, %v6213_v54  ;;  %v3009_v8 = vmul.f32 %v2945_v1, %v6294_v15 }
 0x363   : > { %v3068_v43 = vmul.f32 %v3004_v51, %v6279_v62  ;;  %v2611_v45 = vadd.f32 %v2610_v22, %v2522_v30  ;;  %v3321_v34 = vadd.f32 1.0, %v4758_v63  ;;  %v2436_v28 = vadd.f32 %v2435_v19, %v2347_v7 }
 0x364   : > { %v3433_v9 = vpack.c.bf16 %v3384_v27, %v3383_v2  ;;  %v2875_v29 = vmul.f32 0.5, %v6237_v39  ;;  %v3199_v51 = vmul.f32 0.7978846, %v3135_v23  ;;  %v2947_v30 = vmul.f32 0.044715, %v6312_v44 }
 0x365   : > { %v3132_v47 = vadd.f32 %v3068_v43, %v6279_v62  ;;  %v6298_v36 = vadd.f32 %v2611_v45, %v5948_v16  ;;  %v3385_v54 = vmul.f32 %v3321_v34, %v2873_v4  ;;  %v2876_v22 = vmul.f32 0.5, %v6279_v62 }
 0x366   : > { %3465 = vst [vmem:[%s6011_s19 + $0x70] sm:$0xff] %v3433_v9  ;;  %v3073_v27 = vmul.f32 %v3009_v8, %v6294_v15  ;;  %v3011_v34 = vmul.f32 %v2947_v30, %v6312_v44 }
 0x367   : > { %v4760_v49 = vpop.eup %4759  ;;  %v3196_v60 = vmul.f32 0.7978846, %v3132_v47  ;;  %v2942_v12 = vmul.f32 0.044715, %v6298_v36 }
 0x368   : > { %v3322_v50 = vadd.f32 1.0, %v4760_v49  ;;  %v2524_v10 = vpop.f32.mrf.mxu2  ;;  %v2348_v33 = vpop.f32.mrf.mxu0  ;;  %v6331_v49 = vadd.f32 %v5854_v24, %v5922_v6  ;;  %v3075_v24 = vmul.f32 %v3011_v34, %v6312_v44 }
 0x369   : > { %4763 = vtanh.f32 %v3196_v60  ;;  %v3006_v41 = vmul.f32 %v2942_v12, %v6298_v36  ;;  %v2525_v32 = vadd.f32 %v2524_v10, %v2436_v28  ;;  %v2613_v25 = vpop.f32.mrf.mxu3  ;;  %v2437_v58 = vpop.f32.mrf.mxu1  ;;  %v2349_v20 = vadd.f32 %v2348_v33, %v6823_v17 }
 0x36a   : > { %v3386_v56 = vmul.f32 %v3322_v50, %v2874_v26  ;;  %v4762_v14 = vpop.eup %4761  ;;  %4765 = vtanh.f32 %v3197_v48  ;;  %v3137_v60 = vadd.f32 %v3073_v27, %v6294_v15  ;;  %v2949_v1 = vmul.f32 0.044715, %v6331_v49 }
 0x36b   : > { %v3070_v13 = vmul.f32 %v3006_v41, %v6298_v36  ;;  %v2614_v35 = vadd.f32 %v2613_v25, %v2525_v32  ;;  %v3323_v55 = vadd.f32 1.0, %v4762_v14  ;;  %v2438_v3 = vadd.f32 %v2437_v58, %v2349_v20 }
 0x36c   : > { %v3434_v38 = vpack.c.bf16 %v3386_v56, %v3385_v54  ;;  %v2878_v41 = vmul.f32 0.5, %v6298_v36  ;;  %v3201_v33 = vmul.f32 0.7978846, %v3137_v60  ;;  %v3013_v8 = vmul.f32 %v2949_v1, %v6331_v49 }
 0x36d   : > { %v3134_v5 = vadd.f32 %v3070_v13, %v6298_v36  ;;  %v6317_v31 = vadd.f32 %v2614_v35, %v5948_v16  ;;  %v3387_v39 = vmul.f32 %v3323_v55, %v2875_v29  ;;  %v3139_v36 = vadd.f32 %v3075_v24, %v6312_v44  ;;  %v6826_v55 = vld [vmem:[#allocation15_spill] sm:$0xff] }
 0x36e   : > { %3466 = vst [vmem:[%s6011_s19 + $0x78] sm:$0xff] %v3434_v38  ;;  %v3077_v27 = vmul.f32 %v3013_v8, %v6331_v49  ;;  %v6828_v8 = vld [vmem:[#allocation51_spill] sm:$0xff] }
 0x36f   : > { %v4764_v46 = vpop.eup %4763  ;;  %v3198_v21 = vmul.f32 0.7978846, %v3134_v5  ;;  %v2944_v18 = vmul.f32 0.044715, %v6317_v31 }
 0x370   : > { %v3324_v42 = vadd.f32 1.0, %v4764_v46  ;;  %v2526_v2 = vpop.f32.mrf.mxu2  ;;  %v2351_v45 = vpop.f32.mrf.mxu0  ;;  %v6351_v46 = vadd.f32 %v6826_v55, %v5922_v6  ;;  %v3141_v60 = vadd.f32 %v3077_v27, %v6331_v49 }
 0x371   : > { %4767 = vtanh.f32 %v3198_v21  ;;  %v3008_v19 = vmul.f32 %v2944_v18, %v6317_v31  ;;  %v2527_v63 = vadd.f32 %v2526_v2, %v2438_v3  ;;  %v2615_v43 = vpop.f32.mrf.mxu3  ;;  %v2440_v37 = vpop.f32.mrf.mxu1  ;;  %v2352_v62 = vadd.f32 %v2351_v45, %v5851_v59 }
 0x372   : > { %v3388_v7 = vmul.f32 %v3324_v42, %v2876_v22  ;;  %v4766_v53 = vpop.eup %4765  ;;  %4769 = vtanh.f32 %v3199_v51  ;;  %v2877_v59 = vmul.f32 0.5, %v6255_v11  ;;  %v2879_v51 = vmul.f32 0.5, %v6274_v57 }
 0x373   : > { %v3072_v9 = vmul.f32 %v3008_v19, %v6317_v31  ;;  %v2616_v47 = vadd.f32 %v2615_v43, %v2527_v63  ;;  %v3325_v48 = vadd.f32 1.0, %v4766_v53  ;;  %v2441_v10 = vadd.f32 %v2440_v37, %v2352_v62 }
 0x374   : > { %v3435_v4 = vpack.c.bf16 %v3388_v7, %v3387_v39  ;;  %v3203_v2 = vmul.f32 0.7978846, %v3139_v36  ;;  %v2880_v19 = vmul.f32 0.5, %v6317_v31  ;;  %v2951_v45 = vmul.f32 0.044715, %v6351_v46 }
 0x375   : > { %v3136_v12 = vadd.f32 %v3072_v9, %v6317_v31  ;;  %v6336_v28 = vadd.f32 %v2616_v47, %v5948_v16  ;;  %v3389_v11 = vmul.f32 %v3325_v48, %v2877_v59 }
 0x376   : > { %3467 = vst [vmem:[%s6011_s19 + $0x80] sm:$0xff] %v3435_v4 }
 0x377   : > { %v4768_v0 = vpop.eup %4767  ;;  %v3200_v26 = vmul.f32 0.7978846, %v3136_v12  ;;  %v2946_v50 = vmul.f32 0.044715, %v6336_v28  ;;  %v6369_v12 = vadd.f32 %v5868_v52, %v5922_v6  ;;  %v3205_v52 = vmul.f32 0.7978846, %v3141_v60 }
 0x378   : > { %v3326_v32 = vadd.f32 1.0, %v4768_v0  ;;  %v2529_v25 = vpop.f32.mrf.mxu2  ;;  %v2353_v14 = vpop.f32.mrf.mxu0  ;;  %v3015_v0 = vmul.f32 %v2951_v45, %v6351_v46  ;;  %v6829_v60 = vld [vmem:[#allocation54_spill] sm:$0xff] }
 0x379   : > { %4771 = vtanh.f32 %v3200_v26  ;;  %v3010_v54 = vmul.f32 %v2946_v50, %v6336_v28  ;;  %v2530_v56 = vadd.f32 %v2529_v25, %v2441_v10  ;;  %v2618_v58 = vpop.f32.mrf.mxu3  ;;  %v2442_v35 = vpop.f32.mrf.mxu1  ;;  %v2354_v38 = vadd.f32 %v2353_v14, %v6825_v40 }
 0x37a   : > { %v3390_v13 = vmul.f32 %v3326_v32, %v2878_v41  ;;  %v4770_v17 = vpop.eup %4769  ;;  %4773 = vtanh.f32 %v3201_v33  ;;  %v2953_v32 = vmul.f32 0.044715, %v6369_v12  ;;  %v2882_v25 = vmul.f32 0.5, %v6336_v28 }
 0x37b   : > { %v3074_v20 = vmul.f32 %v3010_v54, %v6336_v28  ;;  %v2619_v23 = vadd.f32 %v2618_v58, %v2530_v56  ;;  %v3327_v18 = vadd.f32 1.0, %v4770_v17  ;;  %v2443_v42 = vadd.f32 %v2442_v35, %v2354_v38  ;;  %v6827_v38 = vld [vmem:[#allocation16_spill] sm:$0xff] }
 0x37c   : > { %v3436_v5 = vpack.c.bf16 %v3390_v13, %v3389_v11  ;;  %v3079_v56 = vmul.f32 %v3015_v0, %v6351_v46  ;;  %v3017_v36 = vmul.f32 %v2953_v32, %v6369_v12 }
 0x37d   : > { %v3138_v29 = vadd.f32 %v3074_v20, %v6336_v28  ;;  %v6355_v21 = vadd.f32 %v2619_v23, %v5948_v16  ;;  %v3391_v57 = vmul.f32 %v3327_v18, %v2879_v51 }
 0x37e   : > { %3468 = vst [vmem:[%s6011_s19 + $0x88] sm:$0xff] %v3436_v5  ;;  %v6388_v5 = vadd.f32 %v6828_v8, %v5922_v6  ;;  %v6831_v8 = vld [vmem:[#allocation18_spill] sm:$0xff] }
 0x37f   : > { %v4772_v3 = vpop.eup %4771  ;;  %v3202_v30 = vmul.f32 0.7978846, %v3138_v29  ;;  %v2948_v22 = vmul.f32 0.044715, %v6355_v21  ;;  %v3143_v29 = vadd.f32 %v3079_v56, %v6351_v46 }
 0x380   : > { %v3328_v63 = vadd.f32 1.0, %v4772_v3  ;;  %v2531_v43 = vpop.f32.mrf.mxu2  ;;  %v2356_v53 = vpop.f32.mrf.mxu0 }
 0x381   : > { %4775 = vtanh.f32 %v3202_v30  ;;  %v3012_v39 = vmul.f32 %v2948_v22, %v6355_v21  ;;  %v2532_v7 = vadd.f32 %v2531_v43, %v2443_v42  ;;  %v2620_v37 = vpop.f32.mrf.mxu3  ;;  %v2445_v47 = vpop.f32.mrf.mxu1  ;;  %v2357_v31 = vadd.f32 %v2356_v53, %v5865_v61 }
 0x382   : > { %v3392_v9 = vmul.f32 %v3328_v63, %v2880_v19  ;;  %v4774_v62 = vpop.eup %4773  ;;  %4777 = vtanh.f32 %v3203_v2  ;;  %v2881_v61 = vmul.f32 0.5, %v6294_v15  ;;  %v2883_v22 = vmul.f32 0.5, %v6312_v44 }
 0x383   : > { %v3076_v34 = vmul.f32 %v3012_v39, %v6355_v21  ;;  %v2621_v4 = vadd.f32 %v2620_v37, %v2532_v7  ;;  %v3329_v50 = vadd.f32 1.0, %v4774_v62  ;;  %v2446_v41 = vadd.f32 %v2445_v47, %v2357_v31 }
 0x384   : > { %v3437_v48 = vpack.c.bf16 %v3392_v9, %v3391_v57  ;;  %v3081_v19 = vmul.f32 %v3017_v36, %v6369_v12  ;;  %v2955_v63 = vmul.f32 0.044715, %v6388_v5  ;;  %v2884_v43 = vmul.f32 0.5, %v6355_v21 }
 0x385   : > { %v3140_v59 = vadd.f32 %v3076_v34, %v6355_v21  ;;  %v6374_v26 = vadd.f32 %v2621_v4, %v5948_v16  ;;  %v3393_v15 = vmul.f32 %v3329_v50, %v2881_v61  ;;  %v3207_v7 = vmul.f32 0.7978846, %v3143_v29  ;;  %v6830_v50 = vld [vmem:[#allocation17_spill] sm:$0xff]  ;;  %v6832_v29 = vld [vmem:[#allocation52_spill] sm:$0xff] }
 0x386   : > { %3469 = vst [vmem:[%s6011_s19 + $0x90] sm:$0xff] %v3437_v48  ;;  %v3145_v21 = vadd.f32 %v3081_v19, %v6369_v12  ;;  %v3019_v0 = vmul.f32 %v2955_v63, %v6388_v5  ;;  %v2887_v19 = vmul.f32 0.5, %v6351_v46 }
 0x387   : > { %v4776_v10 = vpop.eup %4775  ;;  %v3204_v24 = vmul.f32 0.7978846, %v3140_v59  ;;  %v2950_v1 = vmul.f32 0.044715, %v6374_v26 }
 0x388   : > { %v3330_v33 = vadd.f32 1.0, %v4776_v10  ;;  %v2534_v54 = vpop.f32.mrf.mxu2  ;;  %v2358_v13 = vpop.f32.mrf.mxu0  ;;  %v6408_v10 = vadd.f32 %v6830_v50, %v5922_v6  ;;  %v3083_v56 = vmul.f32 %v3019_v0, %v6388_v5  ;;  %v6833_v0 = vld [vmem:[#allocation53_spill] sm:$0xff]  ;;  %v6834_v50 = vld [vmem:[#allocation19_spill] sm:$0xff] }
 0x389   : > { %4779 = vtanh.f32 %v3204_v24  ;;  %v3014_v58 = vmul.f32 %v2950_v1, %v6374_v26  ;;  %v2535_v14 = vadd.f32 %v2534_v54, %v2446_v41  ;;  %v2623_v11 = vpop.f32.mrf.mxu3  ;;  %v2447_v17 = vpop.f32.mrf.mxu1  ;;  %v2359_v28 = vadd.f32 %v2358_v13, %v6827_v38 }
 0x38a   : > { %v3394_v35 = vmul.f32 %v3330_v33, %v2882_v25  ;;  %v4778_v20 = vpop.eup %4777  ;;  %4781 = vtanh.f32 %v3205_v52  ;;  %v2885_v52 = vmul.f32 0.5, %v6331_v49  ;;  %v3209_v54 = vmul.f32 0.7978846, %v3145_v21 }
 0x38b   : > { %v3078_v23 = vmul.f32 %v3014_v58, %v6374_v26  ;;  %v2624_v40 = vadd.f32 %v2623_v11, %v2535_v14  ;;  %v3331_v51 = vadd.f32 1.0, %v4778_v20  ;;  %v2448_v27 = vadd.f32 %v2447_v17, %v2359_v28 }
 0x38c   : > { %v3438_v55 = vpack.c.bf16 %v3394_v35, %v3393_v15  ;;  %v2886_v58 = vmul.f32 0.5, %v6374_v26  ;;  %v2957_v13 = vmul.f32 0.044715, %v6408_v10 }
 0x38d   : > { %v3142_v18 = vadd.f32 %v3078_v23, %v6374_v26  ;;  %v6393_v3 = vadd.f32 %v2624_v40, %v5948_v16  ;;  %v3395_v44 = vmul.f32 %v3331_v51, %v2883_v22 }
 0x38e   : > { %3470 = vst [vmem:[%s6011_s19 + $0x98] sm:$0xff] %v3438_v55  ;;  %v3147_v55 = vadd.f32 %v3083_v56, %v6388_v5 }
 0x38f   : > { %v4780_v30 = vpop.eup %4779  ;;  %v3206_v42 = vmul.f32 0.7978846, %v3142_v18  ;;  %v2952_v2 = vmul.f32 0.044715, %v6393_v3  ;;  %v6426_v18 = vadd.f32 %v6832_v29, %v5922_v6  ;;  %v6835_v29 = vld [vmem:[#allocation20_spill] sm:$0xff] }
 0x390   : > { %v3332_v45 = vadd.f32 1.0, %v4780_v30  ;;  %v2536_v39 = vpop.f32.mrf.mxu2  ;;  %v2361_v9 = vpop.f32.mrf.mxu0  ;;  %v3021_v30 = vmul.f32 %v2957_v13, %v6408_v10 }
 0x391   : > { %4783 = vtanh.f32 %v3206_v42  ;;  %v3016_v37 = vmul.f32 %v2952_v2, %v6393_v3  ;;  %v2537_v53 = vadd.f32 %v2536_v39, %v2448_v27  ;;  %v2625_v57 = vpop.f32.mrf.mxu3  ;;  %v2450_v62 = vpop.f32.mrf.mxu1  ;;  %v2362_v48 = vadd.f32 %v2361_v9, %v6829_v60 }
 0x392   : > { %v3396_v47 = vmul.f32 %v3332_v45, %v2884_v43  ;;  %v4782_v34 = vpop.eup %4781  ;;  %4785 = vtanh.f32 %v3207_v7  ;;  %v3211_v39 = vmul.f32 0.7978846, %v3147_v55  ;;  %v2959_v7 = vmul.f32 0.044715, %v6426_v18 }
 0x393   : > { %v3080_v4 = vmul.f32 %v3016_v37, %v6393_v3  ;;  %v2626_v31 = vadd.f32 %v2625_v57, %v2537_v53  ;;  %v3333_v1 = vadd.f32 1.0, %v4782_v34  ;;  %v2451_v33 = vadd.f32 %v2450_v62, %v2362_v48 }
 0x394   : > { %v3439_v59 = vpack.c.bf16 %v3396_v47, %v3395_v44  ;;  %v2888_v37 = vmul.f32 0.5, %v6393_v3  ;;  %v3085_v9 = vmul.f32 %v3021_v30, %v6408_v10 }
 0x395   : > { %v3144_v61 = vadd.f32 %v3080_v4, %v6393_v3  ;;  %v6412_v24 = vadd.f32 %v2626_v31, %v5948_v16  ;;  %v3397_v49 = vmul.f32 %v3333_v1, %v2885_v52 }
 0x396   : > { %3471 = vst [vmem:[%s6011_s19 + $0xa0] sm:$0xff] %v3439_v59  ;;  %v3023_v59 = vmul.f32 %v2959_v7, %v6426_v18 }
 0x397   : > { %v4784_v41 = vpop.eup %4783  ;;  %v3208_v32 = vmul.f32 0.7978846, %v3144_v61  ;;  %v2954_v25 = vmul.f32 0.044715, %v6412_v24  ;;  %v6445_v61 = vadd.f32 %v6834_v50, %v5922_v6  ;;  %v6837_v50 = vld [vmem:[#allocation58_spill] sm:$0xff] }
 0x398   : > { %v3334_v14 = vadd.f32 1.0, %v4784_v41  ;;  %v2539_v11 = vpop.f32.mrf.mxu2  ;;  %v2363_v20 = vpop.f32.mrf.mxu0  ;;  %v3149_v41 = vadd.f32 %v3085_v9, %v6408_v10 }
 0x399   : > { %4787 = vtanh.f32 %v3208_v32  ;;  %v3018_v15 = vmul.f32 %v2954_v25, %v6412_v24  ;;  %v2540_v35 = vadd.f32 %v2539_v11, %v2451_v33  ;;  %v2628_v17 = vpop.f32.mrf.mxu3  ;;  %v2452_v40 = vpop.f32.mrf.mxu1  ;;  %v2364_v26 = vadd.f32 %v2363_v20, %v6831_v8 }
 0x39a   : > { %v3398_v23 = vmul.f32 %v3334_v14, %v2886_v58  ;;  %v4786_v38 = vpop.eup %4785  ;;  %4789 = vtanh.f32 %v3209_v54  ;;  %v2889_v54 = vmul.f32 0.5, %v6369_v12  ;;  %v3087_v11 = vmul.f32 %v3023_v59, %v6426_v18 }
 0x39b   : > { %v3082_v28 = vmul.f32 %v3018_v15, %v6412_v24  ;;  %v2629_v36 = vadd.f32 %v2628_v17, %v2540_v35  ;;  %v3335_v2 = vadd.f32 1.0, %v4786_v38  ;;  %v2453_v45 = vadd.f32 %v2452_v40, %v2364_v26 }
 0x39c   : > { %v3440_v51 = vpack.c.bf16 %v3398_v23, %v3397_v49  ;;  %v2961_v13 = vmul.f32 0.044715, %v6445_v61  ;;  %v2890_v15 = vmul.f32 0.5, %v6412_v24  ;;  %v3213_v20 = vmul.f32 0.7978846, %v3149_v41  ;;  %v6838_v41 = vld [vmem:[#allocation21_spill] sm:$0xff] }
 0x39d   : > { %v3146_v22 = vadd.f32 %v3082_v28, %v6412_v24  ;;  %v6431_v42 = vadd.f32 %v2629_v36, %v5948_v16  ;;  %v3399_v46 = vmul.f32 %v3335_v2, %v2887_v19  ;;  %v3151_v24 = vadd.f32 %v3087_v11, %v6426_v18  ;;  %v6836_v2 = vld [vmem:[#allocation55_spill] sm:$0xff] }
 0x39e   : > { %3472 = vst [vmem:[%s6011_s19 + $0xa8] sm:$0xff] %v3440_v51  ;;  %v3025_v30 = vmul.f32 %v2961_v13, %v6445_v61  ;;  %v2893_v11 = vmul.f32 0.5, %v6408_v10 }
 0x39f   : > { %v4788_v27 = vpop.eup %4787  ;;  %v3210_v63 = vmul.f32 0.7978846, %v3146_v22  ;;  %v2956_v43 = vmul.f32 0.044715, %v6431_v42 }
 0x3a0   : > { %v3336_v53 = vadd.f32 1.0, %v4788_v27  ;;  %v2541_v57 = vpop.f32.mrf.mxu2  ;;  %v2366_v34 = vpop.f32.mrf.mxu0  ;;  %v6465_v27 = vadd.f32 %v6836_v2, %v5922_v6  ;;  %v3089_v9 = vmul.f32 %v3025_v30, %v6445_v61  ;;  %v6839_v30 = vld [vmem:[#allocation22_spill] sm:$0xff]  ;;  %v6840_v2 = vld [vmem:[#allocation56_spill] sm:$0xff] }
 0x3a1   : > { %4791 = vtanh.f32 %v3210_v63  ;;  %v3020_v44 = vmul.f32 %v2956_v43, %v6431_v42  ;;  %v2542_v47 = vadd.f32 %v2541_v57, %v2453_v45  ;;  %v2630_v62 = vpop.f32.mrf.mxu3  ;;  %v2455_v31 = vpop.f32.mrf.mxu1  ;;  %v2367_v3 = vadd.f32 %v2366_v34, %v6833_v0 }
 0x3a2   : > { %v3400_v4 = vmul.f32 %v3336_v53, %v2888_v37  ;;  %v4790_v60 = vpop.eup %4789  ;;  %4793 = vtanh.f32 %v3211_v39  ;;  %v2891_v39 = vmul.f32 0.5, %v6388_v5  ;;  %v3215_v57 = vmul.f32 0.7978846, %v3151_v24 }
 0x3a3   : > { %v3084_v48 = vmul.f32 %v3020_v44, %v6431_v42  ;;  %v2631_v21 = vadd.f32 %v2630_v62, %v2542_v47  ;;  %v3337_v25 = vadd.f32 1.0, %v4790_v60  ;;  %v2456_v14 = vadd.f32 %v2455_v31, %v2367_v3 }
 0x3a4   : > { %v3441_v1 = vpack.c.bf16 %v3400_v4, %v3399_v46  ;;  %v2892_v44 = vmul.f32 0.5, %v6431_v42  ;;  %v2963_v34 = vmul.f32 0.044715, %v6465_v27 }
 0x3a5   : > { %v3148_v52 = vadd.f32 %v3084_v48, %v6431_v42  ;;  %v6450_v32 = vadd.f32 %v2631_v21, %v5948_v16  ;;  %v3401_v12 = vmul.f32 %v3337_v25, %v2889_v54 }
 0x3a6   : > { %3473 = vst [vmem:[%s6011_s19 + $0xb0] sm:$0xff] %v3441_v1  ;;  %v3153_v1 = vadd.f32 %v3089_v9, %v6445_v61 }
 0x3a7   : > { %v4792_v33 = vpop.eup %4791  ;;  %v3212_v56 = vmul.f32 0.7978846, %v3148_v52  ;;  %v2958_v58 = vmul.f32 0.044715, %v6450_v32  ;;  %v6483_v52 = vadd.f32 %v6838_v41, %v5922_v6 }
 0x3a8   : > { %v3338_v35 = vadd.f32 1.0, %v4792_v33  ;;  %v2544_v17 = vpop.f32.mrf.mxu2  ;;  %v2368_v38 = vpop.f32.mrf.mxu0  ;;  %v3027_v33 = vmul.f32 %v2963_v34, %v6465_v27 }
 0x3a9   : > { %4795 = vtanh.f32 %v3212_v56  ;;  %v3022_v49 = vmul.f32 %v2958_v58, %v6450_v32  ;;  %v2545_v23 = vadd.f32 %v2544_v17, %v2456_v14  ;;  %v2633_v40 = vpop.f32.mrf.mxu3  ;;  %v2457_v36 = vpop.f32.mrf.mxu1  ;;  %v2369_v51 = vadd.f32 %v2368_v38, %v6835_v29 }
 0x3aa   : > { %v3402_v28 = vmul.f32 %v3338_v35, %v2890_v15  ;;  %v4794_v8 = vpop.eup %4793  ;;  %4797 = vtanh.f32 %v3213_v20  ;;  %v3217_v17 = vmul.f32 0.7978846, %v3153_v1  ;;  %v2965_v20 = vmul.f32 0.044715, %v6483_v52  ;;  %v6841_v1 = vld [vmem:[#allocation57_spill] sm:$0xff] }
 0x3ab   : > { %v3086_v26 = vmul.f32 %v3022_v49, %v6450_v32  ;;  %v2634_v55 = vadd.f32 %v2633_v40, %v2545_v23  ;;  %v3339_v43 = vadd.f32 1.0, %v4794_v8  ;;  %v2458_v53 = vadd.f32 %v2457_v36, %v2369_v51 }
 0x3ac   : > { %v3442_v22 = vpack.c.bf16 %v3402_v28, %v3401_v12  ;;  %v2894_v49 = vmul.f32 0.5, %v6450_v32  ;;  %v3091_v38 = vmul.f32 %v3027_v33, %v6465_v27 }
 0x3ad   : > { %v3150_v19 = vadd.f32 %v3086_v26, %v6450_v32  ;;  %v6469_v63 = vadd.f32 %v2634_v55, %v5948_v16  ;;  %v3403_v5 = vmul.f32 %v3339_v43, %v2891_v39 }
 0x3ae   : > { %3474 = vst [vmem:[%s6011_s19 + $0xb8] sm:$0xff] %v3442_v22  ;;  %v3029_v22 = vmul.f32 %v2965_v20, %v6483_v52 }
 0x3af   : > { %v4796_v45 = vpop.eup %4795  ;;  %v3214_v7 = vmul.f32 0.7978846, %v3150_v19  ;;  %v2960_v37 = vmul.f32 0.044715, %v6469_v63  ;;  %v6502_v19 = vadd.f32 %v6840_v2, %v5922_v6 }
 0x3b0   : > { %v3340_v47 = vadd.f32 1.0, %v4796_v45  ;;  %v2546_v62 = vpop.f32.mrf.mxu2  ;;  %v2371_v60 = vpop.f32.mrf.mxu0  ;;  %v3155_v45 = vadd.f32 %v3091_v38, %v6465_v27 }
 0x3b1   : > { %4799 = vtanh.f32 %v3214_v7  ;;  %v3024_v46 = vmul.f32 %v2960_v37, %v6469_v63  ;;  %v2547_v4 = vadd.f32 %v2546_v62, %v2458_v53  ;;  %v2635_v31 = vpop.f32.mrf.mxu3  ;;  %v2460_v21 = vpop.f32.mrf.mxu1  ;;  %v2372_v42 = vadd.f32 %v2371_v60, %v6837_v50 }
 0x3b2   : > { %v3404_v48 = vmul.f32 %v3340_v47, %v2892_v44  ;;  %v4798_v0 = vpop.eup %4797  ;;  %4801 = vtanh.f32 %v3215_v57  ;;  %v2895_v57 = vmul.f32 0.5, %v6426_v18  ;;  %v3093_v62 = vmul.f32 %v3029_v22, %v6483_v52 }
 0x3b3   : > { %v3088_v3 = vmul.f32 %v3024_v46, %v6469_v63  ;;  %v2636_v59 = vadd.f32 %v2635_v31, %v2547_v4  ;;  %v3341_v58 = vadd.f32 1.0, %v4798_v0  ;;  %v2461_v35 = vadd.f32 %v2460_v21, %v2372_v42 }
 0x3b4   : > { %v3443_v25 = vpack.c.bf16 %v3404_v48, %v3403_v5  ;;  %v2967_v34 = vmul.f32 0.044715, %v6502_v19  ;;  %v2896_v46 = vmul.f32 0.5, %v6469_v63  ;;  %v3219_v60 = vmul.f32 0.7978846, %v3155_v45 }
 0x3b5   : > { %v3152_v54 = vadd.f32 %v3088_v3, %v6469_v63  ;;  %v6488_v56 = vadd.f32 %v2636_v59, %v5948_v16  ;;  %v3405_v10 = vmul.f32 %v3341_v58, %v2893_v11  ;;  %v3157_v63 = vadd.f32 %v3093_v62, %v6483_v52  ;;  %v6842_v58 = vld [vmem:[#allocation23_spill] sm:$0xff] }
 0x3b6   : > { %3475 = vst [vmem:[%s6011_s19 + $0xc0] sm:$0xff] %v3443_v25  ;;  %v3031_v25 = vmul.f32 %v2967_v34, %v6502_v19  ;;  %v2899_v62 = vmul.f32 0.5, %v6465_v27 }
 0x3b7   : > { %v4800_v14 = vpop.eup %4799  ;;  %v3216_v13 = vmul.f32 0.7978846, %v3152_v54  ;;  %v2962_v15 = vmul.f32 0.044715, %v6488_v56 }
 0x3b8   : > { %v3342_v23 = vadd.f32 1.0, %v4800_v14  ;;  %v2549_v40 = vpop.f32.mrf.mxu2  ;;  %v2373_v8 = vpop.f32.mrf.mxu0  ;;  %v6522_v14 = vadd.f32 %v6842_v58, %v5922_v6  ;;  %v3095_v38 = vmul.f32 %v3031_v25, %v6502_v19  ;;  %v2898_v6 = vmul.f32 0.5, %v6488_v56 }
 0x3b9   : > { %4803 = vtanh.f32 %v3216_v13  ;;  %v3026_v12 = vmul.f32 %v2962_v15, %v6488_v56  ;;  %v2550_v28 = vadd.f32 %v2549_v40, %v2461_v35  ;;  %v2638_v36 = vpop.f32.mrf.mxu3  ;;  %v2462_v55 = vpop.f32.mrf.mxu1  ;;  %v2374_v32 = vadd.f32 %v2373_v8, %v6839_v30 }
 0x3ba   : > { %v3406_v26 = vmul.f32 %v3342_v23, %v2894_v49  ;;  %v4802_v29 = vpop.eup %4801  ;;  %4805 = vtanh.f32 %v3217_v17  ;;  %v2897_v17 = vmul.f32 0.5, %v6445_v61  ;;  %v3221_v40 = vmul.f32 0.7978846, %v3157_v63 }
 0x3bb   : > { %v3090_v51 = vmul.f32 %v3026_v12, %v6488_v56  ;;  %v2639_v24 = vadd.f32 %v2638_v36, %v2550_v28  ;;  %v3343_v37 = vadd.f32 1.0, %v4802_v29  ;;  %v2463_v47 = vadd.f32 %v2462_v55, %v2374_v32  ;;  %v6843_v32 = vld [vmem:[#allocation24_spill] sm:$0xff] }
 0x3bc   : > { %v3444_v43 = vpack.c.bf16 %v3406_v26, %v3405_v10  ;;  %v2969_v36 = vmul.f32 0.044715, %v6522_v14 }
 0x3bd   : > { %v3154_v39 = vadd.f32 %v3090_v51, %v6488_v56  ;;  %v6507_v7 = vadd.f32 %v2639_v24, %v5948_v16  ;;  %v3407_v18 = vmul.f32 %v3343_v37, %v2895_v57  ;;  %v3159_v56 = vadd.f32 %v3095_v38, %v6502_v19 }
 0x3be   : > { %3476 = vst [vmem:[%s6011_s19 + $0xc8] sm:$0xff] %v3444_v43  ;;  %v3033_v43 = vmul.f32 %v2969_v36, %v6522_v14 }
 0x3bf   : > { %v4804_v53 = vpop.eup %4803  ;;  %v3218_v9 = vmul.f32 0.7978846, %v3154_v39  ;;  %v2964_v44 = vmul.f32 0.044715, %v6507_v7  ;;  %v3223_v34 = vmul.f32 0.7978846, %v3159_v56 }
 0x3c0   : > { %v3344_v4 = vadd.f32 1.0, %v4804_v53  ;;  %v2551_v31 = vpop.f32.mrf.mxu2  ;;  %v2376_v0 = vpop.f32.mrf.mxu0 }
 0x3c1   : > { %4807 = vtanh.f32 %v3218_v9  ;;  %v3028_v5 = vmul.f32 %v2964_v44, %v6507_v7  ;;  %v2552_v48 = vadd.f32 %v2551_v31, %v2463_v47  ;;  %v2640_v21 = vpop.f32.mrf.mxu3  ;;  %v4806_v59 = vpop.eup %4805  ;;  %v2377_v41 = vadd.f32 %v2376_v0, %v6841_v1 }
 0x3c2   : > { %v3408_v3 = vmul.f32 %v3344_v4, %v2896_v46  ;;  %v2465_v54 = vpop.f32.mrf.mxu1  ;;  %4809 = vtanh.f32 %v3219_v60  ;;  %v3345_v15 = vadd.f32 1.0, %v4806_v59  ;;  %v2900_v46 = vmul.f32 0.5, %v6507_v7 }
 0x3c3   : > { %v3092_v50 = vmul.f32 %v3028_v5, %v6507_v7  ;;  %v2641_v42 = vadd.f32 %v2640_v21, %v2552_v48  ;;  %v2466_v23 = vadd.f32 %v2465_v54, %v2377_v41  ;;  %v3097_v60 = vmul.f32 %v3033_v43, %v6522_v14 }
 0x3c4   : > { %v3445_v33 = vpack.c.bf16 %v3408_v3, %v3407_v18  ;;  %v3409_v55 = vmul.f32 %v3345_v15, %v2897_v17  ;;  %v2901_v54 = vmul.f32 0.5, %v6483_v52 }
 0x3c5   : > { %v3156_v11 = vadd.f32 %v3092_v50, %v6507_v7  ;;  %v6526_v13 = vadd.f32 %v2641_v42, %v5948_v16  ;;  %v3161_v27 = vadd.f32 %v3097_v60, %v6522_v14 }
 0x3c6   : > { %3477 = vst [vmem:[%s6011_s19 + $0xd0] sm:$0xff] %v3445_v33 }
 0x3c7   : > { %v4808_v35 = vpop.eup %4807  ;;  %v3220_v20 = vmul.f32 0.7978846, %v3156_v11  ;;  %v2966_v49 = vmul.f32 0.044715, %v6526_v13  ;;  %v2902_v58 = vmul.f32 0.5, %v6526_v13 }
 0x3c8   : > { %v3346_v12 = vadd.f32 1.0, %v4808_v35  ;;  %v2554_v28 = vpop.f32.mrf.mxu2  ;;  %v2378_v61 = vpop.f32.mrf.mxu0  ;;  %v3225_v15 = vmul.f32 0.7978846, %v3161_v27 }
 0x3c9   : > { %4811 = vtanh.f32 %v3220_v20  ;;  %v3030_v8 = vmul.f32 %v2966_v49, %v6526_v13  ;;  %v2555_v10 = vadd.f32 %v2554_v28, %v2466_v23  ;;  %v2643_v26 = vpop.f32.mrf.mxu3  ;;  %v4810_v51 = vpop.eup %4809  ;;  %v2379_v22 = vadd.f32 %v2378_v61, %v6843_v32 }
 0x3ca   : > { %v3410_v29 = vmul.f32 %v3346_v12, %v2898_v6  ;;  %4813 = vtanh.f32 %v3221_v40  ;;  %v3347_v37 = vadd.f32 1.0, %v4810_v51  ;;  %v2467_v53 = vpop.f32.mrf.mxu1 }
 0x3cb   : > { %v3094_v24 = vmul.f32 %v3030_v8, %v6526_v13  ;;  %v2644_v30 = vadd.f32 %v2643_v26, %v2555_v10  ;;  %v2468_v47 = vadd.f32 %v2467_v53, %v2379_v22 }
 0x3cc   : > { %v3446_v2 = vpack.c.bf16 %v3410_v29, %v3409_v55  ;;  %v3411_v21 = vmul.f32 %v3347_v37, %v2899_v62 }
 0x3cd   : > { %v3158_v45 = vadd.f32 %v3094_v24, %v6526_v13  ;;  %v2709_v39 = vadd.f32 %v2644_v30, %v5948_v16  ;;  %v2903_v13 = vmul.f32 0.5, %v6502_v19  ;;  %v2905_v19 = vmul.f32 0.5, %v6522_v14 }
 0x3ce   : > { %3478 = vst [vmem:[%s6011_s19 + $0xd8] sm:$0xff] %v3446_v2 }
 0x3cf   : > { %v4812_v57 = vpop.eup %4811  ;;  %v3222_v9 = vmul.f32 0.7978846, %v3158_v45  ;;  %v2968_v44 = vmul.f32 0.044715, %v2709_v39  ;;  %v2904_v12 = vmul.f32 0.5, %v2709_v39 }
 0x3d0   : > { %v3348_v4 = vadd.f32 1.0, %v4812_v57  ;;  %v2556_v31 = vpop.f32.mrf.mxu2  ;;  %v4814_v3 = vpop.eup %4813 }
 0x3d1   : > { %4815 = vtanh.f32 %v3222_v9  ;;  %v3032_v5 = vmul.f32 %v2968_v44, %v2709_v39  ;;  %v2557_v48 = vadd.f32 %v2556_v31, %v2468_v47  ;;  %v2645_v18 = vpop.f32.mrf.mxu3  ;;  %v3349_v41 = vadd.f32 1.0, %v4814_v3 }
 0x3d2   : > { %v3412_v0 = vmul.f32 %v3348_v4, %v2900_v46  ;;  %4817 = vtanh.f32 %v3223_v34 }
 0x3d3   : > { %v3096_v59 = vmul.f32 %v3032_v5, %v2709_v39  ;;  %v2646_v50 = vadd.f32 %v2645_v18, %v2557_v48  ;;  %v3413_v17 = vmul.f32 %v3349_v41, %v2901_v54 }
 0x3d4   : > { %v3447_v42 = vpack.c.bf16 %v3412_v0, %v3411_v21 }
 0x3d5   : > { %v3160_v1 = vadd.f32 %v3096_v59, %v2709_v39  ;;  %v2711_v7 = vadd.f32 %v2646_v50, %v5948_v16 }
 0x3d6   : > { %3479 = vst [vmem:[%s6011_s19 + $0xe0] sm:$0xff] %v3447_v42 }
 0x3d7   : > { %v4816_v63 = vpop.eup %4815  ;;  %v3224_v25 = vmul.f32 0.7978846, %v3160_v1  ;;  %v2970_v33 = vmul.f32 0.044715, %v2711_v7  ;;  %v2906_v29 = vmul.f32 0.5, %v2711_v7 }
 0x3d8   : > { %v3350_v11 = vadd.f32 1.0, %v4816_v63  ;;  %v4818_v49 = vpop.eup %4817 }
 0x3d9   : > { %4819 = vtanh.f32 %v3224_v25  ;;  %v3034_v35 = vmul.f32 %v2970_v33, %v2711_v7  ;;  %v3351_v38 = vadd.f32 1.0, %v4818_v49 }
 0x3da   : > { %v3414_v20 = vmul.f32 %v3350_v11, %v2902_v58  ;;  %4821 = vtanh.f32 %v3225_v15 }
 0x3db   : > { %v3098_v23 = vmul.f32 %v3034_v35, %v2711_v7  ;;  %v3415_v36 = vmul.f32 %v3351_v38, %v2903_v13 }
 0x3dc   : > { %v3448_v16 = vpack.c.bf16 %v3414_v20, %v3413_v17 }
 0x3dd   : > { %v3162_v40 = vadd.f32 %v3098_v23, %v2711_v7 }
 0x3de   : > { %3480 = vst [vmem:[%s6011_s19 + $0xe8] sm:$0xff] %v3448_v16 }
 0x3df   : > { %v4820_v6 = vpop.eup %4819  ;;  %v3226_v52 = vmul.f32 0.7978846, %v3162_v40 }
 0x3e0   : > { %v3352_v28 = vadd.f32 1.0, %v4820_v6  ;;  %v4822_v10 = vpop.eup %4821 }
 0x3e1   : > { %4823 = vtanh.f32 %v3226_v52  ;;  %v3353_v61 = vadd.f32 1.0, %v4822_v10 }
 0x3e2   : > { %v3416_v8 = vmul.f32 %v3352_v28, %v2904_v12 }
 0x3e3   : > { %v3417_v24 = vmul.f32 %v3353_v61, %v2905_v19 }
 0x3e4   : > { %v3449_v26 = vpack.c.bf16 %v3416_v8, %v3415_v36 }
 0x3e6   : > { %3481 = vst [vmem:[%s6011_s19 + $0xf0] sm:$0xff] %v3449_v26 }
 0x3e7   : > { %v4824_v55 = vpop.eup %4823 }
 0x3e8   : > { %v3354_v51 = vadd.f32 1.0, %v4824_v55 }
 0x3ea   : > { %v3418_v30 = vmul.f32 %v3354_v51, %v2906_v29 }
 0x3ec   : > { %v3450_v32 = vpack.c.bf16 %v3418_v30, %v3417_v24 }
 0x3ee   : > { %3482 = vst [vmem:[%s6011_s19 + $0xf8] sm:$0xff] %v3450_v32 }
 0x3ef   : > { %4942 = shalt.err (!%p4939_p13)
}
 0x3f0   : > { %s5009_s28 = smov 128   ;;  %s5010_s30 = smov 256  }
 0x3f1   : > { %s5011_s1 = smov 8  }
 0x3f2   : > { %4619 = dma.vmem_to_hbm [thread:$0]  (%p5114_p0), %s3500_s7, 4096, %s3502_s8, %s3484_s15, %s5009_s28, %s5010_s30, %s5011_s1  }
 0x3f3 PF: > { %s3516_s6 = sand.u32 1, %s4981_s12   ;;  %p4633_p4 = pnand %p3633_p3, %p5118_p2 }
 0x3f4   : > { %s3517_s10 = scalar_lea.sflag [#allocation5], %s3516_s6 }
 0x3f5   : > { %p4634_p5 = pneg %p4633_p4 }
 0x3f7   : > { %4976 = dma.done.wait (%p4634_p5), %s3517_s10, 4096  }
 0x3f8   : > { %4978 = vsyncadd (%p4634_p5), %s3517_s10, 4294963200  ;;  %s20_s17 = sadd.s32 1, %s5001_s17   ;;  %s6844_s12 = smov %s4985_s13 }
 0x3f9   : > { %p17_p1 = scmp.ge.s32.totalorder %s20_s17, 4   ;;  %s6845_s13 = smov %s4989_s14 }
 0x3fa   : > { %s6846_s14 = smov %s5080_s24  ;;  %s6847_s15 = smov %s4997_s16 }
 0x3fb   : > { %s6848_s16 = smov %s6850_s18  ;;  %19 = sbr.rel (!%p17_p1) target bundleno = 10 (0xa), region = 102 }
 0x400   :  { %3523 = vsyncpa [#allocation4], 1 }
 0x401   :  { %3525 = vsyncpa [#allocation4 + $0x1], 1 }
 0x402   :  { %3526 = vsyncpa [#allocation7], 1 }
 0x403   :  { %3528 = vsyncpa [#allocation7 + $0x1], 1 }
 0x404   :  { %3529 = vsyncpa [#allocation5], 1 }
 0x405   :  { %3531 = vsyncpa [#allocation5 + $0x1], 1 }

</bundles_post_ra>
